<compile_context>
chip_gen: v7x
topology: tpu7x:2x2x1
jax: 0.10.0
libtpu: 0.0.40
codegen_flags: <defaults>
</compile_context>

<pallas_src>
import functools
import math

import jax
import jax.numpy as jnp
from jax.experimental import pallas as pl
from jax.experimental.pallas import tpu as pltpu


def clip_layer_kernel(
    x_ref,                # (TB, S, D)  f32
    g1_ref, b1_ref,       # layernorm_1 gamma/beta        (1, D)  f32
    w_in_ref, bin_ref,    # attention in_proj (Q scaled)  (D, 3D) bf16, (1, 3D) f32
    w_out_ref, bout_ref,  # attention out_proj            (D, D)  bf16, (1, D)  f32
    g2_ref, b2_ref,       # layernorm_2 gamma/beta        (1, D)  f32
    w1_ref, bw1_ref,      # linear_1                      (D, 4D) bf16, (1, 4D) f32
    w2_ref, bw2_ref,      # linear_2                      (4D, D) bf16, (1, D)  f32
    o_ref,                # (TB, S, D)
    *, n_heads, gelu_bf16,
):
    TB, S, D = x_ref.shape
    dh = D // n_heads
    M = TB * S
    BH = n_heads * TB
    eps = jnp.float32(1e-5)
    bf16 = jnp.bfloat16

    def layernorm(v, g_ref, b_ref):
        # Independent sum / sum-of-squares reductions: var = E[x^2] - mu^2.
        mu = jnp.mean(v, axis=-1, keepdims=True)
        ms = jnp.mean(v * v, axis=-1, keepdims=True)
        inv = jax.lax.rsqrt(ms - mu * mu + eps)
        return (v - mu) * inv * g_ref[0] + b_ref[0]

    def split_heads(t):
        # (M, D) f32 -> (H*TB, S, dh): minor lane split D -> (H, dh), single
        # head-major relayout for all heads, then a cheap leading split M -> (TB, S).
        t = t.reshape(M, n_heads, dh)
        t = pltpu.einshape("mhd->hmd", t)            # (H, M, dh)
        return t.reshape(BH, S, dh)                  # (H*TB, S, dh)

    # Batch fold: all dense math works on a flattened (TB*S, D) matrix.
    x = x_ref[...].astype(jnp.float32).reshape(M, D)

    # ---------------- LayerNorm 1 + QKV projection ----------------
    residue = x
    xn = layernorm(x, g1_ref, b1_ref)
    qkv = jnp.dot(xn.astype(bf16), w_in_ref[...],
                  preferred_element_type=jnp.float32) + bin_ref[0]

    # 1/sqrt(d_head) is already folded into the Q columns of w_in / b_in (host side).
    q = split_heads(qkv[:, :D]).astype(bf16)
    k = split_heads(qkv[:, D:2 * D]).astype(bf16)
    v = split_heads(qkv[:, 2 * D:]).astype(bf16)

    # ---------------- Causal self-attention (all heads batched) ----------------
    s = jnp.einsum('bqd,bkd->bqk', q, k,
                   preferred_element_type=jnp.float32)           # (BH, S, S) f32
    row = jax.lax.broadcasted_iota(jnp.int32, (S, S), 0)
    col = jax.lax.broadcasted_iota(jnp.int32, (S, S), 1)
    s = jnp.where((col > row)[None], -jnp.inf, s)                # strict upper tri masked

    # Explicit softmax; the divide runs on the EUP via an approximate reciprocal.
    m = jnp.max(s, axis=-1, keepdims=True)
    e = jnp.exp(s - m)
    p = e * pl.reciprocal(jnp.sum(e, axis=-1, keepdims=True), approx=True)

    ctx = jnp.einsum('bqk,bkd->bqd', p.astype(bf16), v,
                     preferred_element_type=jnp.float32)         # (BH, S, dh) f32

    # Merge heads back to (M, D) and do ONE full-K out-projection matmul.
    ctx = pltpu.einshape("hmd->mhd", ctx.reshape(n_heads, M, dh)).reshape(M, D)
    x = (jnp.dot(ctx.astype(bf16), w_out_ref[...],
                 preferred_element_type=jnp.float32)
         + bout_ref[0] + residue)                                # out_proj bias + residual 1

    # ---------------- LayerNorm 2 + MLP (QuickGELU) ----------------
    residue2 = x
    xn2 = layernorm(x, g2_ref, b2_ref)
    h1 = jnp.dot(xn2.astype(bf16), w1_ref[...],
                 preferred_element_type=jnp.float32) + bw1_ref[0]
    sig = jax.nn.sigmoid(jnp.float32(1.702) * h1)                # EUP, f32 argument
    if gelu_bf16:
        h1b = h1.astype(bf16) * sig.astype(bf16)                 # bf16 VPU (v6e/v7x)
    else:
        h1b = (h1 * sig).astype(bf16)                            # f32 VPU (v5e and older)
    h2 = jnp.dot(h1b, w2_ref[...],
                 preferred_element_type=jnp.float32) + bw2_ref[0]

    o_ref[...] = (h2 + residue2).reshape(TB, S, D).astype(o_ref.dtype)


def _pick_tb(B, S, *, m_target=256, m_cap=4096, min_grid=2):
    """Pick the batch fold tb (a divisor of B), preferring (a) a grid of at least
    min_grid steps (v7x megacore + input/output double-buffering), then (b)
    M = tb*S reaching the MXU M-tile, then (c) the smallest such M (longer grid);
    otherwise the largest M available."""
    best, best_key = 1, None
    for d in range(1, B + 1):
        if B % d:
            continue
        m = d * S
        if m > m_cap and d > 1:
            continue
        grid = B // d
        key = (grid >= min_grid, m >= m_target, -m if m >= m_target else m)
        if best_key is None or key > best_key:
            best, best_key = d, key
    return best


def _vmem_limit_bytes(D, S, tb, n_heads, weight_bufs):
    """Explicit VMEM budget for the chosen tile, clamped to physical capacity."""
    f32, b16 = 4, 2
    M, BH, dh = tb * S, tb * n_heads, D // n_heads
    lane = lambda n: max(n, 128)                     # lane padding of trailing dims
    weights = weight_bufs * (12 * D * D * b16 + 13 * D * f32)
    io = 2 * 2 * M * D * f32                         # x and o blocks, double-buffered
    acts = (M * 12 * D * f32                         # residues, qkv, ctx, attn-out, h1, h2
            + M * 8 * D * b16                        # bf16 matmul operands
            + BH * S * lane(S) * (2 * f32 + b16)     # scores, exp, probs
            + 3 * BH * S * lane(dh) * (f32 + b16))   # head-split q/k/v
    total = weights + io + acts + acts // 2 + (8 << 20)   # 50% act slop + fixed headroom
    try:
        cap = pltpu.get_tpu_info().vmem_capacity_bytes
    except Exception:
        cap = 64 << 20                               # conservative (v7x) fallback
    return int(min(total, cap - (4 << 20)))


def _bf16_vpu_available():
    """v6e/v7x have a bf16 VPU; v5e and older do not (keep QuickGELU multiply f32)."""
    try:
        kind = jax.devices()[0].device_kind.lower()
    except Exception:
        return True
    return not any(tag in kind for tag in ("v2", "v3", "v4", "v5"))


def clip_layer(x, params, n_heads, *, gelu_bf16=None):
    B, S, D = x.shape
    (g1, b1, w_in, b_in, w_out, b_out, g2, b2, w1, bw1, w2, bw2) = params
    assert D % n_heads == 0

    if gelu_bf16 is None:
        gelu_bf16 = _bf16_vpu_available()

    tb = _pick_tb(B, S)

    # Fold the attention scale into the Q columns of in_proj (f32, before the bf16
    # cast). -inf masking is scale-invariant, so this matches the reference's
    # mask-then-scale exactly.
    dh = D // n_heads
    scale = jnp.float32(1.0 / math.sqrt(dh))
    w_in_s = w_in.at[:, :D].multiply(scale)
    b_in_s = b_in.at[:, :D].multiply(scale)

    # Big weight matrices in bf16 (half the DMA bytes / VMEM, full-rate MXU);
    # biases and LN params stay f32.
    bf16 = jnp.bfloat16
    args = (g1, b1, w_in_s.astype(bf16), b_in_s, w_out.astype(bf16), b_out,
            g2, b2, w1.astype(bf16), bw1, w2.astype(bf16), bw2)

    kernel = functools.partial(clip_layer_kernel, n_heads=n_heads,
                               gelu_bf16=bool(gelu_bf16))

    def build(weight_mode):
        weight_bufs = 1 if weight_mode is not None else 2

        def wspec(shape):
            nd = len(shape)
            idx = lambda b: (0,) * nd                # constant block: no re-DMA across steps
            if weight_mode is None:
                return pl.BlockSpec(shape, idx)
            return pl.BlockSpec(shape, idx, pipeline_mode=weight_mode)

        in_specs = [
            pl.BlockSpec((tb, S, D), lambda b: (b, 0, 0)),   # x
            wspec((1, D)), wspec((1, D)),                    # ln1 gamma/beta
            wspec((D, 3 * D)), wspec((1, 3 * D)),            # in_proj
            wspec((D, D)), wspec((1, D)),                    # out_proj
            wspec((1, D)), wspec((1, D)),                    # ln2 gamma/beta
            wspec((D, 4 * D)), wspec((1, 4 * D)),            # linear_1
            wspec((4 * D, D)), wspec((1, D)),                # linear_2
        ]
        return pl.pallas_call(
            kernel,
            out_shape=jax.ShapeDtypeStruct((B, S, D), x.dtype),
            grid=(B // tb,),
            in_specs=in_specs,
            out_specs=pl.BlockSpec((tb, S, D), lambda b: (b, 0, 0)),
            compiler_params=pltpu.CompilerParams(
                dimension_semantics=("parallel",),
                vmem_limit_bytes=_vmem_limit_bytes(D, S, tb, n_heads, weight_bufs),
            ),
        )

    # Weights have constant index maps -> request single-buffering (halves resident
    # weight VMEM). If this jax/Mosaic version rejects pipeline_mode, fall back to
    # default double-buffered specs; genuine kernel errors reproduce (and surface)
    # from the fallback build, so nothing real is swallowed here.
    if hasattr(pl, "Buffered"):
        try:
            return build(pl.Buffered(1))(x, *args)
        except Exception:
            pass
    return build(None)(x, *args)


def init_params(key, D):
    """Deterministic synthetic parameter init (shapes match the PyTorch module,
    linear weights pre-transposed to (in_features, out_features))."""
    ks = jax.random.split(key, 4)
    s = 0.02
    g1 = jnp.ones((1, D), jnp.float32)
    b1 = jnp.zeros((1, D), jnp.float32)
    w_in = jax.random.normal(ks[0], (D, 3 * D), jnp.float32) * s
    b_in = jnp.zeros((1, 3 * D), jnp.float32)
    w_out = jax.random.normal(ks[1], (D, D), jnp.float32) * s
    b_out = jnp.zeros((1, D), jnp.float32)
    g2 = jnp.ones((1, D), jnp.float32)
    b2 = jnp.zeros((1, D), jnp.float32)
    w1 = jax.random.normal(ks[2], (D, 4 * D), jnp.float32) * s
    bw1 = jnp.zeros((1, 4 * D), jnp.float32)
    w2 = jax.random.normal(ks[3], (4 * D, D), jnp.float32) * s
    bw2 = jnp.zeros((1, D), jnp.float32)
    return (g1, b1, w_in, b_in, w_out, b_out, g2, b2, w1, bw1, w2, bw2)


def clip_layer_ref(x, params, n_heads):
    """Pure-JAX f32 reference mirroring the PyTorch forward exactly."""
    (g1, b1, w_in, b_in, w_out, b_out, g2, b2, w1, bw1, w2, bw2) = params
    B, S, D = x.shape
    dh = D // n_heads

    def ln(v, g, b):
        mu = jnp.mean(v, axis=-1, keepdims=True)
        var = jnp.mean((v - mu) ** 2, axis=-1, keepdims=True)
        return (v - mu) * jax.lax.rsqrt(var + 1e-5) * g + b

    res = x
    xn = ln(x, g1[0], b1[0])
    qkv = xn @ w_in + b_in[0]
    q, k, v = jnp.split(qkv, 3, axis=-1)
    q = q.reshape(B, S, n_heads, dh).transpose(0, 2, 1, 3)
    k = k.reshape(B, S, n_heads, dh).transpose(0, 2, 1, 3)
    v = v.reshape(B, S, n_heads, dh).transpose(0, 2, 1, 3)
    w = jnp.einsum("bhqd,bhkd->bhqk", q, k)
    mask = jnp.triu(jnp.ones((S, S), bool), k=1)
    w = jnp.where(mask, -jnp.inf, w) / math.sqrt(dh)
    w = jax.nn.softmax(w, axis=-1)
    o = jnp.einsum("bhqk,bhkd->bhqd", w, v).transpose(0, 2, 1, 3).reshape(B, S, D)
    o = o @ w_out + b_out[0]
    x = o + res

    res = x
    xn = ln(x, g2[0], b2[0])
    h = xn @ w1 + bw1[0]
    h = h * jax.nn.sigmoid(1.702 * h)
    h = h @ w2 + bw2[0]
    return h + res


if __name__ == "__main__":
    # Small but lane-friendly toy shapes: D multiple of 128, S multiple of 8.
    B, S, D, H = 4, 8, 128, 4
    key = jax.random.PRNGKey(0)
    kx, kp = jax.random.split(key)
    x = jax.random.normal(kx, (B, S, D), jnp.float32)
    params = init_params(kp, D)

    out = clip_layer(x, params, n_heads=H)
    out = jax.block_until_ready(out)

    ref = clip_layer_ref(x, params, n_heads=H)
    assert out.shape == (B, S, D)
    max_diff = float(jnp.max(jnp.abs(out - ref)))
    # bf16 matmul operands + approx reciprocal -> loosened tolerance vs f32 ref.
    assert jnp.allclose(out, ref, atol=1e-2, rtol=1e-2), f"max abs diff {max_diff}"
    print("KERNEL_OK")
</pallas_src>

<mosaic_0001>
module attributes {stable_mosaic.version = 11 : i64} {
  func.func @clip_layer_kernel(%arg0: i32, %arg1: memref<2x8x128xf32, #tpu.memory_space<vmem>>, %arg2: memref<1x128xf32, #tpu.memory_space<vmem>>, %arg3: memref<1x128xf32, #tpu.memory_space<vmem>>, %arg4: memref<128x384xbf16, #tpu.memory_space<vmem>>, %arg5: memref<1x384xf32, #tpu.memory_space<vmem>>, %arg6: memref<128x128xbf16, #tpu.memory_space<vmem>>, %arg7: memref<1x128xf32, #tpu.memory_space<vmem>>, %arg8: memref<1x128xf32, #tpu.memory_space<vmem>>, %arg9: memref<1x128xf32, #tpu.memory_space<vmem>>, %arg10: memref<128x512xbf16, #tpu.memory_space<vmem>>, %arg11: memref<1x512xf32, #tpu.memory_space<vmem>>, %arg12: memref<512x128xbf16, #tpu.memory_space<vmem>>, %arg13: memref<1x128xf32, #tpu.memory_space<vmem>>, %arg14: memref<2x8x128xf32, #tpu.memory_space<vmem>>) attributes {dimension_semantics = [#tpu.dimension_semantics<parallel>], iteration_bounds = array<i64: 2>, scalar_prefetch = 0 : i64, scratch_operands = 0 : i64, tpu.core_type = #tpu.core_type<tc>, window_params = [{transform_indices = @transform_0, window_bounds = array<i64: 2, 8, 128>}, {pipeline_mode = #tpu.pipeline_mode<synchronous>, transform_indices = @transform_1, window_bounds = array<i64: 1, 128>}, {pipeline_mode = #tpu.pipeline_mode<synchronous>, transform_indices = @transform_2, window_bounds = array<i64: 1, 128>}, {pipeline_mode = #tpu.pipeline_mode<synchronous>, transform_indices = @transform_3, window_bounds = array<i64: 128, 384>}, {pipeline_mode = #tpu.pipeline_mode<synchronous>, transform_indices = @transform_4, window_bounds = array<i64: 1, 384>}, {pipeline_mode = #tpu.pipeline_mode<synchronous>, transform_indices = @transform_5, window_bounds = array<i64: 128, 128>}, {pipeline_mode = #tpu.pipeline_mode<synchronous>, transform_indices = @transform_6, window_bounds = array<i64: 1, 128>}, {pipeline_mode = #tpu.pipeline_mode<synchronous>, transform_indices = @transform_7, window_bounds = array<i64: 1, 128>}, {pipeline_mode = #tpu.pipeline_mode<synchronous>, transform_indices = @transform_8, window_bounds = array<i64: 1, 128>}, {pipeline_mode = #tpu.pipeline_mode<synchronous>, transform_indices = @transform_9, window_bounds = array<i64: 128, 512>}, {pipeline_mode = #tpu.pipeline_mode<synchronous>, transform_indices = @transform_10, window_bounds = array<i64: 1, 512>}, {pipeline_mode = #tpu.pipeline_mode<synchronous>, transform_indices = @transform_11, window_bounds = array<i64: 512, 128>}, {pipeline_mode = #tpu.pipeline_mode<synchronous>, transform_indices = @transform_12, window_bounds = array<i64: 1, 128>}, {transform_indices = @transform_13, window_bounds = array<i64: 2, 8, 128>}]} {
    %c0 = arith.constant 0 : index
    %c0_0 = arith.constant 0 : index
    %c0_1 = arith.constant 0 : index
    %0 = vector.load %arg1[%c0, %c0_0, %c0_1] : memref<2x8x128xf32, #tpu.memory_space<vmem>>, vector<2x8x128xf32>
    %1 = vector.shape_cast %0 : vector<2x8x128xf32> to vector<16x128xf32>
    %cst = arith.constant dense<0.000000e+00> : vector<16xf32>
    %2 = vector.multi_reduction <add>, %1, %cst [1] : vector<16x128xf32> to vector<16xf32>
    %3 = vector.shape_cast %2 : vector<16xf32> to vector<16x1xf32>
    %cst_2 = arith.constant 1.280000e+02 : f32
    %4 = vector.broadcast %cst_2 : f32 to vector<16x1xf32>
    %5 = arith.divf %3, %4 : vector<16x1xf32>
    %6 = arith.mulf %1, %1 : vector<16x128xf32>
    %cst_3 = arith.constant dense<0.000000e+00> : vector<16xf32>
    %7 = vector.multi_reduction <add>, %6, %cst_3 [1] : vector<16x128xf32> to vector<16xf32>
    %8 = vector.shape_cast %7 : vector<16xf32> to vector<16x1xf32>
    %cst_4 = arith.constant 1.280000e+02 : f32
    %9 = vector.broadcast %cst_4 : f32 to vector<16x1xf32>
    %10 = arith.divf %8, %9 : vector<16x1xf32>
    %11 = arith.mulf %5, %5 : vector<16x1xf32>
    %12 = arith.subf %10, %11 : vector<16x1xf32>
    %cst_5 = arith.constant 9.99999974E-6 : f32
    %13 = vector.broadcast %cst_5 : f32 to vector<16x1xf32>
    %14 = arith.addf %12, %13 : vector<16x1xf32>
    %15 = math.rsqrt %14 : vector<16x1xf32>
    %16 = vector.broadcast %5 : vector<16x1xf32> to vector<16x128xf32>
    %17 = arith.subf %1, %16 : vector<16x128xf32>
    %18 = vector.broadcast %15 : vector<16x1xf32> to vector<16x128xf32>
    %19 = arith.mulf %17, %18 : vector<16x128xf32>
    %c0_6 = arith.constant 0 : index
    %c0_7 = arith.constant 0 : index
    %20 = vector.load %arg2[%c0_6, %c0_7] : memref<1x128xf32, #tpu.memory_space<vmem>>, vector<1x128xf32>
    %21 = vector.shape_cast %20 : vector<1x128xf32> to vector<128xf32>
    %22 = vector.shape_cast %21 : vector<128xf32> to vector<1x128xf32>
    %23 = vector.broadcast %22 : vector<1x128xf32> to vector<16x128xf32>
    %24 = arith.mulf %19, %23 : vector<16x128xf32>
    %c0_8 = arith.constant 0 : index
    %c0_9 = arith.constant 0 : index
    %25 = vector.load %arg3[%c0_8, %c0_9] : memref<1x128xf32, #tpu.memory_space<vmem>>, vector<1x128xf32>
    %26 = vector.shape_cast %25 : vector<1x128xf32> to vector<128xf32>
    %27 = vector.shape_cast %26 : vector<128xf32> to vector<1x128xf32>
    %28 = vector.broadcast %27 : vector<1x128xf32> to vector<16x128xf32>
    %29 = arith.addf %24, %28 : vector<16x128xf32>
    %30 = arith.truncf %29 : vector<16x128xf32> to vector<16x128xbf16>
    %c0_10 = arith.constant 0 : index
    %c0_11 = arith.constant 0 : index
    %31 = vector.load %arg4[%c0_10, %c0_11] : memref<128x384xbf16, #tpu.memory_space<vmem>>, vector<128x384xbf16>
    %cst_12 = arith.constant dense<0.000000e+00> : vector<16x384xf32>
    %32 = tpu.matmul %30, %31, %cst_12 {dimension_numbers = #tpu.dot_dimension_numbers<[1], [0], [0], [1], [0, 0, 1, 1], [], []>} : vector<16x128xbf16>, vector<128x384xbf16>, vector<16x384xf32> -> vector<16x384xf32>
    %c0_13 = arith.constant 0 : index
    %c0_14 = arith.constant 0 : index
    %33 = vector.load %arg5[%c0_13, %c0_14] : memref<1x384xf32, #tpu.memory_space<vmem>>, vector<1x384xf32>
    %34 = vector.shape_cast %33 : vector<1x384xf32> to vector<384xf32>
    %35 = vector.shape_cast %34 : vector<384xf32> to vector<1x384xf32>
    %36 = vector.broadcast %35 : vector<1x384xf32> to vector<16x384xf32>
    %37 = arith.addf %32, %36 : vector<16x384xf32>
    %38 = vector.extract_strided_slice %37 {offsets = [0, 0], sizes = [16, 128], strides = [1, 1]} : vector<16x384xf32> to vector<16x128xf32>
    %39 = vector.shape_cast %38 : vector<16x128xf32> to vector<16x4x32xf32>
    %40 = tpu.transpose %39, [1, 0, 2] : vector<16x4x32xf32> -> vector<4x16x32xf32>
    %41 = vector.shape_cast %40 : vector<4x16x32xf32> to vector<8x8x32xf32>
    %42 = arith.truncf %41 : vector<8x8x32xf32> to vector<8x8x32xbf16>
    %43 = vector.extract_strided_slice %37 {offsets = [0, 128], sizes = [16, 128], strides = [1, 1]} : vector<16x384xf32> to vector<16x128xf32>
    %44 = vector.shape_cast %43 : vector<16x128xf32> to vector<16x4x32xf32>
    %45 = tpu.transpose %44, [1, 0, 2] : vector<16x4x32xf32> -> vector<4x16x32xf32>
    %46 = vector.shape_cast %45 : vector<4x16x32xf32> to vector<8x8x32xf32>
    %47 = arith.truncf %46 : vector<8x8x32xf32> to vector<8x8x32xbf16>
    %48 = vector.extract_strided_slice %37 {offsets = [0, 256], sizes = [16, 128], strides = [1, 1]} : vector<16x384xf32> to vector<16x128xf32>
    %49 = vector.shape_cast %48 : vector<16x128xf32> to vector<16x4x32xf32>
    %50 = tpu.transpose %49, [1, 0, 2] : vector<16x4x32xf32> -> vector<4x16x32xf32>
    %51 = vector.shape_cast %50 : vector<4x16x32xf32> to vector<8x8x32xf32>
    %52 = arith.truncf %51 : vector<8x8x32xf32> to vector<8x8x32xbf16>
    "tpu.trace_start"() <{level = 10 : i32, message = "bqd,bkd->bqk"}> : () -> ()
    %cst_15 = arith.constant dense<0.000000e+00> : vector<8x8x8xf32>
    %53 = tpu.matmul %42, %47, %cst_15 {dimension_numbers = #tpu.dot_dimension_numbers<[2], [2], [1], [1], [0, 0, 0, 1, 1, 1], [0], [0]>} : vector<8x8x32xbf16>, vector<8x8x32xbf16>, vector<8x8x8xf32> -> vector<8x8x8xf32>
    "tpu.trace_stop"() : () -> ()
    %54 = tpu.iota {dimensions = array<i32: 0>} : vector<8x8xi32>
    %55 = tpu.iota {dimensions = array<i32: 1>} : vector<8x8xi32>
    %56 = arith.cmpi sgt, %55, %54 : vector<8x8xi32>
    %57 = vector.shape_cast %56 : vector<8x8xi1> to vector<1x8x8xi1>
    %cst_16 = arith.constant 0xFF800000 : f32
    %58 = vector.shape_cast %57 : vector<1x8x8xi1> to vector<1x8x8xi1>
    %59 = vector.broadcast %58 : vector<1x8x8xi1> to vector<8x8x8xi1>
    %60 = vector.broadcast %cst_16 : f32 to vector<8x8x8xf32>
    %61 = arith.select %59, %60, %53 : vector<8x8x8xi1>, vector<8x8x8xf32>
    %cst_17 = arith.constant dense<0xFF800000> : vector<8x8xf32>
    %62 = vector.multi_reduction <maximumf>, %61, %cst_17 [2] : vector<8x8x8xf32> to vector<8x8xf32>
    %63 = vector.shape_cast %62 : vector<8x8xf32> to vector<8x8x1xf32>
    %64 = vector.broadcast %63 : vector<8x8x1xf32> to vector<8x8x8xf32>
    %65 = arith.subf %61, %64 : vector<8x8x8xf32>
    %66 = math.exp %65 : vector<8x8x8xf32>
    %cst_18 = arith.constant dense<0.000000e+00> : vector<8x8xf32>
    %67 = vector.multi_reduction <add>, %66, %cst_18 [2] : vector<8x8x8xf32> to vector<8x8xf32>
    %68 = vector.shape_cast %67 : vector<8x8xf32> to vector<8x8x1xf32>
    %69 = tpu.reciprocal %68 {approx = true} : vector<8x8x1xf32> -> vector<8x8x1xf32>
    %70 = vector.broadcast %69 : vector<8x8x1xf32> to vector<8x8x8xf32>
    %71 = arith.mulf %66, %70 : vector<8x8x8xf32>
    %72 = arith.truncf %71 : vector<8x8x8xf32> to vector<8x8x8xbf16>
    "tpu.trace_start"() <{level = 10 : i32, message = "bqk,bkd->bqd"}> : () -> ()
    %cst_19 = arith.constant dense<0.000000e+00> : vector<8x8x32xf32>
    %73 = tpu.matmul %72, %52, %cst_19 {dimension_numbers = #tpu.dot_dimension_numbers<[2], [1], [1], [2], [0, 0, 0, 1, 1, 2], [0], [0]>} : vector<8x8x8xbf16>, vector<8x8x32xbf16>, vector<8x8x32xf32> -> vector<8x8x32xf32>
    "tpu.trace_stop"() : () -> ()
    %74 = vector.shape_cast %73 : vector<8x8x32xf32> to vector<4x16x32xf32>
    %75 = tpu.transpose %74, [1, 0, 2] : vector<4x16x32xf32> -> vector<16x4x32xf32>
    %76 = vector.shape_cast %75 : vector<16x4x32xf32> to vector<16x128xf32>
    %77 = arith.truncf %76 : vector<16x128xf32> to vector<16x128xbf16>
    %c0_20 = arith.constant 0 : index
    %c0_21 = arith.constant 0 : index
    %78 = vector.load %arg6[%c0_20, %c0_21] : memref<128x128xbf16, #tpu.memory_space<vmem>>, vector<128x128xbf16>
    %cst_22 = arith.constant dense<0.000000e+00> : vector<16x128xf32>
    %79 = tpu.matmul %77, %78, %cst_22 {dimension_numbers = #tpu.dot_dimension_numbers<[1], [0], [0], [1], [0, 0, 1, 1], [], []>} : vector<16x128xbf16>, vector<128x128xbf16>, vector<16x128xf32> -> vector<16x128xf32>
    %c0_23 = arith.constant 0 : index
    %c0_24 = arith.constant 0 : index
    %80 = vector.load %arg7[%c0_23, %c0_24] : memref<1x128xf32, #tpu.memory_space<vmem>>, vector<1x128xf32>
    %81 = vector.shape_cast %80 : vector<1x128xf32> to vector<128xf32>
    %82 = vector.shape_cast %81 : vector<128xf32> to vector<1x128xf32>
    %83 = vector.broadcast %82 : vector<1x128xf32> to vector<16x128xf32>
    %84 = arith.addf %79, %83 : vector<16x128xf32>
    %85 = arith.addf %84, %1 : vector<16x128xf32>
    %cst_25 = arith.constant dense<0.000000e+00> : vector<16xf32>
    %86 = vector.multi_reduction <add>, %85, %cst_25 [1] : vector<16x128xf32> to vector<16xf32>
    %87 = vector.shape_cast %86 : vector<16xf32> to vector<16x1xf32>
    %cst_26 = arith.constant 1.280000e+02 : f32
    %88 = vector.broadcast %cst_26 : f32 to vector<16x1xf32>
    %89 = arith.divf %87, %88 : vector<16x1xf32>
    %90 = arith.mulf %85, %85 : vector<16x128xf32>
    %cst_27 = arith.constant dense<0.000000e+00> : vector<16xf32>
    %91 = vector.multi_reduction <add>, %90, %cst_27 [1] : vector<16x128xf32> to vector<16xf32>
    %92 = vector.shape_cast %91 : vector<16xf32> to vector<16x1xf32>
    %cst_28 = arith.constant 1.280000e+02 : f32
    %93 = vector.broadcast %cst_28 : f32 to vector<16x1xf32>
    %94 = arith.divf %92, %93 : vector<16x1xf32>
    %95 = arith.mulf %89, %89 : vector<16x1xf32>
    %96 = arith.subf %94, %95 : vector<16x1xf32>
    %cst_29 = arith.constant 9.99999974E-6 : f32
    %97 = vector.broadcast %cst_29 : f32 to vector<16x1xf32>
    %98 = arith.addf %96, %97 : vector<16x1xf32>
    %99 = math.rsqrt %98 : vector<16x1xf32>
    %100 = vector.broadcast %89 : vector<16x1xf32> to vector<16x128xf32>
    %101 = arith.subf %85, %100 : vector<16x128xf32>
    %102 = vector.broadcast %99 : vector<16x1xf32> to vector<16x128xf32>
    %103 = arith.mulf %101, %102 : vector<16x128xf32>
    %c0_30 = arith.constant 0 : index
    %c0_31 = arith.constant 0 : index
    %104 = vector.load %arg8[%c0_30, %c0_31] : memref<1x128xf32, #tpu.memory_space<vmem>>, vector<1x128xf32>
    %105 = vector.shape_cast %104 : vector<1x128xf32> to vector<128xf32>
    %106 = vector.shape_cast %105 : vector<128xf32> to vector<1x128xf32>
    %107 = vector.broadcast %106 : vector<1x128xf32> to vector<16x128xf32>
    %108 = arith.mulf %103, %107 : vector<16x128xf32>
    %c0_32 = arith.constant 0 : index
    %c0_33 = arith.constant 0 : index
    %109 = vector.load %arg9[%c0_32, %c0_33] : memref<1x128xf32, #tpu.memory_space<vmem>>, vector<1x128xf32>
    %110 = vector.shape_cast %109 : vector<1x128xf32> to vector<128xf32>
    %111 = vector.shape_cast %110 : vector<128xf32> to vector<1x128xf32>
    %112 = vector.broadcast %111 : vector<1x128xf32> to vector<16x128xf32>
    %113 = arith.addf %108, %112 : vector<16x128xf32>
    %114 = arith.truncf %113 : vector<16x128xf32> to vector<16x128xbf16>
    %c0_34 = arith.constant 0 : index
    %c0_35 = arith.constant 0 : index
    %115 = vector.load %arg10[%c0_34, %c0_35] : memref<128x512xbf16, #tpu.memory_space<vmem>>, vector<128x512xbf16>
    %cst_36 = arith.constant dense<0.000000e+00> : vector<16x512xf32>
    %116 = tpu.matmul %114, %115, %cst_36 {dimension_numbers = #tpu.dot_dimension_numbers<[1], [0], [0], [1], [0, 0, 1, 1], [], []>} : vector<16x128xbf16>, vector<128x512xbf16>, vector<16x512xf32> -> vector<16x512xf32>
    %c0_37 = arith.constant 0 : index
    %c0_38 = arith.constant 0 : index
    %117 = vector.load %arg11[%c0_37, %c0_38] : memref<1x512xf32, #tpu.memory_space<vmem>>, vector<1x512xf32>
    %118 = vector.shape_cast %117 : vector<1x512xf32> to vector<512xf32>
    %119 = vector.shape_cast %118 : vector<512xf32> to vector<1x512xf32>
    %120 = vector.broadcast %119 : vector<1x512xf32> to vector<16x512xf32>
    %121 = arith.addf %116, %120 : vector<16x512xf32>
    %cst_39 = arith.constant 1.702000e+00 : f32
    %122 = vector.broadcast %cst_39 : f32 to vector<16x512xf32>
    %123 = arith.mulf %122, %121 : vector<16x512xf32>
    %124 = arith.negf %123 : vector<16x512xf32>
    %125 = math.exp %124 : vector<16x512xf32>
    %cst_40 = arith.constant 1.000000e+00 : f32
    %126 = vector.broadcast %cst_40 : f32 to vector<16x512xf32>
    %127 = arith.addf %126, %125 : vector<16x512xf32>
    %128 = arith.divf %126, %127 : vector<16x512xf32>
    %129 = arith.truncf %121 : vector<16x512xf32> to vector<16x512xbf16>
    %130 = arith.truncf %128 : vector<16x512xf32> to vector<16x512xbf16>
    %131 = arith.mulf %129, %130 : vector<16x512xbf16>
    %c0_41 = arith.constant 0 : index
    %c0_42 = arith.constant 0 : index
    %132 = vector.load %arg12[%c0_41, %c0_42] : memref<512x128xbf16, #tpu.memory_space<vmem>>, vector<512x128xbf16>
    %cst_43 = arith.constant dense<0.000000e+00> : vector<16x128xf32>
    %133 = tpu.matmul %131, %132, %cst_43 {dimension_numbers = #tpu.dot_dimension_numbers<[1], [0], [0], [1], [0, 0, 1, 1], [], []>} : vector<16x512xbf16>, vector<512x128xbf16>, vector<16x128xf32> -> vector<16x128xf32>
    %c0_44 = arith.constant 0 : index
    %c0_45 = arith.constant 0 : index
    %134 = vector.load %arg13[%c0_44, %c0_45] : memref<1x128xf32, #tpu.memory_space<vmem>>, vector<1x128xf32>
    %135 = vector.shape_cast %134 : vector<1x128xf32> to vector<128xf32>
    %136 = vector.shape_cast %135 : vector<128xf32> to vector<1x128xf32>
    %137 = vector.broadcast %136 : vector<1x128xf32> to vector<16x128xf32>
    %138 = arith.addf %133, %137 : vector<16x128xf32>
    %139 = arith.addf %138, %85 : vector<16x128xf32>
    %140 = vector.shape_cast %139 : vector<16x128xf32> to vector<2x8x128xf32>
    %c0_46 = arith.constant 0 : index
    %c0_47 = arith.constant 0 : index
    %c0_48 = arith.constant 0 : index
    %141 = vector.load %arg14[%c0_46, %c0_47, %c0_48] : memref<2x8x128xf32, #tpu.memory_space<vmem>>, vector<2x8x128xf32>
    tpu.vector_store %arg14[%c0_46, %c0_47, %c0_48], %140 {strides = array<i32>} : memref<2x8x128xf32, #tpu.memory_space<vmem>>, vector<2x8x128xf32>,
    return
  }
  func.func @transform_0(%arg0: i32) -> (i32, i32, i32) {
    %c0_i32 = arith.constant 0 : i32
    %c0_i32_0 = arith.constant 0 : i32
    %c0_i32_1 = arith.constant 0 : i32
    return %arg0, %c0_i32, %c0_i32_0 : i32, i32, i32
  }
  func.func @transform_1(%arg0: i32) -> (i32, i32) {
    %c0_i32 = arith.constant 0 : i32
    %c0_i32_0 = arith.constant 0 : i32
    %c0_i32_1 = arith.constant 0 : i32
    return %c0_i32, %c0_i32_0 : i32, i32
  }
  func.func @transform_2(%arg0: i32) -> (i32, i32) {
    %c0_i32 = arith.constant 0 : i32
    %c0_i32_0 = arith.constant 0 : i32
    %c0_i32_1 = arith.constant 0 : i32
    return %c0_i32, %c0_i32_0 : i32, i32
  }
  func.func @transform_3(%arg0: i32) -> (i32, i32) {
    %c0_i32 = arith.constant 0 : i32
    %c0_i32_0 = arith.constant 0 : i32
    %c0_i32_1 = arith.constant 0 : i32
    return %c0_i32, %c0_i32_0 : i32, i32
  }
  func.func @transform_4(%arg0: i32) -> (i32, i32) {
    %c0_i32 = arith.constant 0 : i32
    %c0_i32_0 = arith.constant 0 : i32
    %c0_i32_1 = arith.constant 0 : i32
    return %c0_i32, %c0_i32_0 : i32, i32
  }
  func.func @transform_5(%arg0: i32) -> (i32, i32) {
    %c0_i32 = arith.constant 0 : i32
    %c0_i32_0 = arith.constant 0 : i32
    %c0_i32_1 = arith.constant 0 : i32
    return %c0_i32, %c0_i32_0 : i32, i32
  }
  func.func @transform_6(%arg0: i32) -> (i32, i32) {
    %c0_i32 = arith.constant 0 : i32
    %c0_i32_0 = arith.constant 0 : i32
    %c0_i32_1 = arith.constant 0 : i32
    return %c0_i32, %c0_i32_0 : i32, i32
  }
  func.func @transform_7(%arg0: i32) -> (i32, i32) {
    %c0_i32 = arith.constant 0 : i32
    %c0_i32_0 = arith.constant 0 : i32
    %c0_i32_1 = arith.constant 0 : i32
    return %c0_i32, %c0_i32_0 : i32, i32
  }
  func.func @transform_8(%arg0: i32) -> (i32, i32) {
    %c0_i32 = arith.constant 0 : i32
    %c0_i32_0 = arith.constant 0 : i32
    %c0_i32_1 = arith.constant 0 : i32
    return %c0_i32, %c0_i32_0 : i32, i32
  }
  func.func @transform_9(%arg0: i32) -> (i32, i32) {
    %c0_i32 = arith.constant 0 : i32
    %c0_i32_0 = arith.constant 0 : i32
    %c0_i32_1 = arith.constant 0 : i32
    return %c0_i32, %c0_i32_0 : i32, i32
  }
  func.func @transform_10(%arg0: i32) -> (i32, i32) {
    %c0_i32 = arith.constant 0 : i32
    %c0_i32_0 = arith.constant 0 : i32
    %c0_i32_1 = arith.constant 0 : i32
    return %c0_i32, %c0_i32_0 : i32, i32
  }
  func.func @transform_11(%arg0: i32) -> (i32, i32) {
    %c0_i32 = arith.constant 0 : i32
    %c0_i32_0 = arith.constant 0 : i32
    %c0_i32_1 = arith.constant 0 : i32
    return %c0_i32, %c0_i32_0 : i32, i32
  }
  func.func @transform_12(%arg0: i32) -> (i32, i32) {
    %c0_i32 = arith.constant 0 : i32
    %c0_i32_0 = arith.constant 0 : i32
    %c0_i32_1 = arith.constant 0 : i32
    return %c0_i32, %c0_i32_0 : i32, i32
  }
  func.func @transform_13(%arg0: i32) -> (i32, i32, i32) {
    %c0_i32 = arith.constant 0 : i32
    %c0_i32_0 = arith.constant 0 : i32
    %c0_i32_1 = arith.constant 0 : i32
    return %arg0, %c0_i32, %c0_i32_0 : i32, i32, i32
  }
}

module attributes {stable_mosaic.version = 11 : i64} {
  func.func @clip_layer_kernel(%arg0: i32, %arg1: memref<2x8x128xf32, #tpu.memory_space<vmem>>, %arg2: memref<1x128xf32, #tpu.memory_space<vmem>>, %arg3: memref<1x128xf32, #tpu.memory_space<vmem>>, %arg4: memref<128x384xbf16, #tpu.memory_space<vmem>>, %arg5: memref<1x384xf32, #tpu.memory_space<vmem>>, %arg6: memref<128x128xbf16, #tpu.memory_space<vmem>>, %arg7: memref<1x128xf32, #tpu.memory_space<vmem>>, %arg8: memref<1x128xf32, #tpu.memory_space<vmem>>, %arg9: memref<1x128xf32, #tpu.memory_space<vmem>>, %arg10: memref<128x512xbf16, #tpu.memory_space<vmem>>, %arg11: memref<1x512xf32, #tpu.memory_space<vmem>>, %arg12: memref<512x128xbf16, #tpu.memory_space<vmem>>, %arg13: memref<1x128xf32, #tpu.memory_space<vmem>>, %arg14: memref<2x8x128xf32, #tpu.memory_space<vmem>>) attributes {dimension_semantics = [#tpu.dimension_semantics<parallel>], iteration_bounds = array<i64: 2>, scalar_prefetch = 0 : i64, scratch_operands = 0 : i64, tpu.core_type = #tpu.core_type<tc>, window_params = [{transform_indices = @transform_0, window_bounds = array<i64: 2, 8, 128>}, {pipeline_mode = #tpu.pipeline_mode<synchronous>, transform_indices = @transform_1, window_bounds = array<i64: 1, 128>}, {pipeline_mode = #tpu.pipeline_mode<synchronous>, transform_indices = @transform_2, window_bounds = array<i64: 1, 128>}, {pipeline_mode = #tpu.pipeline_mode<synchronous>, transform_indices = @transform_3, window_bounds = array<i64: 128, 384>}, {pipeline_mode = #tpu.pipeline_mode<synchronous>, transform_indices = @transform_4, window_bounds = array<i64: 1, 384>}, {pipeline_mode = #tpu.pipeline_mode<synchronous>, transform_indices = @transform_5, window_bounds = array<i64: 128, 128>}, {pipeline_mode = #tpu.pipeline_mode<synchronous>, transform_indices = @transform_6, window_bounds = array<i64: 1, 128>}, {pipeline_mode = #tpu.pipeline_mode<synchronous>, transform_indices = @transform_7, window_bounds = array<i64: 1, 128>}, {pipeline_mode = #tpu.pipeline_mode<synchronous>, transform_indices = @transform_8, window_bounds = array<i64: 1, 128>}, {pipeline_mode = #tpu.pipeline_mode<synchronous>, transform_indices = @transform_9, window_bounds = array<i64: 128, 512>}, {pipeline_mode = #tpu.pipeline_mode<synchronous>, transform_indices = @transform_10, window_bounds = array<i64: 1, 512>}, {pipeline_mode = #tpu.pipeline_mode<synchronous>, transform_indices = @transform_11, window_bounds = array<i64: 512, 128>}, {pipeline_mode = #tpu.pipeline_mode<synchronous>, transform_indices = @transform_12, window_bounds = array<i64: 1, 128>}, {transform_indices = @transform_13, window_bounds = array<i64: 2, 8, 128>}]} {
    %c0 = arith.constant 0 : index
    %c0_0 = arith.constant 0 : index
    %c0_1 = arith.constant 0 : index
    %0 = vector.load %arg1[%c0, %c0_0, %c0_1] : memref<2x8x128xf32, #tpu.memory_space<vmem>>, vector<2x8x128xf32>
    %1 = vector.shape_cast %0 : vector<2x8x128xf32> to vector<16x128xf32>
    %cst = arith.constant dense<0.000000e+00> : vector<16xf32>
    %2 = vector.multi_reduction <add>, %1, %cst [1] : vector<16x128xf32> to vector<16xf32>
    %3 = vector.shape_cast %2 : vector<16xf32> to vector<16x1xf32>
    %cst_2 = arith.constant 1.280000e+02 : f32
    %4 = vector.broadcast %cst_2 : f32 to vector<16x1xf32>
    %5 = arith.divf %3, %4 : vector<16x1xf32>
    %6 = arith.mulf %1, %1 : vector<16x128xf32>
    %cst_3 = arith.constant dense<0.000000e+00> : vector<16xf32>
    %7 = vector.multi_reduction <add>, %6, %cst_3 [1] : vector<16x128xf32> to vector<16xf32>
    %8 = vector.shape_cast %7 : vector<16xf32> to vector<16x1xf32>
    %cst_4 = arith.constant 1.280000e+02 : f32
    %9 = vector.broadcast %cst_4 : f32 to vector<16x1xf32>
    %10 = arith.divf %8, %9 : vector<16x1xf32>
    %11 = arith.mulf %5, %5 : vector<16x1xf32>
    %12 = arith.subf %10, %11 : vector<16x1xf32>
    %cst_5 = arith.constant 9.99999974E-6 : f32
    %13 = vector.broadcast %cst_5 : f32 to vector<16x1xf32>
    %14 = arith.addf %12, %13 : vector<16x1xf32>
    %15 = math.rsqrt %14 : vector<16x1xf32>
    %16 = vector.broadcast %5 : vector<16x1xf32> to vector<16x128xf32>
    %17 = arith.subf %1, %16 : vector<16x128xf32>
    %18 = vector.broadcast %15 : vector<16x1xf32> to vector<16x128xf32>
    %19 = arith.mulf %17, %18 : vector<16x128xf32>
    %c0_6 = arith.constant 0 : index
    %c0_7 = arith.constant 0 : index
    %20 = vector.load %arg2[%c0_6, %c0_7] : memref<1x128xf32, #tpu.memory_space<vmem>>, vector<1x128xf32>
    %21 = vector.shape_cast %20 : vector<1x128xf32> to vector<128xf32>
    %22 = vector.shape_cast %21 : vector<128xf32> to vector<1x128xf32>
    %23 = vector.broadcast %22 : vector<1x128xf32> to vector<16x128xf32>
    %24 = arith.mulf %19, %23 : vector<16x128xf32>
    %c0_8 = arith.constant 0 : index
    %c0_9 = arith.constant 0 : index
    %25 = vector.load %arg3[%c0_8, %c0_9] : memref<1x128xf32, #tpu.memory_space<vmem>>, vector<1x128xf32>
    %26 = vector.shape_cast %25 : vector<1x128xf32> to vector<128xf32>
    %27 = vector.shape_cast %26 : vector<128xf32> to vector<1x128xf32>
    %28 = vector.broadcast %27 : vector<1x128xf32> to vector<16x128xf32>
    %29 = arith.addf %24, %28 : vector<16x128xf32>
    %30 = arith.truncf %29 : vector<16x128xf32> to vector<16x128xbf16>
    %c0_10 = arith.constant 0 : index
    %c0_11 = arith.constant 0 : index
    %31 = vector.load %arg4[%c0_10, %c0_11] : memref<128x384xbf16, #tpu.memory_space<vmem>>, vector<128x384xbf16>
    %cst_12 = arith.constant dense<0.000000e+00> : vector<16x384xf32>
    %32 = tpu.matmul %30, %31, %cst_12 {dimension_numbers = #tpu.dot_dimension_numbers<[1], [0], [0], [1], [0, 0, 1, 1], [], []>} : vector<16x128xbf16>, vector<128x384xbf16>, vector<16x384xf32> -> vector<16x384xf32>
    %c0_13 = arith.constant 0 : index
    %c0_14 = arith.constant 0 : index
    %33 = vector.load %arg5[%c0_13, %c0_14] : memref<1x384xf32, #tpu.memory_space<vmem>>, vector<1x384xf32>
    %34 = vector.shape_cast %33 : vector<1x384xf32> to vector<384xf32>
    %35 = vector.shape_cast %34 : vector<384xf32> to vector<1x384xf32>
    %36 = vector.broadcast %35 : vector<1x384xf32> to vector<16x384xf32>
    %37 = arith.addf %32, %36 : vector<16x384xf32>
    %38 = vector.extract_strided_slice %37 {offsets = [0, 0], sizes = [16, 128], strides = [1, 1]} : vector<16x384xf32> to vector<16x128xf32>
    %39 = vector.shape_cast %38 : vector<16x128xf32> to vector<16x4x32xf32>
    %40 = tpu.transpose %39, [1, 0, 2] : vector<16x4x32xf32> -> vector<4x16x32xf32>
    %41 = vector.shape_cast %40 : vector<4x16x32xf32> to vector<8x8x32xf32>
    %42 = arith.truncf %41 : vector<8x8x32xf32> to vector<8x8x32xbf16>
    %43 = vector.extract_strided_slice %37 {offsets = [0, 128], sizes = [16, 128], strides = [1, 1]} : vector<16x384xf32> to vector<16x128xf32>
    %44 = vector.shape_cast %43 : vector<16x128xf32> to vector<16x4x32xf32>
    %45 = tpu.transpose %44, [1, 0, 2] : vector<16x4x32xf32> -> vector<4x16x32xf32>
    %46 = vector.shape_cast %45 : vector<4x16x32xf32> to vector<8x8x32xf32>
    %47 = arith.truncf %46 : vector<8x8x32xf32> to vector<8x8x32xbf16>
    %48 = vector.extract_strided_slice %37 {offsets = [0, 256], sizes = [16, 128], strides = [1, 1]} : vector<16x384xf32> to vector<16x128xf32>
    %49 = vector.shape_cast %48 : vector<16x128xf32> to vector<16x4x32xf32>
    %50 = tpu.transpose %49, [1, 0, 2] : vector<16x4x32xf32> -> vector<4x16x32xf32>
    %51 = vector.shape_cast %50 : vector<4x16x32xf32> to vector<8x8x32xf32>
    %52 = arith.truncf %51 : vector<8x8x32xf32> to vector<8x8x32xbf16>
    "tpu.trace_start"() <{level = 10 : i32, message = "bqd,bkd->bqk"}> : () -> ()
    %cst_15 = arith.constant dense<0.000000e+00> : vector<8x8x8xf32>
    %53 = tpu.matmul %42, %47, %cst_15 {dimension_numbers = #tpu.dot_dimension_numbers<[2], [2], [1], [1], [0, 0, 0, 1, 1, 1], [0], [0]>} : vector<8x8x32xbf16>, vector<8x8x32xbf16>, vector<8x8x8xf32> -> vector<8x8x8xf32>
    "tpu.trace_stop"() : () -> ()
    %54 = tpu.iota {dimensions = array<i32: 0>} : vector<8x8xi32>
    %55 = tpu.iota {dimensions = array<i32: 1>} : vector<8x8xi32>
    %56 = arith.cmpi sgt, %55, %54 : vector<8x8xi32>
    %57 = vector.shape_cast %56 : vector<8x8xi1> to vector<1x8x8xi1>
    %cst_16 = arith.constant 0xFF800000 : f32
    %58 = vector.shape_cast %57 : vector<1x8x8xi1> to vector<1x8x8xi1>
    %59 = vector.broadcast %58 : vector<1x8x8xi1> to vector<8x8x8xi1>
    %60 = vector.broadcast %cst_16 : f32 to vector<8x8x8xf32>
    %61 = arith.select %59, %60, %53 : vector<8x8x8xi1>, vector<8x8x8xf32>
    %cst_17 = arith.constant dense<0xFF800000> : vector<8x8xf32>
    %62 = vector.multi_reduction <maximumf>, %61, %cst_17 [2] : vector<8x8x8xf32> to vector<8x8xf32>
    %63 = vector.shape_cast %62 : vector<8x8xf32> to vector<8x8x1xf32>
    %64 = vector.broadcast %63 : vector<8x8x1xf32> to vector<8x8x8xf32>
    %65 = arith.subf %61, %64 : vector<8x8x8xf32>
    %66 = math.exp %65 : vector<8x8x8xf32>
    %cst_18 = arith.constant dense<0.000000e+00> : vector<8x8xf32>
    %67 = vector.multi_reduction <add>, %66, %cst_18 [2] : vector<8x8x8xf32> to vector<8x8xf32>
    %68 = vector.shape_cast %67 : vector<8x8xf32> to vector<8x8x1xf32>
    %69 = tpu.reciprocal %68 {approx = true} : vector<8x8x1xf32> -> vector<8x8x1xf32>
    %70 = vector.broadcast %69 : vector<8x8x1xf32> to vector<8x8x8xf32>
    %71 = arith.mulf %66, %70 : vector<8x8x8xf32>
    %72 = arith.truncf %71 : vector<8x8x8xf32> to vector<8x8x8xbf16>
    "tpu.trace_start"() <{level = 10 : i32, message = "bqk,bkd->bqd"}> : () -> ()
    %cst_19 = arith.constant dense<0.000000e+00> : vector<8x8x32xf32>
    %73 = tpu.matmul %72, %52, %cst_19 {dimension_numbers = #tpu.dot_dimension_numbers<[2], [1], [1], [2], [0, 0, 0, 1, 1, 2], [0], [0]>} : vector<8x8x8xbf16>, vector<8x8x32xbf16>, vector<8x8x32xf32> -> vector<8x8x32xf32>
    "tpu.trace_stop"() : () -> ()
    %74 = vector.shape_cast %73 : vector<8x8x32xf32> to vector<4x16x32xf32>
    %75 = tpu.transpose %74, [1, 0, 2] : vector<4x16x32xf32> -> vector<16x4x32xf32>
    %76 = vector.shape_cast %75 : vector<16x4x32xf32> to vector<16x128xf32>
    %77 = arith.truncf %76 : vector<16x128xf32> to vector<16x128xbf16>
    %c0_20 = arith.constant 0 : index
    %c0_21 = arith.constant 0 : index
    %78 = vector.load %arg6[%c0_20, %c0_21] : memref<128x128xbf16, #tpu.memory_space<vmem>>, vector<128x128xbf16>
    %cst_22 = arith.constant dense<0.000000e+00> : vector<16x128xf32>
    %79 = tpu.matmul %77, %78, %cst_22 {dimension_numbers = #tpu.dot_dimension_numbers<[1], [0], [0], [1], [0, 0, 1, 1], [], []>} : vector<16x128xbf16>, vector<128x128xbf16>, vector<16x128xf32> -> vector<16x128xf32>
    %c0_23 = arith.constant 0 : index
    %c0_24 = arith.constant 0 : index
    %80 = vector.load %arg7[%c0_23, %c0_24] : memref<1x128xf32, #tpu.memory_space<vmem>>, vector<1x128xf32>
    %81 = vector.shape_cast %80 : vector<1x128xf32> to vector<128xf32>
    %82 = vector.shape_cast %81 : vector<128xf32> to vector<1x128xf32>
    %83 = vector.broadcast %82 : vector<1x128xf32> to vector<16x128xf32>
    %84 = arith.addf %79, %83 : vector<16x128xf32>
    %85 = arith.addf %84, %1 : vector<16x128xf32>
    %cst_25 = arith.constant dense<0.000000e+00> : vector<16xf32>
    %86 = vector.multi_reduction <add>, %85, %cst_25 [1] : vector<16x128xf32> to vector<16xf32>
    %87 = vector.shape_cast %86 : vector<16xf32> to vector<16x1xf32>
    %cst_26 = arith.constant 1.280000e+02 : f32
    %88 = vector.broadcast %cst_26 : f32 to vector<16x1xf32>
    %89 = arith.divf %87, %88 : vector<16x1xf32>
    %90 = arith.mulf %85, %85 : vector<16x128xf32>
    %cst_27 = arith.constant dense<0.000000e+00> : vector<16xf32>
    %91 = vector.multi_reduction <add>, %90, %cst_27 [1] : vector<16x128xf32> to vector<16xf32>
    %92 = vector.shape_cast %91 : vector<16xf32> to vector<16x1xf32>
    %cst_28 = arith.constant 1.280000e+02 : f32
    %93 = vector.broadcast %cst_28 : f32 to vector<16x1xf32>
    %94 = arith.divf %92, %93 : vector<16x1xf32>
    %95 = arith.mulf %89, %89 : vector<16x1xf32>
    %96 = arith.subf %94, %95 : vector<16x1xf32>
    %cst_29 = arith.constant 9.99999974E-6 : f32
    %97 = vector.broadcast %cst_29 : f32 to vector<16x1xf32>
    %98 = arith.addf %96, %97 : vector<16x1xf32>
    %99 = math.rsqrt %98 : vector<16x1xf32>
    %100 = vector.broadcast %89 : vector<16x1xf32> to vector<16x128xf32>
    %101 = arith.subf %85, %100 : vector<16x128xf32>
    %102 = vector.broadcast %99 : vector<16x1xf32> to vector<16x128xf32>
    %103 = arith.mulf %101, %102 : vector<16x128xf32>
    %c0_30 = arith.constant 0 : index
    %c0_31 = arith.constant 0 : index
    %104 = vector.load %arg8[%c0_30, %c0_31] : memref<1x128xf32, #tpu.memory_space<vmem>>, vector<1x128xf32>
    %105 = vector.shape_cast %104 : vector<1x128xf32> to vector<128xf32>
    %106 = vector.shape_cast %105 : vector<128xf32> to vector<1x128xf32>
    %107 = vector.broadcast %106 : vector<1x128xf32> to vector<16x128xf32>
    %108 = arith.mulf %103, %107 : vector<16x128xf32>
    %c0_32 = arith.constant 0 : index
    %c0_33 = arith.constant 0 : index
    %109 = vector.load %arg9[%c0_32, %c0_33] : memref<1x128xf32, #tpu.memory_space<vmem>>, vector<1x128xf32>
    %110 = vector.shape_cast %109 : vector<1x128xf32> to vector<128xf32>
    %111 = vector.shape_cast %110 : vector<128xf32> to vector<1x128xf32>
    %112 = vector.broadcast %111 : vector<1x128xf32> to vector<16x128xf32>
    %113 = arith.addf %108, %112 : vector<16x128xf32>
    %114 = arith.truncf %113 : vector<16x128xf32> to vector<16x128xbf16>
    %c0_34 = arith.constant 0 : index
    %c0_35 = arith.constant 0 : index
    %115 = vector.load %arg10[%c0_34, %c0_35] : memref<128x512xbf16, #tpu.memory_space<vmem>>, vector<128x512xbf16>
    %cst_36 = arith.constant dense<0.000000e+00> : vector<16x512xf32>
    %116 = tpu.matmul %114, %115, %cst_36 {dimension_numbers = #tpu.dot_dimension_numbers<[1], [0], [0], [1], [0, 0, 1, 1], [], []>} : vector<16x128xbf16>, vector<128x512xbf16>, vector<16x512xf32> -> vector<16x512xf32>
    %c0_37 = arith.constant 0 : index
    %c0_38 = arith.constant 0 : index
    %117 = vector.load %arg11[%c0_37, %c0_38] : memref<1x512xf32, #tpu.memory_space<vmem>>, vector<1x512xf32>
    %118 = vector.shape_cast %117 : vector<1x512xf32> to vector<512xf32>
    %119 = vector.shape_cast %118 : vector<512xf32> to vector<1x512xf32>
    %120 = vector.broadcast %119 : vector<1x512xf32> to vector<16x512xf32>
    %121 = arith.addf %116, %120 : vector<16x512xf32>
    %cst_39 = arith.constant 1.702000e+00 : f32
    %122 = vector.broadcast %cst_39 : f32 to vector<16x512xf32>
    %123 = arith.mulf %122, %121 : vector<16x512xf32>
    %124 = arith.negf %123 : vector<16x512xf32>
    %125 = math.exp %124 : vector<16x512xf32>
    %cst_40 = arith.constant 1.000000e+00 : f32
    %126 = vector.broadcast %cst_40 : f32 to vector<16x512xf32>
    %127 = arith.addf %126, %125 : vector<16x512xf32>
    %128 = arith.divf %126, %127 : vector<16x512xf32>
    %129 = arith.truncf %121 : vector<16x512xf32> to vector<16x512xbf16>
    %130 = arith.truncf %128 : vector<16x512xf32> to vector<16x512xbf16>
    %131 = arith.mulf %129, %130 : vector<16x512xbf16>
    %c0_41 = arith.constant 0 : index
    %c0_42 = arith.constant 0 : index
    %132 = vector.load %arg12[%c0_41, %c0_42] : memref<512x128xbf16, #tpu.memory_space<vmem>>, vector<512x128xbf16>
    %cst_43 = arith.constant dense<0.000000e+00> : vector<16x128xf32>
    %133 = tpu.matmul %131, %132, %cst_43 {dimension_numbers = #tpu.dot_dimension_numbers<[1], [0], [0], [1], [0, 0, 1, 1], [], []>} : vector<16x512xbf16>, vector<512x128xbf16>, vector<16x128xf32> -> vector<16x128xf32>
    %c0_44 = arith.constant 0 : index
    %c0_45 = arith.constant 0 : index
    %134 = vector.load %arg13[%c0_44, %c0_45] : memref<1x128xf32, #tpu.memory_space<vmem>>, vector<1x128xf32>
    %135 = vector.shape_cast %134 : vector<1x128xf32> to vector<128xf32>
    %136 = vector.shape_cast %135 : vector<128xf32> to vector<1x128xf32>
    %137 = vector.broadcast %136 : vector<1x128xf32> to vector<16x128xf32>
    %138 = arith.addf %133, %137 : vector<16x128xf32>
    %139 = arith.addf %138, %85 : vector<16x128xf32>
    %140 = vector.shape_cast %139 : vector<16x128xf32> to vector<2x8x128xf32>
    %c0_46 = arith.constant 0 : index
    %c0_47 = arith.constant 0 : index
    %c0_48 = arith.constant 0 : index
    %141 = vector.load %arg14[%c0_46, %c0_47, %c0_48] : memref<2x8x128xf32, #tpu.memory_space<vmem>>, vector<2x8x128xf32>
    tpu.vector_store %arg14[%c0_46, %c0_47, %c0_48], %140 {strides = array<i32>} : memref<2x8x128xf32, #tpu.memory_space<vmem>>, vector<2x8x128xf32>,
    return
  }
  func.func @transform_0(%arg0: i32) -> (i32, i32, i32) {
    %c0_i32 = arith.constant 0 : i32
    %c0_i32_0 = arith.constant 0 : i32
    %c0_i32_1 = arith.constant 0 : i32
    return %arg0, %c0_i32, %c0_i32_0 : i32, i32, i32
  }
  func.func @transform_1(%arg0: i32) -> (i32, i32) {
    %c0_i32 = arith.constant 0 : i32
    %c0_i32_0 = arith.constant 0 : i32
    %c0_i32_1 = arith.constant 0 : i32
    return %c0_i32, %c0_i32_0 : i32, i32
  }
  func.func @transform_2(%arg0: i32) -> (i32, i32) {
    %c0_i32 = arith.constant 0 : i32
    %c0_i32_0 = arith.constant 0 : i32
    %c0_i32_1 = arith.constant 0 : i32
    return %c0_i32, %c0_i32_0 : i32, i32
  }
  func.func @transform_3(%arg0: i32) -> (i32, i32) {
    %c0_i32 = arith.constant 0 : i32
    %c0_i32_0 = arith.constant 0 : i32
    %c0_i32_1 = arith.constant 0 : i32
    return %c0_i32, %c0_i32_0 : i32, i32
  }
  func.func @transform_4(%arg0: i32) -> (i32, i32) {
    %c0_i32 = arith.constant 0 : i32
    %c0_i32_0 = arith.constant 0 : i32
    %c0_i32_1 = arith.constant 0 : i32
    return %c0_i32, %c0_i32_0 : i32, i32
  }
  func.func @transform_5(%arg0: i32) -> (i32, i32) {
    %c0_i32 = arith.constant 0 : i32
    %c0_i32_0 = arith.constant 0 : i32
    %c0_i32_1 = arith.constant 0 : i32
    return %c0_i32, %c0_i32_0 : i32, i32
  }
  func.func @transform_6(%arg0: i32) -> (i32, i32) {
    %c0_i32 = arith.constant 0 : i32
    %c0_i32_0 = arith.constant 0 : i32
    %c0_i32_1 = arith.constant 0 : i32
    return %c0_i32, %c0_i32_0 : i32, i32
  }
  func.func @transform_7(%arg0: i32) -> (i32, i32) {
    %c0_i32 = arith.constant 0 : i32
    %c0_i32_0 = arith.constant 0 : i32
    %c0_i32_1 = arith.constant 0 : i32
    return %c0_i32, %c0_i32_0 : i32, i32
  }
  func.func @transform_8(%arg0: i32) -> (i32, i32) {
    %c0_i32 = arith.constant 0 : i32
    %c0_i32_0 = arith.constant 0 : i32
    %c0_i32_1 = arith.constant 0 : i32
    return %c0_i32, %c0_i32_0 : i32, i32
  }
  func.func @transform_9(%arg0: i32) -> (i32, i32) {
    %c0_i32 = arith.constant 0 : i32
    %c0_i32_0 = arith.constant 0 : i32
    %c0_i32_1 = arith.constant 0 : i32
    return %c0_i32, %c0_i32_0 : i32, i32
  }
  func.func @transform_10(%arg0: i32) -> (i32, i32) {
    %c0_i32 = arith.constant 0 : i32
    %c0_i32_0 = arith.constant 0 : i32
    %c0_i32_1 = arith.constant 0 : i32
    return %c0_i32, %c0_i32_0 : i32, i32
  }
  func.func @transform_11(%arg0: i32) -> (i32, i32) {
    %c0_i32 = arith.constant 0 : i32
    %c0_i32_0 = arith.constant 0 : i32
    %c0_i32_1 = arith.constant 0 : i32
    return %c0_i32, %c0_i32_0 : i32, i32
  }
  func.func @transform_12(%arg0: i32) -> (i32, i32) {
    %c0_i32 = arith.constant 0 : i32
    %c0_i32_0 = arith.constant 0 : i32
    %c0_i32_1 = arith.constant 0 : i32
    return %c0_i32, %c0_i32_0 : i32, i32
  }
  func.func @transform_13(%arg0: i32) -> (i32, i32, i32) {
    %c0_i32 = arith.constant 0 : i32
    %c0_i32_0 = arith.constant 0 : i32
    %c0_i32_1 = arith.constant 0 : i32
    return %arg0, %c0_i32, %c0_i32_0 : i32, i32, i32
  }
}

</mosaic_0001>

<bundles_post_ra>
// kernel: tpu_custom_call.1
= control target key start
LH: loop header
LB: loop body
LE: loop exit
PB: predicated region body
PF: predicated region fallthrough
CT: control target
= control target key end

     0   :  { %s5940_s0 = inlined_call_operand.hbm [shape: f32[4,8,128], index: 0, kind: input, shape index: {}]   ;;  %s5941_s1 = inlined_call_operand.hbm [shape: f32[1,128], index: 1, kind: input, shape index: {}]   ;;  %s5942_s2 = inlined_call_operand.hbm [shape: f32[1,128], index: 2, kind: input, shape index: {}]   ;;  %s5943_s3 = inlined_call_operand.hbm [shape: bf16[128,384], index: 3, kind: input, shape index: {}]   ;;  %s5944_s4 = inlined_call_operand.vmem [shape: f32[1,384], index: 4, kind: input, shape index: {}]   ;;  %s5945_s5 = inlined_call_operand.hbm [shape: bf16[128,128], index: 5, kind: input, shape index: {}]   ;;  %s5946_s6 = inlined_call_operand.vmem [shape: f32[1,128], index: 6, kind: input, shape index: {}]   ;;  %s5947_s7 = inlined_call_operand.vmem [shape: f32[1,128], index: 7, kind: input, shape index: {}]   ;;  %s5948_s8 = inlined_call_operand.vmem [shape: f32[1,128], index: 8, kind: input, shape index: {}]   ;;  %s5949_s9 = inlined_call_operand.hbm [shape: bf16[128,512], index: 9, kind: input, shape index: {}]   ;;  %s5950_s10 = inlined_call_operand.vmem [shape: f32[1,512], index: 10, kind: input, shape index: {}]   ;;  %s5951_s11 = inlined_call_operand.hbm [shape: bf16[512,128], index: 11, kind: input, shape index: {}]   ;;  %s5952_s12 = inlined_call_operand.vmem [shape: f32[1,128], index: 12, kind: input, shape index: {}]   ;;  %s5953_s13 = inlined_call_operand.hbm [shape: f32[4,8,128], index: 13, kind: output, shape index: {}]  }
   0x1   :  { %5958 = sst [smem:[#allocation20_spill]] %s5941_s1 }
   0x2   :  { %5959 = sst [smem:[#allocation21_spill]] %s5943_s3 }
   0x3   :  { %5960 = sst [smem:[#allocation22_spill]] %s5947_s7 }
   0x4   :  { %5961 = sst [smem:[#allocation23_spill]] %s5948_s8 }
   0x5   :  { %5962 = sst [smem:[#allocation24_spill]] %s5950_s10 }
   0x6   :  { %5963 = sst [smem:[#allocation25_spill]] %s5952_s12 }
   0x7   :  { %5964 = sst [smem:[#allocation26_spill]] %s5953_s13 }
   0x8   :  { %18 = vsyncpa [#allocation3], 0 }
   0x9   :  { %20 = vsyncpa [#allocation3 + $0x1], 0 }
   0xa   :  { %21 = vsyncpa [#allocation6], 0 }
   0xb   :  { %22 = vsyncpa [#allocation9], 0 }
   0xc   :  { %23 = vsyncpa [#allocation12], 0 }
   0xd   :  { %24 = vsyncpa [#allocation4], 0 }
   0xe   :  { %26 = vsyncpa [#allocation4 + $0x1], 0  ;;  %s5037_s25 = smov 0   ;;  %s5039_s26 = smov 0  }
   0xf   :  { %s5041_s27 = smov 0   ;;  %s5043_s28 = smov 0  }
  0x10 LB: > { %s4941_s29 = smov [#allocation5]   ;;  %s5058_s14 = sadd.s32 4294967295, %s4939_s28   ;;  %s4939_s28 = sphi %s5043_s28, %s5996_s28   ;;  %s4935_s27 = sphi %s5041_s27, %s5995_s27   ;;  %s4931_s26 = sphi %s5039_s26, %s5994_s26   ;;  %s4927_s25 = sphi %s5037_s25, %s5993_s25  }
  0x11   : > { %s354_s30 = sshll.u32 %s4941_s29, 4  ;;  %p3930_p0 = scmp.ge.s32.totalorder %s4939_s28, 1  ;;  %s5063_s30 = int_to_ptr.vmem [resolvable:$true] %s354_s30 }
  0x12   : > { %p5955_p1 = scmp.eq.s32.totalorder %s5058_s14, 0  ;;  %p341_p2 = scmp.lt.s32.totalorder %s4939_s28, 3 }
  0x13   : > { %s4942_s16 = smov [#allocation8]   ;;  %s4943_s19 = smov [#allocation11]  }
  0x14   : > { %p5065_p3 = pnand %p3930_p0, %p341_p2  ;;  %s375_s17 = sshll.u32 %s4942_s16, 4  ;;  %s5072_s17 = int_to_ptr.vmem [resolvable:$true] %s375_s17 }
  0x15   : > { %s413_s20 = sshll.u32 %s4943_s19, 4  ;;  %s5967_s1 = sld [smem:[#allocation20_spill]]  ;;  %s5080_s20 = int_to_ptr.vmem [resolvable:$true] %s413_s20 }
  0x16   : > { %s5965_s15 = scalar_select %p5065_p3, 1, 0 }
  0x17   : > { %p4357_p5 = pneg %p5065_p3 }
  0x19   : > { %p5076_p6 = pnand %p4357_p5, %p5955_p1 }
  0x1b   : > { %s4663_s23 = scalar_lea.hbm %s5967_s1, 16  ;;  %p5090_p8 = pneg %p5076_p6 }
  0x1c   : > { %p4664_p7 = scmp.ne.s32.totalorder %s5967_s1, %s4663_s23  ;;  %p4670_p11 = scmp.lt.u32.totalorder %s4663_s23, %s5967_s1 }
  0x1e   : > { %p4666_p9 = pnand %p5090_p8, %p4664_p7 }
  0x20   : > { %p4667_p10 = pneg %p4666_p9 }
  0x22   : > { %p4672_p12 = pnand %p4670_p11, %p4667_p10 }
  0x24   : > { %4675 = shalt.err (!%p4672_p12)
}
  0x25   : > { %s4676_s21 = scalar_lea.vmem %s5063_s30, 16  ;;  %s4683_s22 = scalar_lea.vmem %s5063_s30, 32 }
  0x26   : > { %p4677_p13 = scmp.ne.s32.totalorder %s5063_s30, %s4676_s21  ;;  %p4684_p5 = scmp.lt.s32.totalorder %s5063_s30, %s5063_s30 }
  0x27   : > { %p4685_p7 = scmp.lt.s32.totalorder %s4683_s22, %s4676_s21 }
  0x28   : > { %p4679_p0 = pnand %p4677_p13, %p5090_p8 }
  0x29   : > { %p4686_p9 = por %p4685_p7, %p4684_p5 }
  0x2a   : > { %p4680_p2 = pneg %p4679_p0 }
  0x2c   : > { %p4687_p4 = pnand %p4686_p9, %p4680_p2 }
  0x2e   : > { %4690 = shalt.err (!%p4687_p4)
}
  0x2f   : > { %4360 = dma.hbm_to_vmem [thread:$0]  (!%p5076_p6), %s5967_s1, 16, %s5063_s30, [#allocation6]  }
  0x30   : > { %s5969_s3 = sld [smem:[#allocation21_spill]] }
  0x36   : > { %s4691_s19 = scalar_lea.hbm %s5969_s3, 3072 }
  0x37   : > { %p4692_p10 = scmp.ne.s32.totalorder %s5969_s3, %s4691_s19  ;;  %p4698_p4 = scmp.lt.u32.totalorder %s4691_s19, %s5969_s3 }
  0x39   : > { %p4694_p11 = pnand %p4692_p10, %p5090_p8 }
  0x3b   : > { %p4695_p12 = pneg %p4694_p11 }
  0x3d   : > { %p4700_p13 = pnand %p4698_p4, %p4695_p12 }
  0x3f   : > { %4703 = shalt.err (!%p4700_p13)
}
  0x40   : > { %s4704_s30 = scalar_lea.vmem %s5072_s17, 3072  ;;  %p4712_p7 = scmp.lt.s32.totalorder %s5072_s17, %s5072_s17 }
  0x41   : > { %p4705_p0 = scmp.ne.s32.totalorder %s5072_s17, %s4704_s30  ;;  %p4713_p9 = scmp.lt.s32.totalorder %s4704_s30, %s4704_s30 }
  0x43   : > { %p4707_p2 = pnand %p4705_p0, %p5090_p8  ;;  %p4714_p10 = por %p4713_p9, %p4712_p7 }
  0x45   : > { %p4708_p5 = pneg %p4707_p2 }
  0x47   : > { %p4715_p11 = pnand %p4714_p10, %p4708_p5 }
  0x49   : > { %4718 = shalt.err (!%p4715_p11)
}
  0x4a   : > { %s4944_s10 = smov 192   ;;  %s4945_s12 = smov 12  }
  0x4b   : > { %4366 = dma.hbm_to_vmem [thread:$0]  (!%p5076_p6), %s5969_s3, 3072, %s5072_s17, [#allocation9], %s4944_s10, %s4944_s10, %s4945_s12  }
  0x4c   : > { %s4719_s19 = scalar_lea.hbm %s5949_s9, 4096 }
  0x4d   : > { %p4720_p12 = scmp.ne.s32.totalorder %s5949_s9, %s4719_s19  ;;  %p4726_p0 = scmp.lt.u32.totalorder %s4719_s19, %s5949_s9 }
  0x4f   : > { %p4722_p4 = pnand %p4720_p12, %p5090_p8 }
  0x51   : > { %p4723_p13 = pneg %p4722_p4 }
  0x53   : > { %p4728_p2 = pnand %p4726_p0, %p4723_p13 }
  0x55   : > { %4731 = shalt.err (!%p4728_p2)
}
  0x56   : > { %s4732_s17 = scalar_lea.vmem %s5080_s20, 4096  ;;  %p4740_p10 = scmp.lt.s32.totalorder %s5080_s20, %s5080_s20 }
  0x57   : > { %p4733_p5 = scmp.ne.s32.totalorder %s5080_s20, %s4732_s17  ;;  %p4741_p11 = scmp.lt.s32.totalorder %s4732_s17, %s4732_s17 }
  0x59   : > { %p4735_p7 = pnand %p4733_p5, %p5090_p8  ;;  %p4742_p12 = por %p4741_p11, %p4740_p10 }
  0x5b   : > { %p4736_p9 = pneg %p4735_p7 }
  0x5d   : > { %p4743_p4 = pnand %p4742_p12, %p4736_p9 }
  0x5f   : > { %4746 = shalt.err (!%p4743_p4)
}
  0x60   : > { %s4946_s10 = smov 256   ;;  %s4947_s1 = smov 16  }
  0x61   : > { %4372 = dma.hbm_to_vmem [thread:$0]  (!%p5076_p6), %s5949_s9, 4096, %s5080_s20, [#allocation12], %s4946_s10, %s4946_s10, %s4947_s1  }
  0x62   : > { %s4948_s23 = smov [#allocation7]   ;;  %s4949_s29 = smov [#allocation10]  }
  0x63   : > { %s365_s24 = sshll.u32 %s4948_s23, 4  ;;  %s391_s19 = sshll.u32 %s4949_s29, 4  ;;  %s366_s24 = int_to_ptr.vmem [resolvable:$true] %s365_s24  ;;  %s392_s19 = int_to_ptr.vmem [resolvable:$true] %s391_s19 }
  0x64   : > { %s4747_s30 = scalar_lea.hbm %s5942_s2, 16 }
  0x65   : > { %p4748_p13 = scmp.ne.s32.totalorder %s5942_s2, %s4747_s30  ;;  %p4754_p5 = scmp.lt.u32.totalorder %s4747_s30, %s5942_s2 }
  0x67   : > { %p4750_p0 = pnand %p4748_p13, %p5090_p8 }
  0x69   : > { %p4751_p2 = pneg %p4750_p0 }
  0x6b   : > { %p4756_p7 = pnand %p4754_p5, %p4751_p2 }
  0x6d   : > { %4759 = shalt.err (!%p4756_p7)
}
  0x6e   : > { %s4760_s20 = scalar_lea.vmem %s366_s24, 16  ;;  %s4767_s10 = scalar_lea.vmem %s366_s24, 32 }
  0x6f   : > { %p4761_p9 = scmp.ne.s32.totalorder %s366_s24, %s4760_s20  ;;  %p4768_p12 = scmp.lt.s32.totalorder %s366_s24, %s366_s24 }
  0x70   : > { %p4769_p4 = scmp.lt.s32.totalorder %s4767_s10, %s4760_s20 }
  0x71   : > { %p4763_p10 = pnand %p4761_p9, %p5090_p8 }
  0x72   : > { %p4770_p1 = por %p4769_p4, %p4768_p12 }
  0x73   : > { %p4764_p11 = pneg %p4763_p10 }
  0x75   : > { %p4771_p3 = pnand %p4770_p1, %p4764_p11 }
  0x77   : > { %4774 = shalt.err (!%p4771_p3)
}
  0x78   : > { %4363 = dma.hbm_to_vmem [thread:$0]  (!%p5076_p6), %s5942_s2, 16, %s366_s24, [#allocation6]  }
  0x79   : > { %s4775_s12 = scalar_lea.hbm %s5945_s5, 1024 }
  0x7a   : > { %p4776_p13 = scmp.ne.s32.totalorder %s5945_s5, %s4775_s12  ;;  %p4782_p3 = scmp.lt.u32.totalorder %s4775_s12, %s5945_s5 }
  0x7c   : > { %p4778_p0 = pnand %p4776_p13, %p5090_p8 }
  0x7e   : > { %p4779_p1 = pneg %p4778_p0 }
  0x80   : > { %p4784_p2 = pnand %p4782_p3, %p4779_p1 }
  0x82   : > { %4787 = shalt.err (!%p4784_p2)
}
  0x83   : > { %s4788_s22 = scalar_lea.vmem %s392_s19, 1024  ;;  %p4796_p10 = scmp.lt.s32.totalorder %s392_s19, %s392_s19 }
  0x84   : > { %p4789_p5 = scmp.ne.s32.totalorder %s392_s19, %s4788_s22  ;;  %p4797_p11 = scmp.lt.s32.totalorder %s4788_s22, %s4788_s22 }
  0x86   : > { %p4791_p7 = pnand %p4789_p5, %p5090_p8  ;;  %p4798_p12 = por %p4797_p11, %p4796_p10 }
  0x88   : > { %p4792_p9 = pneg %p4791_p7 }
  0x8a   : > { %p4799_p4 = pnand %p4798_p12, %p4792_p9 }
  0x8c   : > { %4802 = shalt.err (!%p4799_p4)
}
  0x8d   : > { %s4950_s24 = smov 64   ;;  %s4951_s30 = smov 4  }
  0x8e   : > { %4369 = dma.hbm_to_vmem [thread:$0]  (!%p5076_p6), %s5945_s5, 1024, %s392_s19, [#allocation9], %s4950_s24, %s4950_s24, %s4951_s30  }
  0x8f   : > { %s4952_s10 = smov [#allocation13]   ;;  %s4803_s8 = scalar_lea.hbm %s5951_s11, 4096 }
  0x90   : > { %s429_s3 = sshll.u32 %s4952_s10, 4  ;;  %p4804_p13 = scmp.ne.s32.totalorder %s5951_s11, %s4803_s8  ;;  %s430_s3 = int_to_ptr.vmem [resolvable:$true] %s429_s3 }
  0x91   : > { %p4810_p3 = scmp.lt.u32.totalorder %s4803_s8, %s5951_s11 }
  0x92   : > { %p4806_p0 = pnand %p4804_p13, %p5090_p8 }
  0x94   : > { %p4807_p1 = pneg %p4806_p0 }
  0x96   : > { %p4812_p2 = pnand %p4810_p3, %p4807_p1 }
  0x98   : > { %4815 = shalt.err (!%p4812_p2)
}
  0x99   : > { %s4816_s19 = scalar_lea.vmem %s430_s3, 4096  ;;  %p4824_p10 = scmp.lt.s32.totalorder %s430_s3, %s430_s3 }
  0x9a   : > { %p4817_p5 = scmp.ne.s32.totalorder %s430_s3, %s4816_s19  ;;  %p4825_p11 = scmp.lt.s32.totalorder %s4816_s19, %s4816_s19 }
  0x9c   : > { %p4819_p7 = pnand %p4817_p5, %p5090_p8  ;;  %p4826_p12 = por %p4825_p11, %p4824_p10 }
  0x9e   : > { %p4820_p9 = pneg %p4819_p7 }
  0xa0   : > { %p4827_p4 = pnand %p4826_p12, %p4820_p9 }
  0xa2   : > { %4830 = shalt.err (!%p4827_p4)
}
  0xa3   : > { %4375 = dma.hbm_to_vmem [thread:$0]  (!%p5076_p6), %s5951_s11, 4096, %s430_s3, [#allocation12], %s4950_s24, %s4950_s24, %s4951_s30  }
  0xa4   : > { %s3929_s16 = sadd.s32 4294967294, %s4939_s28   ;;  %s5214_s18 = sadd.s32 1, %s4939_s28  }
  0xa5   : > { %s36_s17 = ssub.s32 %s4939_s28, %s5214_s18  ;;  %s39_s20 = sadd.s32 1, %s4935_s27 }
  0xa6   : > { %p37_p8 = scmp.eq.s32.totalorder %s36_s17, 0  ;;  %p46_p13 = scmp.ne.s32.totalorder %s4935_s27, %s4931_s26 }
  0xa7   : > { %p47_p0 = scmp.eq.s32.totalorder %s4939_s28, 0  ;;  %p52_p1 = scmp.ne.s32.totalorder %s4931_s26, %s4927_s25 }
  0xa8   : > { %s5225_s10 = scalar_select %p37_p8, %s4935_s27, %s39_s20  }
  0xa9   : > { %p5227_p3 = por %p47_p0, %p46_p13  ;;  %p5971_p2 = scmp.eq.s32.totalorder %s5058_s14, 0 }
  0xaa   : > { %p328_p5 = scmp.eq.s32.totalorder %s5058_s14, 1  ;;  %p334_p7 = scmp.eq.s32.totalorder %s3929_s16, 1 }
  0xab   : > { %p5233_p6 = por %p5971_p2, %p52_p1  ;;  %p4390_p9 = scmp.lt.s32.totalorder %s4939_s28, 2 }
  0xac   : > { %s446_s30 = sand.u32 1, %s4935_s27   ;;  %p5240_p10 = por %p328_p5, %p46_p13 }
  0xad   : > { %p5244_p11 = por %p334_p7, %p52_p1  ;;  %s3938_s8 = sshll.u32 %s446_s30, 4 }
  0xae   : > { %s5973_s3 = scalar_select %p5240_p10, 1, 0 }
  0xaf   : > { %s5974_s7 = scalar_select %p5244_p11, 1, 0 }
  0xb0   : > { %s4097_s12 = sshll.u32 %s4939_s28, 8  ;;  %s450_s19 = scalar_lea.vmem [#allocation2], %s3938_s8 }
  0xb1   : > { %s5252_s29 = scalar_lea.hbm %s5940_s0, %s4097_s12  ;;  %s457_s21 = sshll.u32 %s450_s19, 4  ;;  %s5254_s21 = int_to_ptr.vmem [resolvable:$true] %s457_s21 }
  0xb2   : > { %p5258_p12 = pnand %p4390_p9, %p5227_p3  ;;  %s5262_s16 = scalar_lea.sflag [#allocation3], %s446_s30 }
  0xb3   : > { %s4831_s17 = scalar_lea.hbm %s5252_s29, 256  ;;  %s4836_s1 = scalar_lea.hbm %s5940_s0, 512 }
  0xb4   : > { %p4832_p4 = scmp.ne.s32.totalorder %s5252_s29, %s4831_s17  ;;  %p4833_p8 = pneg %p5258_p12 }
  0xb5   : > { %p4837_p1 = scmp.lt.u32.totalorder %s5252_s29, %s5940_s0  ;;  %p4838_p3 = scmp.lt.u32.totalorder %s4836_s1, %s4831_s17 }
  0xb6   : > { %p4834_p13 = pnand %p4833_p8, %p4832_p4  ;;  %p4840_p5 = scmp.lt.u32.totalorder %s4831_s17, %s5252_s29 }
  0xb7   : > { %p4839_p2 = por %p4838_p3, %p4837_p1 }
  0xb8   : > { %p4835_p0 = pneg %p4834_p13 }
  0xb9   : > { %p4841_p7 = por %p4840_p5, %p4839_p2 }
  0xbb   : > { %p4842_p9 = pnand %p4841_p7, %p4835_p0 }
  0xbd   : > { %4845 = shalt.err (!%p4842_p9)
}
  0xbe   : > { %s4846_s30 = scalar_lea.vmem %s5254_s21, 256  ;;  %s4953_s23 = smov [#allocation2]  }
  0xbf   : > { %p4847_p4 = scmp.ne.s32.totalorder %s5254_s21, %s4846_s30  ;;  %s4851_s19 = sshll.u32 %s4953_s23, 4  ;;  %s4852_s19 = int_to_ptr.vmem [resolvable:$false] %s4851_s19 }
  0xc0   : > { %s4853_s20 = scalar_lea.vmem %s4852_s19, 512  ;;  %p4854_p10 = scmp.lt.s32.totalorder %s5254_s21, %s4852_s19 }
  0xc1   : > { %p4849_p13 = pnand %p4847_p4, %p4833_p8  ;;  %p4855_p1 = scmp.lt.s32.totalorder %s4853_s20, %s4846_s30 }
  0xc3   : > { %p4850_p11 = pneg %p4849_p13  ;;  %p4856_p3 = por %p4855_p1, %p4854_p10 }
  0xc5   : > { %p4857_p2 = pnand %p4856_p3, %p4850_p11 }
  0xc7   : > { %4860 = shalt.err (!%p4857_p2)
}
  0xc8   : > { %s4954_s17 = smov 128   ;;  %s4955_s8 = smov 8  }
  0xc9   : > { %4379 = dma.hbm_to_vmem [thread:$0]  (!%p5258_p12), %s5252_s29, 256, %s5254_s21, %s5262_s16, %s4954_s17, %s4954_s17, %s4955_s8  }
  0xca   : > { %p5976_p8 = scmp.ne.s32.totalorder %s5965_s15, 0 }
  0xcb   : > { %s5293_s1 = sand.u32 (!%p5976_p8), 1, %s4931_s26  }
  0xcc   : > { %469 = sbr.rel (%p5976_p8) target bundleno = 2618 (0xa3a), region = 72  ;;  %s3942_s12 = sshll.u32 (!%p5976_p8), %s5293_s1, 4 }
  0xcd   : > { %s472_s13 = scalar_lea.sflag (!%p5976_p8), [#allocation3], %s5293_s1  ;;  %s5299_s30 = scalar_lea.vmem (!%p5976_p8), [#allocation2], %s3942_s12 }
  0xd3   : > { %4906 = dma.done.wait (%p5233_p6), %s472_s13, 256  }
  0xd4   : > { %4908 = vsyncadd (%p5233_p6), %s472_s13, 4294967040  ;;  %p5977_p10 = scmp.eq.s32.totalorder %s5058_s14, 0 }
  0xd6   : > { %4910 = dma.done.wait (%p5977_p10), [#allocation6], 32   ;;  %p5978_p11 = pmov %p5977_p10 }
  0xd7   : > { %p5979_p12 = pmov %p5977_p10 }
  0xd8   : > { %4912 = vsyncadd (%p5978_p11), [#allocation6], 4294967264 }
  0xd9   : > { %4914 = dma.done.wait (%p5979_p12), [#allocation9], 4096   ;;  %p5980_p0 = pmov %p5977_p10 }
  0xdb   : > { %4916 = vsyncadd (%p5980_p0), [#allocation9], 4294963200  ;;  %p5981_p5 = pmov %p5980_p0 }
  0xdc   : > { %p5982_p7 = pmov %p5980_p0 }
  0xdd   : > { %4918 = dma.done.wait (%p5981_p5), [#allocation12], 8192  }
  0xde   : > { %4920 = vsyncadd (%p5982_p7), [#allocation12], 4294959104  ;;  %v4956_v0 = vmov 0.0   ;;  %v5319_v1 = vld [vmem:[%s5299_s30] sm:$0xff]  ;;  %v5322_v2 = vld [vmem:[%s5299_s30 + $0x8] sm:$0xff]  ;;  %v4957_v26 = vmov 0   ;;  %v627_v57 = vlaneseq }
  0xdf   : > { %4193 = vmatprep.subr.bf16.mxu1 %v4956_v0  ;;  %547 = vadd.xlane.f32.xlu0 %v5319_v1  ;;  %v554_v3 = vmul.f32 %v5319_v1, %v5319_v1  ;;  %v4469_v4 = vld [vmem:[#allocation8 + $0x4] ss:$12 sps:$4 sm:$0xff]   ;;  %v555_v5 = vmul.f32 %v5322_v2, %v5322_v2  ;;  %v4471_v6 = vld [vmem:[#allocation8] ss:$12 sps:$4 sm:$0xff]   ;;  %v4472_v7 = vld [vmem:[#allocation8 + $0x8] ss:$12 sps:$4 sm:$0xff]  }
  0xe0   : > { %770 = vmatprep.subr.bf16.mxu0 %v4469_v4  ;;  %4194 = vmatpush3.bf16.msra.mxu1 %v4472_v7  ;;  %v4473_v8 = vld [vmem:[#allocation8 + $0x1c] ss:$12 sps:$4 sm:$0xff]   ;;  %v4475_v9 = vld [vmem:[#allocation8 + $0x18] ss:$12 sps:$4 sm:$0xff]   ;;  %v4476_v10 = vld [vmem:[#allocation8 + $0x20] ss:$12 sps:$4 sm:$0xff]  }
  0xe1   : > { %556 = vadd.xlane.f32.xlu1 %v554_v3  ;;  %771 = vmatpush1.bf16.msra.mxu0 %v4471_v6  ;;  %v4477_v11 = vld [vmem:[#allocation8 + $0x34] ss:$12 sps:$4 sm:$0xff]   ;;  %v4479_v12 = vld [vmem:[#allocation8 + $0x30] ss:$12 sps:$4 sm:$0xff]   ;;  %v4480_v13 = vld [vmem:[#allocation8 + $0x38] ss:$12 sps:$4 sm:$0xff]  }
  0xe2   : > { %4195 = vmatprep.subr.bf16.mxu1 %v4956_v0  ;;  %772 = vmatprep.subr.bf16.mxu0 %v4473_v8  ;;  %v4481_v14 = vld [vmem:[#allocation8 + $0x4c] ss:$12 sps:$4 sm:$0xff]   ;;  %v4483_v15 = vld [vmem:[#allocation8 + $0x48] ss:$12 sps:$4 sm:$0xff]   ;;  %v4484_v16 = vld [vmem:[#allocation8 + $0x50] ss:$12 sps:$4 sm:$0xff]  }
  0xe3   : > { %549 = vadd.xlane.f32.xlu0 %v5322_v2  ;;  %v4485_v17 = vld [vmem:[#allocation8 + $0x64] ss:$12 sps:$4 sm:$0xff]   ;;  %v4487_v18 = vld [vmem:[#allocation8 + $0x60] ss:$12 sps:$4 sm:$0xff]   ;;  %v4488_v19 = vld [vmem:[#allocation8 + $0x68] ss:$12 sps:$4 sm:$0xff]   ;;  %802 = vmatprep.mubr.bf16.mxu0 %v4957_v26 }
  0xe4   : > { %4196 = vmatpush3.bf16.msra.mxu1 %v4476_v10  ;;  %v4489_v20 = vld [vmem:[#allocation8 + $0x7c] ss:$12 sps:$4 sm:$0xff]   ;;  %v4491_v21 = vld [vmem:[#allocation8 + $0x78] ss:$12 sps:$4 sm:$0xff]   ;;  %v4492_v22 = vld [vmem:[#allocation8 + $0x80] ss:$12 sps:$4 sm:$0xff]  }
  0xe5   : > { %558 = vadd.xlane.f32.xlu1 %v555_v5  ;;  %773 = vmatpush1.bf16.msra.mxu0 %v4475_v9  ;;  %v4493_v23 = vld [vmem:[#allocation8 + $0x94] ss:$12 sps:$4 sm:$0xff]   ;;  %v4495_v24 = vld [vmem:[#allocation8 + $0x90] ss:$12 sps:$4 sm:$0xff]   ;;  %v4496_v25 = vld [vmem:[#allocation8 + $0x98] ss:$12 sps:$4 sm:$0xff]  }
  0xe6   : > { %4197 = vmatprep.subr.bf16.mxu1 %v4956_v0  ;;  %774 = vmatprep.subr.bf16.mxu0 %v4477_v11  ;;  %vm4958_vm0 = vmmov 0   ;;  %v4497_v27 = vld [vmem:[#allocation8 + $0xac] ss:$12 sps:$4 sm:$0xff]   ;;  %v4499_v28 = vld [vmem:[#allocation8 + $0xa8] ss:$12 sps:$4 sm:$0xff]   ;;  %v5349_v58 = vshrl.u32 %v627_v57, 7 }
  0xe7   : > { %4209 = vmatprep.mubr.msk.bf16.mxu1 %vm4958_vm0, %v4956_v0  ;;  %v4500_v29 = vld [vmem:[#allocation8 + $0xb0] ss:$12 sps:$4 sm:$0xff]   ;;  %s4959_s29 = smov 64   ;;  %s4960_s21 = smov 96   ;;  %vm1754_vm1 = vcmask 261120   ;;  %vm2138_vm3 = vcmask 64512  }
  0xe8   : > { %4198 = vmatpush3.bf16.msra.mxu1 %v4480_v13  ;;  %v3950_v47 = vld [vmem:[#allocation5] ss:$0 sm:$0xff]  ;;  %v3951_v52 = vld [vmem:[#allocation7] ss:$0 sm:$0xff]  ;;  %v629_v59 = vsub.s32 0, %v5349_v58  ;;  %v633_v62 = vsub.s32 1, %v5349_v58 }
  0xe9   : > { %775 = vmatpush1.bf16.msra.mxu0 %v4479_v12  ;;  %4199 = vmatprep.subr.bf16.mxu1 %v4956_v0  ;;  %v5355_v60 = vld [vmem:[%s5944_s4] sm:$0x7]  ;;  %s4961_s22 = smov 32   ;;  %v4962_v13 = vmov 1983009808   ;;  %vm2238_vm4 = vcmask 1043456  }
  0xea   : > { %776 = vmatprep.subr.bf16.mxu0 %v4481_v14  ;;  %v630_v61 = vrot.slane %v5355_v60, %v629_v59  ;;  %v634_v3 = vrot.slane %v5355_v60, %v633_v62  ;;  %v877_v14 = vunpack.c.l.s4 %v4962_v13  ;;  %vm2902_vm5 = vcmask 523264   ;;  %s5985_s17 = sld [smem:[#allocation22_spill]]  ;;  %s5988_s16 = sld [smem:[#allocation25_spill]] }
  0xeb   : > { %vm2905_vm6 = vcmask 785408   ;;  %s541_s23 = scalar_lea.vmem [#allocation14], %s3942_s12  ;;  %s4098_s20 = sshll.u32 %s5058_s14, 8 }
  0xec   : > { %4200 = vmatpush3.bf16.msra.mxu1 %v4484_v16  ;;  %s3799_s19 = sshll.u32 %s541_s23, 4  ;;  %s5989_s13 = sld [smem:[#allocation26_spill]]  ;;  %s5890_s19 = int_to_ptr.vmem [resolvable:$true] %s3799_s19 }
  0xed   : > { %777 = vmatpush1.bf16.msra.mxu0 %v4483_v15  ;;  %4201 = vmatprep.subr.bf16.mxu1 %v4956_v0  ;;  %s3786_s12 = scalar_lea.sflag [#allocation4], %s5293_s1  ;;  %s4861_s15 = scalar_lea.vmem %s5890_s19, 256 }
  0xee   : > { %778 = vmatprep.subr.bf16.mxu0 %v4485_v17  ;;  %v4963_v17 = vmov 1934713408   ;;  %p4862_p6 = scmp.ne.s32.totalorder %s5890_s19, %s4861_s15  ;;  %p5990_p9 = scmp.ne.s32.totalorder %s5973_s3, 0 }
  0xef   : > { %s4964_s14 = smov [#allocation14]  }
  0xf0   : > { %4202 = vmatpush3.bf16.msra.mxu1 %v4488_v19  ;;  %v878_v19 = vunpack.c.0.s8 %v877_v14  ;;  %p4863_p4 = pnand %p4862_p6, %p5990_p9  ;;  %s4865_s24 = sshll.u32 %s4964_s14, 4  ;;  %s4866_s24 = int_to_ptr.vmem [resolvable:$false] %s4865_s24 }
  0xf1   : > { %779 = vmatpush1.bf16.msra.mxu0 %v4487_v18  ;;  %4203 = vmatprep.subr.bf16.mxu1 %v4956_v0  ;;  %v909_v18 = vunpack.c.l.s4 %v4963_v17  ;;  %p4868_p1 = scmp.lt.s32.totalorder %s5890_s19, %s4866_s24 }
  0xf2   : > { %780 = vmatprep.subr.bf16.mxu0 %v4489_v20  ;;  %p4864_p13 = pneg %p4863_p4 }
  0xf4   : > { %4204 = vmatpush3.bf16.msra.mxu1 %v4492_v22  ;;  %v910_v22 = vunpack.c.0.s8 %v909_v18 }
  0xf5   : > { %781 = vmatpush1.bf16.msra.mxu0 %v4491_v21  ;;  %4205 = vmatprep.subr.bf16.mxu1 %v4956_v0 }
  0xf6   : > { %782 = vmatprep.subr.bf16.mxu0 %v4493_v23 }
  0xf8   : > { %4206 = vmatpush3.bf16.msra.mxu1 %v4496_v25  ;;  %v5396_v25 = vsub.s32 %v878_v19, %v5349_v58 }
  0xf9   : > { %783 = vmatpush1.bf16.msra.mxu0 %v4495_v24  ;;  %4207 = vmatprep.subr.bf16.mxu1 %v4956_v0 }
  0xfa   : > { %784 = vmatprep.subr.bf16.mxu0 %v4497_v27 }
  0xfc   : > { %4208 = vmatpush3.bf16.msra.mxu1 %v4500_v29 }
  0xfd   : > { %785 = vmatpush1.bf16.msra.mxu0 %v4499_v28  ;;  %4213 = vmatprep.subr.bf16.mxu1 %v4956_v0 }
  0xfe   : > { %4237 = vmatprep.subr.bf16.mxu0 %v4956_v0 }
 0x16c   : > { %v548_v30 = vpop.xlane.xlu0 %547 }
 0x16d   : > { %v552_v31 = vmul.f32 0.0078125, %v548_v30 }
 0x16e   : > { %v557_v32 = vpop.xlane.xlu1 %556 }
 0x16f   : > { %v562_v33 = vmul.f32 %v552_v31, %v552_v31  ;;  %v560_v34 = vmul.f32 0.0078125, %v557_v32  ;;  %v570_v44 = vsub.f32 %v5319_v1, %v552_v31  ;;  %v5400_v32 = vsub.s32 %v910_v22, %v5349_v58 }
 0x170   : > { %v550_v35 = vpop.xlane.xlu0 %549 }
 0x171   : > { %v564_v36 = vsub.f32 %v560_v34, %v562_v33  ;;  %v553_v37 = vmul.f32 0.0078125, %v550_v35 }
 0x172   : > { %v559_v38 = vpop.xlane.xlu1 %558 }
 0x173   : > { %v566_v39 = vadd.f32 1e-05, %v564_v36  ;;  %v563_v40 = vmul.f32 %v553_v37, %v553_v37  ;;  %v561_v41 = vmul.f32 0.0078125, %v559_v38  ;;  %v571_v48 = vsub.f32 %v5322_v2, %v553_v37 }
 0x175   : > { %4589 = vrsqrt.f32 %v566_v39  ;;  %v565_v42 = vsub.f32 %v561_v41, %v563_v40 }
 0x177   : > { %v567_v43 = vadd.f32 1e-05, %v565_v42 }
 0x179   : > { %4591 = vrsqrt.f32 %v567_v43 }
 0x17f   : > { %v4590_v45 = vpop.eup %4589 }
 0x180   : > { %v572_v46 = vmul.f32 %v4590_v45, %v570_v44 }
 0x182   : > { %v581_v51 = vmul.f32 %v3950_v47, %v572_v46 }
 0x183   : > { %v4592_v49 = vpop.eup %4591 }
 0x184   : > { %v573_v50 = vmul.f32 %v4592_v49, %v571_v48  ;;  %v590_v54 = vadd.f32 %v3951_v52, %v581_v51 }
 0x186   : > { %v582_v53 = vmul.f32 %v3950_v47, %v573_v50 }
 0x188   : > { %v591_v55 = vadd.f32 %v3951_v52, %v582_v53 }
 0x18a   : > { %v592_v56 = vpack.c.bf16 %v591_v55, %v590_v54 }
 0x18c   : > { %803 = vmatmul.mubr.bf16.vlgmr.msra.gmra.mrb[0].mxu0 %v592_v56  ;;  %4210 = vmatmul.mubr.bf16.vlgmr.msra.gmra.mrb[0].mxu1 %v592_v56 }
 0x18d   : > { %4215 = vmatprep.mubr.msk.bf16.mxu1 %vm4958_vm0, %v4956_v0  ;;  %4239 = vmatprep.mubr.msk.bf16.mxu0 %vm4958_vm0, %v4956_v0 }
 0x25f   : > { %v804_v63 = vpop.f32.mrb[0].mxu0  ;;  %v5361_v1 = vpop.f32.mrb[0].mxu1 }
 0x260   : > { %v5363_v2 = vadd.f32 %v804_v63, %v630_v61  ;;  %v806_v4 = vpop.f32.mrb[1].mxu0  ;;  %v4211_v5 = vpop.f32.mrb[1].mxu1 }
 0x261   : > { %v808_v6 = vpop.f32.mrb[2].mxu0  ;;  %v5368_v7 = vpop.f32.mrb[2].mxu1  ;;  %v807_v10 = vadd.f32 %v806_v4, %v634_v3 }
 0x262   : > { %v810_v8 = vpop.f32.mrb[3].mxu0  ;;  %v4212_v9 = vpop.f32.mrb[3].mxu1  ;;  %862 = vrot.lane.b32.xlu0 %v5363_v2, %s4959_s29  ;;  %856 = vrot.lane.b32.xlu1 %v5363_v2, %s4960_s21  ;;  %v5385_v12 = vadd.f32 %v808_v6, %v630_v61 }
 0x263   : > { %v5376_v11 = vadd.f32 %v810_v8, %v634_v3 }
 0x266   : > { %1156 = vrot.lane.b32.xlu0 %v807_v10, %s4960_s21  ;;  %1162 = vrot.lane.b32.xlu1 %v807_v10, %s4959_s29 }
 0x26a   : > { %1158 = vrot.lane.b32.xlu0 %v5376_v11, %s4960_s21  ;;  %1168 = vrot.lane.b32.xlu1 %v807_v10, %s4961_s22 }
 0x26e   : > { %1170 = vrot.lane.b32.xlu0 %v5376_v11, %s4961_s22  ;;  %868 = vrot.lane.b32.xlu1 %v5363_v2, %s4961_s22 }
 0x272   : > { %864 = vrot.lane.b32.xlu0 %v5385_v12, %s4959_s29  ;;  %1164 = vrot.lane.b32.xlu1 %v5376_v11, %s4959_s29 }
 0x276   : > { %858 = vrot.lane.b32.xlu1 %v5385_v12, %s4960_s21 }
 0x27a   : > { %870 = vrot.lane.b32.xlu1 %v5385_v12, %s4961_s22 }
 0x2d4   : > { %v863_v15 = vpop.permute.xlu0 %862  ;;  %v857_v16 = vpop.permute.xlu1 %856 }
 0x2d5   : > { %v874_v27 = vcombine.low %v5363_v2, %v863_v15  ;;  %v875_v37 = vcombine.high %v5363_v2, %v863_v15 }
 0x2d7   : > { %v882_v38 = vrot.slane %v874_v27, %v5396_v25  ;;  %v889_v53 = vrot.slane %v875_v37, %v5396_v25 }
 0x2d8   : > { %v1157_v20 = vpop.permute.xlu0 %1156  ;;  %v1163_v21 = vpop.permute.xlu1 %1162 }
 0x2d9   : > { %v1174_v23 = vcombine.low %v807_v10, %v1163_v21  ;;  %v1175_v24 = vcombine.high %v807_v10, %v1163_v21 }
 0x2db   : > { %v1182_v33 = vrot.slane %v1174_v23, %v5396_v25  ;;  %v1189_v34 = vrot.slane %v1175_v24, %v5396_v25 }
 0x2dc   : > { %v1159_v28 = vpop.permute.xlu0 %1158  ;;  %v1169_v29 = vpop.permute.xlu1 %1168 }
 0x2dd   : > { %v1190_v30 = vcombine.low %v1157_v20, %v1169_v29  ;;  %v1191_v31 = vcombine.high %v1157_v20, %v1169_v29 }
 0x2df   : > { %v1198_v35 = vrot.slane %v1190_v30, %v5396_v25  ;;  %v1205_v36 = vrot.slane %v1191_v31, %v5396_v25 }
 0x2e0   : > { %v1171_v39 = vpop.permute.xlu0 %1170  ;;  %v869_v40 = vpop.permute.xlu1 %868 }
 0x2e1   : > { %v1206_v41 = vcombine.low %v1182_v33, %v1198_v35  ;;  %v1207_v42 = vcombine.high %v1182_v33, %v1198_v35  ;;  %v1222_v43 = vcombine.low %v1189_v34, %v1205_v36  ;;  %v1223_v44 = vcombine.high %v1189_v34, %v1205_v36 }
 0x2e2   : > { %v1258_v45 = vcombine.low %v1159_v28, %v1171_v39  ;;  %v1259_v46 = vcombine.high %v1159_v28, %v1171_v39  ;;  %v890_v47 = vcombine.low %v857_v16, %v869_v40  ;;  %v891_v48 = vcombine.high %v857_v16, %v869_v40 }
 0x2e3   : > { %v1214_v49 = vrot.slane %v1206_v41, %v5400_v32  ;;  %v1221_v50 = vrot.slane %v1207_v42, %v5400_v32  ;;  %v1230_v51 = vrot.slane %v1222_v43, %v5400_v32  ;;  %v1237_v52 = vrot.slane %v1223_v44, %v5400_v32 }
 0x2e4   : > { %v1266_v54 = vrot.slane %v1258_v45, %v5396_v25  ;;  %v898_v55 = vrot.slane %v890_v47, %v5396_v25  ;;  %v905_v56 = vrot.slane %v891_v48, %v5396_v25  ;;  %v1165_v61 = vpop.permute.xlu1 %1164  ;;  %v1273_v4 = vrot.slane %v1259_v46, %v5396_v25  ;;  %v865_v10 = vpop.permute.xlu0 %864 }
 0x2e5   : > { %v1310_v63 = vcombine.low %v1214_v49, %v1221_v50  ;;  %v3980_v2 = vcombine.high %v1214_v49, %v1221_v50  ;;  %v1326_v3 = vcombine.low %v1230_v51, %v1237_v52  ;;  %v3981_v16 = vcombine.high %v1230_v51, %v1237_v52 }
 0x2e6   : > { %v906_v5 = vcombine.low %v882_v38, %v898_v55  ;;  %v907_v6 = vcombine.high %v882_v38, %v898_v55  ;;  %v922_v8 = vcombine.low %v889_v53, %v905_v56  ;;  %v923_v9 = vcombine.high %v889_v53, %v905_v56 }
 0x2e7   : > { %v5418_v13 = vrot.slane %v1310_v63, %v5396_v25  ;;  %v5421_v14 = vrot.slane %v3980_v2, %v5396_v25  ;;  %v5424_v15 = vrot.slane %v1326_v3, %v5396_v25  ;;  %v942_v22 = vcombine.low %v5385_v12, %v865_v10 }
 0x2e8   : > { %v914_v17 = vrot.slane %v906_v5, %v5400_v32  ;;  %v921_v18 = vrot.slane %v907_v6, %v5400_v32  ;;  %v930_v19 = vrot.slane %v922_v8, %v5400_v32  ;;  %v937_v20 = vrot.slane %v923_v9, %v5400_v32  ;;  %v859_v21 = vpop.permute.xlu1 %858 }
 0x2e9   : > { %v943_v23 = vcombine.high %v5385_v12, %v865_v10  ;;  %v1242_v24 = vcombine.low %v5376_v11, %v1165_v61  ;;  %v1243_v27 = vcombine.high %v5376_v11, %v1165_v61  ;;  %v1341_v33 = vrot.slane %v3981_v16, %v5396_v25 }
 0x2ea   : > { %v1010_v28 = vcombine.low %v914_v17, %v921_v18  ;;  %v3976_v29 = vcombine.high %v914_v17, %v921_v18  ;;  %v1026_v30 = vcombine.low %v930_v19, %v937_v20  ;;  %v3977_v31 = vcombine.high %v930_v19, %v937_v20 }
 0x2eb   : > { %v950_v34 = vrot.slane %v942_v22, %v5396_v25  ;;  %v1250_v35 = vrot.slane %v1242_v24, %v5396_v25  ;;  %v1257_v36 = vrot.slane %v1243_v27, %v5396_v25  ;;  %v957_v47 = vrot.slane %v943_v23, %v5396_v25 }
 0x2ec   : > { %v5439_v37 = vrot.slane %v1010_v28, %v5396_v25  ;;  %v5442_v12 = vrot.slane %v3976_v29, %v5396_v25  ;;  %v5445_v11 = vrot.slane %v1026_v30, %v5396_v25  ;;  %v5448_v38 = vrot.slane %v3977_v31, %v5396_v25  ;;  %v871_v43 = vpop.permute.xlu1 %870 }
 0x2ed   : > { %v1274_v39 = vcombine.low %v1250_v35, %v1266_v54  ;;  %v1275_v40 = vcombine.high %v1250_v35, %v1266_v54  ;;  %v1290_v41 = vcombine.low %v1257_v36, %v1273_v4  ;;  %v1291_v42 = vcombine.high %v1257_v36, %v1273_v4 }
 0x2ee   : > { %v1042_v44 = vcombine.low %v5439_v37, %v5442_v12  ;;  %v1043_v45 = vcombine.high %v5439_v37, %v5442_v12  ;;  %v1058_v46 = vcombine.low %v5445_v11, %v5448_v38  ;;  %v958_v52 = vcombine.low %v859_v21, %v871_v43 }
 0x2ef   : > { %v1282_v48 = vrot.slane %v1274_v39, %v5400_v32  ;;  %v1289_v49 = vrot.slane %v1275_v40, %v5400_v32  ;;  %v1298_v50 = vrot.slane %v1290_v41, %v5400_v32  ;;  %v1305_v51 = vrot.slane %v1291_v42, %v5400_v32 }
 0x2f0   : > { %v959_v53 = vcombine.high %v859_v21, %v871_v43  ;;  %v1342_v54 = vcombine.low %v5418_v13, %v5421_v14  ;;  %v1358_v55 = vcombine.low %v5424_v15, %v1341_v33  ;;  %v1059_v56 = vcombine.high %v5445_v11, %v5448_v38 }
 0x2f1   : > { %v1378_v61 = vcombine.low %v1282_v48, %v1289_v49  ;;  %v3982_v63 = vcombine.high %v1282_v48, %v1289_v49  ;;  %v1394_v2 = vcombine.low %v1298_v50, %v1305_v51  ;;  %v966_v3 = vrot.slane %v958_v52, %v5396_v25 }
 0x2f2   : > { %v973_v4 = vrot.slane %v959_v53, %v5396_v25  ;;  %v5469_v5 = vrot.slane %v1342_v54, %v5400_v32  ;;  %v1366_v6 = vrot.slane %v1358_v55, %v5400_v32  ;;  %v3983_v16 = vcombine.high %v1298_v50, %v1305_v51 }
 0x2f3   : > { %v5473_v8 = vrot.slane %v1378_v61, %v5396_v25  ;;  %v5476_v9 = vrot.slane %v3982_v63, %v5396_v25  ;;  %v5479_v10 = vrot.slane %v1394_v2, %v5396_v25  ;;  %v974_v17 = vcombine.low %v950_v34, %v966_v3 }
 0x2f4   : > { %v975_v18 = vcombine.high %v950_v34, %v966_v3  ;;  %v990_v19 = vcombine.low %v957_v47, %v973_v4  ;;  %v991_v20 = vcombine.high %v957_v47, %v973_v4  ;;  %v1374_v21 = vcombine.low %v5469_v5, %v1366_v6 }
 0x2f5   : > { %v1343_v22 = vcombine.high %v5418_v13, %v5421_v14  ;;  %v1359_v23 = vcombine.high %v5424_v15, %v1341_v33  ;;  %v5486_v24 = vrot.slane %v1042_v44, %v5400_v32  ;;  %v982_v27 = vrot.slane %v974_v17, %v5400_v32 }
 0x2f6   : > { %v989_v28 = vrot.slane %v975_v18, %v5400_v32  ;;  %v998_v29 = vrot.slane %v990_v19, %v5400_v32  ;;  %v1005_v30 = vrot.slane %v991_v20, %v5400_v32  ;;  %v1446_v31 = vpack.c.bf16 %v1374_v21, %v1374_v21 }
 0x2f7   : > { %v1357_v34 = vrot.slane %v1343_v22, %v5400_v32  ;;  %v1373_v35 = vrot.slane %v1359_v23, %v5400_v32  ;;  %v1066_v13 = vrot.slane %v1058_v46, %v5400_v32  ;;  %v1409_v37 = vrot.slane %v3983_v16, %v5396_v25 }
 0x2f8   : > { %v1078_v14 = vcombine.low %v982_v27, %v989_v28  ;;  %v3978_v15 = vcombine.high %v982_v27, %v989_v28  ;;  %v1094_v33 = vcombine.low %v998_v29, %v1005_v30  ;;  %v3979_v36 = vcombine.high %v998_v29, %v1005_v30 }
 0x2f9   : > { %v1759_v12 = vsel %vm1754_vm1, %v1446_v31, 0  ;;  %v1376_v11 = vcombine.low %v1357_v34, %v1373_v35  ;;  %v1074_v38 = vcombine.low %v5486_v24, %v1066_v13  ;;  %v1057_v44 = vrot.slane %v1043_v45, %v5400_v32 }
 0x2fa   : > { %v5499_v39 = vrot.slane %v1078_v14, %v5396_v25  ;;  %v5502_v40 = vrot.slane %v3978_v15, %v5396_v25  ;;  %v5505_v41 = vrot.slane %v1094_v33, %v5396_v25  ;;  %v5508_v42 = vrot.slane %v3979_v36, %v5396_v25  ;;  %4214 = vmatpush3.bf16.xpose.msra.mxu1 %v1759_v12 }
 0x2fb   : > { %v1450_v43 = vpack.c.bf16 %v1376_v11, %v1376_v11  ;;  %4219 = vmatprep.subr.bf16.mxu1 %v4956_v0  ;;  %v1073_v46 = vrot.slane %v1059_v56, %v5400_v32  ;;  %v1410_v47 = vcombine.low %v5473_v8, %v5476_v9  ;;  %v1426_v52 = vcombine.low %v5479_v10, %v1409_v37 }
 0x2fc   : > { %v1110_v48 = vcombine.low %v5499_v39, %v5502_v40  ;;  %v1126_v49 = vcombine.low %v5505_v41, %v5508_v42  ;;  %v1377_v53 = vcombine.high %v1357_v34, %v1373_v35  ;;  %v1146_v45 = vpack.c.bf16 %v1074_v38, %v1074_v38 }
 0x2fd   : > { %v1943_v50 = vsel %vm1754_vm1, %v1450_v43, 0  ;;  %v1418_v51 = vrot.slane %v1410_v47, %v5400_v32  ;;  %v1076_v54 = vcombine.low %v1057_v44, %v1073_v46  ;;  %v1434_v55 = vrot.slane %v1426_v52, %v5400_v32 }
 0x2fe   : > { %4238 = vmatpush3.bf16.xpose.msra.mxu0 %v1943_v50  ;;  %v1452_v61 = vpack.c.bf16 %v1377_v53, %v1377_v53  ;;  %v1118_v63 = vrot.slane %v1110_v48, %v5400_v32  ;;  %v1134_v2 = vrot.slane %v1126_v49, %v5400_v32  ;;  %v1375_v19 = vcombine.high %v5469_v5, %v1366_v6 }
 0x2ff   : > { %4249 = vmatprep.subr.bf16.mxu0 %v4956_v0  ;;  %v1442_v56 = vcombine.low %v1418_v51, %v1434_v55  ;;  %v1150_v3 = vpack.c.bf16 %v1076_v54, %v1076_v54  ;;  %v1077_v20 = vcombine.high %v1057_v44, %v1073_v46  ;;  %v1443_v5 = vcombine.high %v1418_v51, %v1434_v55 }
 0x300   : > { %v2035_v17 = vsel %vm1754_vm1, %v1452_v61, 0  ;;  %v1142_v18 = vcombine.low %v1118_v63, %v1134_v2  ;;  %v1448_v22 = vpack.c.bf16 %v1375_v19, %v1375_v19  ;;  %v1411_v6 = vcombine.high %v5473_v8, %v5476_v9 }
 0x301   : > { %4216 = vmatmul.mubr.msk.bf16.vlgmr.msra.gmra.mrb[4].mxu1 %vm1754_vm1, %v1146_v45  ;;  %v1447_v4 = vpack.c.bf16 %v1442_v56, %v1442_v56  ;;  %v1152_v23 = vpack.c.bf16 %v1077_v20, %v1077_v20  ;;  %v1427_v28 = vcombine.high %v5479_v10, %v1409_v37  ;;  %v1075_v29 = vcombine.high %v5486_v24, %v1066_v13 }
 0x302   : > { %4221 = vmatprep.mubr.msk.bf16.mxu1 %vm4958_vm0, %v4956_v0  ;;  %v1147_v21 = vpack.c.bf16 %v1142_v18, %v1142_v18  ;;  %v1851_v27 = vsel %vm1754_vm1, %v1448_v22, 0  ;;  %v1449_v30 = vpack.c.bf16 %v1443_v5, %v1443_v5  ;;  %v1425_v31 = vrot.slane %v1411_v6, %v5400_v32 }
 0x303   : > { %v1805_v16 = vsel %vm1754_vm1, %v1447_v4, 0  ;;  %v1441_v34 = vrot.slane %v1427_v28, %v5400_v32  ;;  %v1148_v35 = vpack.c.bf16 %v1075_v29, %v1075_v29  ;;  %v1111_v10 = vcombine.high %v5499_v39, %v5502_v40 }
 0x304   : > { %4220 = vmatpush3.bf16.xpose.msra.mxu1 %v1805_v16  ;;  %v1897_v8 = vsel %vm1754_vm1, %v1449_v30, 0  ;;  %v1127_v24 = vcombine.high %v5505_v41, %v5508_v42  ;;  %v1143_v13 = vcombine.high %v1118_v63, %v1134_v2  ;;  %v2126_v43 = vand.u32 127, %v627_v57 }
 0x305   : > { %4240 = vmatmul.mubr.msk.bf16.vlgmr.msra.gmra.mrb[4].mxu0 %vm1754_vm1, %v1150_v3  ;;  %4225 = vmatprep.subr.bf16.mxu1 %v4956_v0  ;;  %v1444_v9 = vcombine.low %v1425_v31, %v1441_v34  ;;  %v1125_v33 = vrot.slane %v1111_v10, %v5400_v32  ;;  %v1445_v12 = vcombine.high %v1425_v31, %v1441_v34  ;;  %v637_v29 = vsub.s32 2, %v5349_v58 }
 0x306   : > { %4250 = vmatpush3.bf16.xpose.msra.mxu0 %v2035_v17  ;;  %4251 = vmatprep.mubr.msk.bf16.mxu0 %vm4958_vm0, %v4956_v0  ;;  %v1149_v15 = vpack.c.bf16 %v1143_v13, %v1143_v13  ;;  %v1141_v36 = vrot.slane %v1127_v24, %v5400_v32  ;;  %vm5577_vm2 = vcmp.gt.s32.totalorder %v2126_v43, %v5349_v58 }
 0x307   : > { %4261 = vmatprep.subr.bf16.mxu0 %v4956_v0  ;;  %v1451_v14 = vpack.c.bf16 %v1444_v9, %v1444_v9  ;;  %v1453_v38 = vpack.c.bf16 %v1445_v12, %v1445_v12  ;;  %v638_v30 = vrot.slane %v5355_v60, %v637_v29 }
 0x308   : > { %v1144_v11 = vcombine.low %v1125_v33, %v1141_v36  ;;  %v1145_v41 = vcombine.high %v1125_v33, %v1141_v36 }
 0x309   : > { %v1989_v37 = vsel %vm1754_vm1, %v1451_v14, 0  ;;  %v2081_v40 = vsel %vm1754_vm1, %v1453_v38, 0  ;;  %v5618_v13 = vadd.f32 %v5361_v1, %v638_v30 }
 0x30a   : > { %v1151_v39 = vpack.c.bf16 %v1144_v11, %v1144_v11  ;;  %v1153_v42 = vpack.c.bf16 %v1145_v41, %v1145_v41 }
 0x30b   : > { %4222 = vmatmul.mubr.msk.bf16.vlgmr.msra.gmra.mrb[8].mxu1 %vm1754_vm1, %v1147_v21 }
 0x30c   : > { %4226 = vmatpush3.bf16.xpose.msra.mxu1 %v1851_v27  ;;  %4227 = vmatprep.mubr.msk.bf16.mxu1 %vm4958_vm0, %v4956_v0 }
 0x30d   : > { %4252 = vmatmul.mubr.msk.bf16.vlgmr.msra.gmra.mrb[8].mxu0 %vm1754_vm1, %v1152_v23  ;;  %4231 = vmatprep.subr.bf16.mxu1 %v4956_v0 }
 0x30e   : > { %4263 = vmatprep.mubr.msk.bf16.mxu0 %vm4958_vm0, %v4956_v0 }
 0x313   : > { %4228 = vmatmul.mubr.msk.bf16.vlgmr.msra.gmra.mrb[12].mxu1 %vm1754_vm1, %v1148_v35 }
 0x314   : > { %4232 = vmatpush3.bf16.xpose.msra.mxu1 %v1897_v8  ;;  %4233 = vmatprep.mubr.msk.bf16.mxu1 %vm4958_vm0, %v4956_v0  ;;  %v5612_v8 = vadd.f32 %v5368_v7, %v638_v30 }
 0x315   : > { %4243 = vmatprep.subr.bf16.mxu1 %v4956_v0 }
 0x31b   : > { %4234 = vmatmul.mubr.msk.bf16.vlgmr.msra.gmra.mrb[16].mxu1 %vm1754_vm1, %v1149_v15 }
 0x31c   : > { %4244 = vmatpush3.bf16.xpose.msra.mxu1 %v1989_v37  ;;  %4245 = vmatprep.mubr.msk.bf16.mxu1 %vm4958_vm0, %v4956_v0 }
 0x31d   : > { %4255 = vmatprep.subr.bf16.mxu1 %v4956_v0 }
 0x323   : > { %4246 = vmatmul.mubr.msk.bf16.vlgmr.msra.gmra.mrb[20].mxu1 %vm1754_vm1, %v1151_v39 }
 0x324   : > { %4256 = vmatpush3.bf16.xpose.msra.mxu1 %v2081_v40  ;;  %4257 = vmatprep.mubr.msk.bf16.mxu1 %vm4958_vm0, %v4956_v0 }
 0x325   : > { %4267 = vmatprep.subr.bf16.mxu1 %v4956_v0 }
 0x32b   : > { %4258 = vmatmul.mubr.msk.bf16.vlgmr.msra.gmra.mrb[24].mxu1 %vm1754_vm1, %v1153_v42 }
 0x32c   : > { %4269 = vmatprep.mubr.msk.bf16.mxu1 %vm4958_vm0, %v4956_v0 }
 0x3d4   : > { %v1795_v46 = vpop.f32.mrb[4].mxu1 }
 0x3d5   : > { %v5583_v47 = vsel %vm5577_vm2, -inf, %v1795_v46  ;;  %v4217_v48 = vpop.f32.mrb[5].mxu1 }
 0x3d6   : > { %v1798_v49 = vpop.f32.mrb[6].mxu1  ;;  %v2139_v50 = vsel %vm2138_vm3, %v5583_v47, -inf }
 0x3d7   : > { %2140 = vmax.xlane.f32.xlu0 %v2139_v50  ;;  %v4218_v51 = vpop.f32.mrb[7].mxu1 }
 0x3d8   : > { %v1979_v52 = vpop.f32.mrb[4].mxu0 }
 0x3d9   : > { %v5589_v57 = vsel %vm5577_vm2, -inf, %v1979_v52  ;;  %v4241_v53 = vpop.f32.mrb[5].mxu0 }
 0x3da   : > { %v1982_v45 = vpop.f32.mrb[6].mxu0  ;;  %v2151_v54 = vsel %vm2138_vm3, %v5589_v57, -inf }
 0x3db   : > { %v4242_v55 = vpop.f32.mrb[7].mxu0  ;;  %2152 = vmax.xlane.f32.xlu0 %v2151_v54 }
 0x3de   : > { %v1841_v56 = vpop.f32.mrb[8].mxu1 }
 0x3df   : > { %v2131_v63 = vsel %vm5577_vm2, -inf, %v1841_v56  ;;  %v4223_v3 = vpop.f32.mrb[9].mxu1 }
 0x3e0   : > { %v2071_v61 = vpop.f32.mrb[8].mxu0  ;;  %v1844_v16 = vpop.f32.mrb[10].mxu1  ;;  %v2142_v19 = vsel %vm2138_vm3, %v2131_v63, -inf }
 0x3e1   : > { %v5597_v2 = vsel %vm5577_vm2, -inf, %v2071_v61  ;;  %v4253_v4 = vpop.f32.mrb[9].mxu0  ;;  %2143 = vmax.xlane.f32.xlu1 %v2142_v19  ;;  %v4224_v21 = vpop.f32.mrb[11].mxu1 }
 0x3e2   : > { %v2074_v17 = vpop.f32.mrb[10].mxu0  ;;  %v2157_v18 = vsel %vm2138_vm3, %v5597_v2, -inf }
 0x3e3   : > { %v4254_v20 = vpop.f32.mrb[11].mxu0  ;;  %2158 = vmax.xlane.f32.xlu0 %v2157_v18 }
 0x3e6   : > { %v1887_v22 = vpop.f32.mrb[12].mxu1 }
 0x3e7   : > { %v2132_v23 = vsel %vm5577_vm2, -inf, %v1887_v22  ;;  %v4229_v27 = vpop.f32.mrb[13].mxu1 }
 0x3e8   : > { %v1890_v5 = vpop.f32.mrb[14].mxu1  ;;  %v2145_v6 = vsel %vm2138_vm3, %v2132_v23, -inf }
 0x3e9   : > { %2146 = vmax.xlane.f32.xlu0 %v2145_v6  ;;  %v4230_v28 = vpop.f32.mrb[15].mxu1 }
 0x3ee   : > { %v1933_v31 = vpop.f32.mrb[16].mxu1 }
 0x3ef   : > { %v2133_v34 = vsel %vm5577_vm2, -inf, %v1933_v31  ;;  %v4235_v35 = vpop.f32.mrb[17].mxu1 }
 0x3f0   : > { %v1936_v9 = vpop.f32.mrb[18].mxu1  ;;  %v2148_v10 = vsel %vm2138_vm3, %v2133_v34, -inf }
 0x3f1   : > { %2149 = vmax.xlane.f32.xlu0 %v2148_v10  ;;  %v4236_v24 = vpop.f32.mrb[19].mxu1 }
 0x3f2   : > { %1458 = vrot.lane.b32.xlu1 %v5612_v8, %s4960_s21 }
 0x3f6   : > { %1462 = vrot.lane.b32.xlu1 %v5618_v13, %s4959_s29  ;;  %v2025_v60 = vpop.f32.mrb[20].mxu1 }
 0x3f7   : > { %v2135_v14 = vsel %vm5577_vm2, -inf, %v2025_v60  ;;  %v4247_v7 = vpop.f32.mrb[21].mxu1 }
 0x3f8   : > { %v2028_v15 = vpop.f32.mrb[22].mxu1  ;;  %v2154_v1 = vsel %vm2138_vm3, %v2135_v14, -inf }
 0x3f9   : > { %v4248_v33 = vpop.f32.mrb[23].mxu1 }
 0x3fe   : > { %v2117_v36 = vpop.f32.mrb[24].mxu1 }
 0x3ff   : > { %v2137_v37 = vsel %vm5577_vm2, -inf, %v2117_v36  ;;  %v4259_v12 = vpop.f32.mrb[25].mxu1 }
 0x400   : > { %v2120_v11 = vpop.f32.mrb[26].mxu1  ;;  %v2160_v39 = vsel %vm2138_vm3, %v2137_v37, -inf }
 0x401   : > { %v4260_v38 = vpop.f32.mrb[27].mxu1 }
 0x407   : > { %1456 = vrot.lane.b32.xlu0 %v5618_v13, %s4960_s21 }
 0x41a   : > { %2155 = vmax.xlane.f32.xlu1 %v2154_v1 }
 0x41e   : > { %2161 = vmax.xlane.f32.xlu1 %v2160_v39 }
 0x42f   : > { %1464 = vrot.lane.b32.xlu1 %v5612_v8, %s4959_s29 }
 0x464   : > { %v2141_v40 = vpop.xlane.xlu0 %2140 }
 0x465   : > { %v2163_v41 = vsub.f32 %v5583_v47, %v2141_v40 }
 0x467   : > { %v2171_v42 = vmul.f32 1.442695, %v2163_v41 }
 0x468   : > { %v2153_v52 = vpop.xlane.xlu0 %2152 }
 0x469   : > { %4593 = vpow2.f32 %v2171_v42  ;;  %v2167_v54 = vsub.f32 %v5589_v57, %v2153_v52 }
 0x46b   : > { %v2179_v56 = vmul.f32 1.442695, %v2167_v54 }
 0x46e   : > { %v2144_v43 = vpop.xlane.xlu1 %2143 }
 0x46f   : > { %v2164_v44 = vsub.f32 %v2131_v63, %v2144_v43 }
 0x470   : > { %v2159_v47 = vpop.xlane.xlu0 %2158 }
 0x471   : > { %v2173_v48 = vmul.f32 1.442695, %v2164_v44  ;;  %v2169_v18 = vsub.f32 %v5597_v2, %v2159_v47 }
 0x472   : > { %v5646_v63 = vpop.permute.xlu1 %1458 }
 0x473   : > { %v5633_v46 = vpop.eup %4593  ;;  %4595 = vpow2.f32 %v2173_v48  ;;  %v2183_v22 = vmul.f32 1.442695, %v2169_v18 }
 0x474   : > { %v2187_v49 = vsel %vm2138_vm3, %v5633_v46, 0.0 }
 0x475   : > { %2188 = vadd.xlane.f32.xlu0 %v2187_v49 }
 0x476   : > { %v2147_v53 = vpop.xlane.xlu0 %2146  ;;  %v1463_v4 = vpop.permute.xlu1 %1462 }
 0x477   : > { %v2165_v45 = vsub.f32 %v2132_v23, %v2147_v53  ;;  %v1474_v7 = vcombine.low %v5618_v13, %v1463_v4  ;;  %v1475_v15 = vcombine.high %v5618_v13, %v1463_v4 }
 0x479   : > { %v2175_v55 = vmul.f32 1.442695, %v2165_v45  ;;  %v1482_v12 = vrot.slane %v1474_v7, %v5396_v25  ;;  %v1489_v11 = vrot.slane %v1475_v15, %v5396_v25 }
 0x47b   : > { %4597 = vpow2.f32 %v2175_v55 }
 0x47c   : > { %4599 = vpow2.f32 %v2179_v56 }
 0x47d   : > { %v5637_v50 = vpop.eup %4595 }
 0x47e   : > { %v2190_v51 = vsel %vm2138_vm3, %v5637_v50, 0.0  ;;  %v2150_v61 = vpop.xlane.xlu0 %2149 }
 0x47f   : > { %2191 = vadd.xlane.f32.xlu1 %v2190_v51  ;;  %v2166_v3 = vsub.f32 %v2133_v34, %v2150_v61 }
 0x481   : > { %v2177_v16 = vmul.f32 1.442695, %v2166_v3 }
 0x482   : > { %v1457_v60 = vpop.permute.xlu0 %1456 }
 0x483   : > { %4601 = vpow2.f32 %v2177_v16 }
 0x485   : > { %v5648_v17 = vpop.eup %4597 }
 0x486   : > { %v2193_v20 = vsel %vm2138_vm3, %v5648_v17, 0.0  ;;  %v5653_v57 = vpop.eup %4599 }
 0x487   : > { %v2199_v5 = vsel %vm2138_vm3, %v5653_v57, 0.0 }
 0x48b   : > { %1468 = vrot.lane.b32.xlu0 %v5618_v13, %s4961_s22 }
 0x48d   : > { %v5657_v28 = vpop.eup %4601 }
 0x48e   : > { %v2196_v30 = vsel %vm2138_vm3, %v5657_v28, 0.0 }
 0x490   : > { %1470 = vrot.lane.b32.xlu1 %v5612_v8, %s4961_s22 }
 0x4a7   : > { %v2156_v19 = vpop.xlane.xlu1 %2155 }
 0x4a8   : > { %v2168_v21 = vsub.f32 %v2135_v14, %v2156_v19 }
 0x4aa   : > { %2194 = vadd.xlane.f32.xlu0 %v2193_v20  ;;  %v2181_v23 = vmul.f32 1.442695, %v2168_v21 }
 0x4ab   : > { %v2162_v27 = vpop.xlane.xlu1 %2161 }
 0x4ac   : > { %4603 = vpow2.f32 %v2181_v23  ;;  %v2170_v6 = vsub.f32 %v2137_v37, %v2162_v27 }
 0x4ad   : > { %4605 = vpow2.f32 %v2183_v22 }
 0x4ae   : > { %2200 = vadd.xlane.f32.xlu0 %v2199_v5  ;;  %v2185_v2 = vmul.f32 1.442695, %v2170_v6 }
 0x4af   : > { %v1465_v39 = vpop.permute.xlu1 %1464 }
 0x4b0   : > { %4607 = vpow2.f32 %v2185_v2  ;;  %v1542_v3 = vcombine.low %v5612_v8, %v1465_v39  ;;  %v1543_v4 = vcombine.high %v5612_v8, %v1465_v39 }
 0x4b2   : > { %v1550_v5 = vrot.slane %v1542_v3, %v5396_v25  ;;  %v1557_v8 = vrot.slane %v1543_v4, %v5396_v25 }
 0x4b4   : > { %2197 = vadd.xlane.f32.xlu1 %v2196_v30 }
 0x4b6   : > { %v5661_v31 = vpop.eup %4603 }
 0x4b7   : > { %v2202_v34 = vsel %vm2138_vm3, %v5661_v31, 0.0  ;;  %v5665_v35 = vpop.eup %4605 }
 0x4b8   : > { %2203 = vadd.xlane.f32.xlu0 %v2202_v34  ;;  %v2205_v10 = vsel %vm2138_vm3, %v5665_v35, 0.0 }
 0x4ba   : > { %v5667_v9 = vpop.eup %4607 }
 0x4bb   : > { %v2208_v24 = vsel %vm2138_vm3, %v5667_v9, 0.0 }
 0x4bc   : > { %2206 = vadd.xlane.f32.xlu0 %v2205_v10  ;;  %2209 = vadd.xlane.f32.xlu1 %v2208_v24 }
 0x502   : > { %v2189_v14 = vpop.xlane.xlu0 %2188 }
 0x503   : > { %4609 = vrcp.f32 %v2189_v14 }
 0x506   : > { %v1469_v33 = vpop.permute.xlu0 %1468 }
 0x507   : > { %v1490_v36 = vcombine.low %v1457_v60, %v1469_v33  ;;  %v1491_v37 = vcombine.high %v1457_v60, %v1469_v33 }
 0x509   : > { %v1498_v38 = vrot.slane %v1490_v36, %v5396_v25  ;;  %v1505_v1 = vrot.slane %v1491_v37, %v5396_v25 }
 0x50b   : > { %v1506_v40 = vcombine.low %v1482_v12, %v1498_v38  ;;  %v1507_v41 = vcombine.high %v1482_v12, %v1498_v38  ;;  %v1522_v42 = vcombine.low %v1489_v11, %v1505_v1  ;;  %v1523_v43 = vcombine.high %v1489_v11, %v1505_v1 }
 0x50c   : > { %v2192_v45 = vpop.xlane.xlu1 %2191 }
 0x50d   : > { %v1514_v44 = vrot.slane %v1506_v40, %v5400_v32  ;;  %v1521_v13 = vrot.slane %v1507_v41, %v5400_v32  ;;  %v1530_v48 = vrot.slane %v1522_v42, %v5400_v32  ;;  %v1537_v49 = vrot.slane %v1523_v43, %v5400_v32  ;;  %v4610_v27 = vpop.eup %4609 }
 0x50e   : > { %v2219_v14 = vmul.f32 %v4610_v27, %v5633_v46  ;;  %4611 = vrcp.f32 %v2192_v45 }
 0x50f   : > { %v1610_v51 = vcombine.low %v1514_v44, %v1521_v13  ;;  %v3984_v52 = vcombine.high %v1514_v44, %v1521_v13  ;;  %v1626_v47 = vcombine.low %v1530_v48, %v1537_v49  ;;  %v3985_v53 = vcombine.high %v1530_v48, %v1537_v49 }
 0x510   : > { %v1471_v16 = vpop.permute.xlu1 %1470  ;;  %v2227_v41 = vpack.c.bf16 %v2219_v14, %v2219_v14 }
 0x511   : > { %v5684_v54 = vrot.slane %v1610_v51, %v5396_v25  ;;  %v5687_v55 = vrot.slane %v3984_v52, %v5396_v25  ;;  %v5690_v56 = vrot.slane %v1626_v47, %v5396_v25  ;;  %v5693_v61 = vrot.slane %v3985_v53, %v5396_v25 }
 0x512   : > { %v1558_v20 = vcombine.low %v5646_v63, %v1471_v16  ;;  %v1559_v21 = vcombine.high %v5646_v63, %v1471_v16 }
 0x513   : > { %v1642_v18 = vcombine.low %v5684_v54, %v5687_v55  ;;  %v1658_v19 = vcombine.low %v5690_v56, %v5693_v61 }
 0x514   : > { %v1566_v6 = vrot.slane %v1558_v20, %v5396_v25  ;;  %v1573_v2 = vrot.slane %v1559_v21, %v5396_v25 }
 0x515   : > { %v1650_v22 = vrot.slane %v1642_v18, %v5400_v32  ;;  %v1666_v23 = vrot.slane %v1658_v19, %v5400_v32 }
 0x516   : > { %v1574_v10 = vcombine.low %v1550_v5, %v1566_v6  ;;  %v1575_v24 = vcombine.high %v1550_v5, %v1566_v6  ;;  %v1590_v60 = vcombine.low %v1557_v8, %v1573_v2  ;;  %v1591_v63 = vcombine.high %v1557_v8, %v1573_v2 }
 0x517   : > { %v1674_v30 = vcombine.low %v1650_v22, %v1666_v23  ;;  %v1675_v34 = vcombine.high %v1650_v22, %v1666_v23  ;;  %v1659_v22 = vcombine.high %v5690_v56, %v5693_v61 }
 0x518   : > { %v1582_v15 = vrot.slane %v1574_v10, %v5400_v32  ;;  %v1589_v33 = vrot.slane %v1575_v24, %v5400_v32  ;;  %v1598_v36 = vrot.slane %v1590_v60, %v5400_v32  ;;  %v1605_v37 = vrot.slane %v1591_v63, %v5400_v32  ;;  %v4612_v47 = vpop.eup %4611 }
 0x519   : > { %v1746_v7 = vpack.c.bf16 %v1674_v30, %v1674_v30  ;;  %v1748_v11 = vpack.c.bf16 %v1675_v34, %v1675_v34  ;;  %v2220_v3 = vmul.f32 %v4612_v47, %v5637_v50  ;;  %v1643_v50 = vcombine.high %v5684_v54, %v5687_v55  ;;  %v4503_v47 = vld [vmem:[#allocation10 + $0x10] sm:$0xff]  }
 0x51a   : > { %v1678_v38 = vcombine.low %v1582_v15, %v1589_v33  ;;  %v3986_v1 = vcombine.high %v1582_v15, %v1589_v33  ;;  %v1694_v39 = vcombine.low %v1598_v36, %v1605_v37  ;;  %v3987_v40 = vcombine.high %v1598_v36, %v1605_v37 }
 0x51b   : > { %v2240_v12 = vsel %vm2238_vm4, %v1746_v7, 0  ;;  %v2332_v13 = vsel %vm2238_vm4, %v1748_v11, 0  ;;  %v2228_v19 = vpack.c.bf16 %v2220_v3, %v2220_v3  ;;  %v1657_v27 = vrot.slane %v1643_v50, %v5400_v32 }
 0x51c   : > { %4262 = vmatpush3.bf16.msra.mxu0 %v2240_v12  ;;  %v1685_v46 = vrot.slane %v1678_v38, %v5396_v25  ;;  %v1693_v42 = vrot.slane %v3986_v1, %v5396_v25  ;;  %v1701_v43 = vrot.slane %v1694_v39, %v5396_v25  ;;  %v1709_v44 = vrot.slane %v3987_v40, %v5396_v25 }
 0x51d   : > { %4273 = vmatprep.subr.bf16.mxu0 %v4956_v0  ;;  %v1673_v5 = vrot.slane %v1659_v22, %v5400_v32 }
 0x51e   : > { %v1710_v48 = vcombine.low %v1685_v46, %v1693_v42  ;;  %v1726_v49 = vcombine.low %v1701_v43, %v1709_v44  ;;  %v1711_v10 = vcombine.high %v1685_v46, %v1693_v42  ;;  %v1727_v24 = vcombine.high %v1701_v43, %v1709_v44 }
 0x51f   : > { %4264 = vmatmul.mubr.msk.bf16.vlgmr.msra.gmra.mrb[12].mxu0 %vm2138_vm3, %v2227_v41  ;;  %v1676_v8 = vcombine.low %v1657_v27, %v1673_v5  ;;  %v1677_v61 = vcombine.high %v1657_v27, %v1673_v5 }
 0x520   : > { %4274 = vmatpush3.bf16.msra.mxu0 %v2332_v13  ;;  %4275 = vmatprep.mubr.msk.bf16.mxu0 %vm4958_vm0, %v4956_v0  ;;  %v1718_v51 = vrot.slane %v1710_v48, %v5400_v32  ;;  %v1734_v52 = vrot.slane %v1726_v49, %v5400_v32  ;;  %v1725_v63 = vrot.slane %v1711_v10, %v5400_v32 }
 0x521   : > { %4285 = vmatprep.subr.bf16.mxu0 %v4956_v0  ;;  %v1750_v30 = vpack.c.bf16 %v1676_v8, %v1676_v8  ;;  %v1752_v15 = vpack.c.bf16 %v1677_v61, %v1677_v61 }
 0x522   : > { %v1742_v53 = vcombine.low %v1718_v51, %v1734_v52  ;;  %v1743_v45 = vcombine.high %v1718_v51, %v1734_v52  ;;  %v4501_v51 = vld [vmem:[#allocation10] sm:$0xff]   ;;  %v4502_v52 = vld [vmem:[#allocation10 + $0x8] sm:$0xff]  }
 0x523   : > { %v2424_v56 = vsel %vm2238_vm4, %v1750_v30, 0  ;;  %v2516_v11 = vsel %vm2238_vm4, %v1752_v15, 0 }
 0x524   : > { %v1747_v4 = vpack.c.bf16 %v1742_v53, %v1742_v53  ;;  %v1749_v18 = vpack.c.bf16 %v1743_v45, %v1743_v45  ;;  %v4504_v53 = vld [vmem:[#allocation10 + $0x18] sm:$0xff]   ;;  %v4506_v45 = vld [vmem:[#allocation10 + $0x28] sm:$0xff]  }
 0x526   : > { %v2286_v16 = vsel %vm2238_vm4, %v1747_v4, 0  ;;  %v2378_v20 = vsel %vm2238_vm4, %v1749_v18, 0 }
 0x527   : > { %4268 = vmatpush3.bf16.msra.mxu1 %v2286_v16 }
 0x528   : > { %4279 = vmatprep.subr.bf16.mxu1 %v4956_v0 }
 0x52a   : > { %4270 = vmatmul.mubr.msk.bf16.vlgmr.msra.gmra.mrb[28].mxu1 %vm2138_vm3, %v2228_v19 }
 0x52b   : > { %4280 = vmatpush3.bf16.msra.mxu1 %v2378_v20  ;;  %4281 = vmatprep.mubr.msk.bf16.mxu1 %vm4958_vm0, %v4956_v0 }
 0x52c   : > { %4291 = vmatprep.subr.bf16.mxu1 %v4956_v0 }
 0x537   : > { %v2195_v21 = vpop.xlane.xlu0 %2194 }
 0x538   : > { %4613 = vrcp.f32 %v2195_v21 }
 0x53b   : > { %v2201_v23 = vpop.xlane.xlu0 %2200 }
 0x53c   : > { %4615 = vrcp.f32 %v2201_v23 }
 0x541   : > { %v2198_v34 = vpop.xlane.xlu1 %2197 }
 0x542   : > { %v4614_v6 = vpop.eup %4613  ;;  %4617 = vrcp.f32 %v2198_v34 }
 0x543   : > { %v2221_v2 = vmul.f32 %v4614_v6, %v5648_v17  ;;  %v1741_v17 = vrot.slane %v1727_v24, %v5400_v32 }
 0x545   : > { %v2229_v54 = vpack.c.bf16 %v2221_v2, %v2221_v2  ;;  %v2204_v60 = vpop.xlane.xlu0 %2203  ;;  %v1744_v33 = vcombine.low %v1725_v63, %v1741_v17  ;;  %v1745_v41 = vcombine.high %v1725_v63, %v1741_v17 }
 0x546   : > { %v4616_v55 = vpop.eup %4615  ;;  %4619 = vrcp.f32 %v2204_v60 }
 0x547   : > { %4276 = vmatmul.mubr.msk.bf16.vlgmr.msra.gmra.mrb[16].mxu0 %vm2138_vm3, %v2229_v54  ;;  %v2223_v14 = vmul.f32 %v4616_v55, %v5653_v57  ;;  %v1751_v1 = vpack.c.bf16 %v1744_v33, %v1744_v33  ;;  %v1753_v43 = vpack.c.bf16 %v1745_v41, %v1745_v41 }
 0x548   : > { %4286 = vmatpush3.bf16.msra.mxu0 %v2424_v56  ;;  %4287 = vmatprep.mubr.msk.bf16.mxu0 %vm4958_vm0, %v4956_v0 }
 0x549   : > { %4297 = vmatprep.subr.bf16.mxu0 %v4956_v0  ;;  %v2207_v7 = vpop.xlane.xlu0 %2206  ;;  %v2231_v36 = vpack.c.bf16 %v2223_v14, %v2223_v14  ;;  %v2210_v37 = vpop.xlane.xlu1 %2209  ;;  %v2470_v40 = vsel %vm2238_vm4, %v1751_v1, 0  ;;  %v2562_v49 = vsel %vm2238_vm4, %v1753_v43, 0 }
 0x54a   : > { %4621 = vrcp.f32 %v2207_v7 }
 0x54b   : > { %4623 = vrcp.f32 %v2210_v37 }
 0x54c   : > { %v4618_v12 = vpop.eup %4617 }
 0x54d   : > { %v2222_v38 = vmul.f32 %v4618_v12, %v5657_v28 }
 0x54f   : > { %4288 = vmatmul.mubr.msk.bf16.vlgmr.msra.gmra.mrb[20].mxu0 %vm2138_vm3, %v2231_v36  ;;  %v2230_v57 = vpack.c.bf16 %v2222_v38, %v2222_v38 }
 0x550   : > { %4298 = vmatpush3.bf16.msra.mxu0 %v2516_v11  ;;  %4299 = vmatprep.mubr.msk.bf16.mxu0 %vm4958_vm0, %v4956_v0  ;;  %v4620_v39 = vpop.eup %4619 }
 0x551   : > { %4309 = vmatprep.subr.bf16.mxu0 %v4956_v0  ;;  %4282 = vmatmul.mubr.msk.bf16.vlgmr.msra.gmra.mrb[32].mxu1 %vm2138_vm3, %v2230_v57  ;;  %v2224_v46 = vmul.f32 %v4620_v39, %v5661_v31 }
 0x552   : > { %4292 = vmatpush3.bf16.msra.mxu1 %v2470_v40  ;;  %4293 = vmatprep.mubr.msk.bf16.mxu1 %vm4958_vm0, %v4956_v0 }
 0x553   : > { %4303 = vmatprep.subr.bf16.mxu1 %v4956_v0  ;;  %v2232_v13 = vpack.c.bf16 %v2224_v46, %v2224_v46 }
 0x554   : > { %v4622_v28 = vpop.eup %4621 }
 0x555   : > { %v2225_v42 = vmul.f32 %v4622_v28, %v5665_v35  ;;  %v4624_v48 = vpop.eup %4623 }
 0x556   : > { %v2226_v31 = vmul.f32 %v4624_v48, %v5667_v9  ;;  %v4505_v9 = vld [vmem:[#allocation10 + $0x20] sm:$0xff]  }
 0x557   : > { %v2233_v44 = vpack.c.bf16 %v2225_v42, %v2225_v42 }
 0x558   : > { %v2234_v35 = vpack.c.bf16 %v2226_v31, %v2226_v31 }
 0x559   : > { %4300 = vmatmul.mubr.msk.bf16.vlgmr.msra.gmra.mrb[24].mxu0 %vm2138_vm3, %v2233_v44  ;;  %4294 = vmatmul.mubr.msk.bf16.vlgmr.msra.gmra.mrb[36].mxu1 %vm2138_vm3, %v2232_v13 }
 0x55a   : > { %4325 = vmatprep.mubr.msk.bf16.mxu0 %vm4958_vm0, %v4956_v0  ;;  %4304 = vmatpush3.bf16.msra.mxu1 %v2562_v49 }
 0x55b   : > { %4305 = vmatprep.mubr.msk.bf16.mxu1 %vm4958_vm0, %v4956_v0  ;;  %4310 = vmatpush3.bf16.msra.mxu0 %v4501_v51 }
 0x55c   : > { %4311 = vmatprep.subr.bf16.mxu0 %v4956_v0 }
 0x55f   : > { %4312 = vmatpush3.bf16.msra.mxu0 %v4502_v52 }
 0x560   : > { %4313 = vmatprep.subr.bf16.mxu0 %v4956_v0 }
 0x561   : > { %4306 = vmatmul.mubr.msk.bf16.vlgmr.msra.gmra.mrb[40].mxu1 %vm2138_vm3, %v2234_v35 }
 0x562   : > { %3314 = vmatprep.mubr.bf16.mxu1 %v4957_v26 }
 0x563   : > { %4314 = vmatpush3.bf16.msra.mxu0 %v4503_v47 }
 0x564   : > { %4315 = vmatprep.subr.bf16.mxu0 %v4956_v0 }
 0x567   : > { %4316 = vmatpush3.bf16.msra.mxu0 %v4504_v53 }
 0x568   : > { %4317 = vmatprep.subr.bf16.mxu0 %v4956_v0 }
 0x56b   : > { %4318 = vmatpush3.bf16.msra.mxu0 %v4505_v9 }
 0x56c   : > { %4319 = vmatprep.subr.bf16.mxu0 %v4956_v0 }
 0x56f   : > { %4320 = vmatpush3.bf16.msra.mxu0 %v4506_v45 }
 0x570   : > { %4321 = vmatprep.subr.bf16.mxu0 %v4956_v0 }
 0x5f2   : > { %v2276_v3 = vpop.f32.mrb[12].mxu0 }
 0x5f3   : > { %v4265_v4 = vpop.f32.mrb[13].mxu0 }
 0x5f4   : > { %v2279_v16 = vpop.f32.mrb[14].mxu0 }
 0x5f5   : > { %v4266_v18 = vpop.f32.mrb[15].mxu0 }
 0x5fd   : > { %v2322_v19 = vpop.f32.mrb[28].mxu1 }
 0x5fe   : > { %v4271_v20 = vpop.f32.mrb[29].mxu1 }
 0x5ff   : > { %v2325_v21 = vpop.f32.mrb[30].mxu1 }
 0x600   : > { %v4272_v50 = vpop.f32.mrb[31].mxu1 }
 0x61a   : > { %v2368_v22 = vpop.f32.mrb[16].mxu0 }
 0x61b   : > { %v4277_v23 = vpop.f32.mrb[17].mxu0 }
 0x61c   : > { %v2371_v27 = vpop.f32.mrb[18].mxu0 }
 0x61d   : > { %v4278_v5 = vpop.f32.mrb[19].mxu0 }
 0x622   : > { %v2460_v8 = vpop.f32.mrb[20].mxu0 }
 0x623   : > { %v2604_v6 = vcombine.low %v2276_v3, %v2460_v8  ;;  %v2605_v2 = vcombine.high %v2276_v3, %v2460_v8  ;;  %v4289_v30 = vpop.f32.mrb[21].mxu0 }
 0x624   : > { %v2463_v34 = vpop.f32.mrb[22].mxu0  ;;  %v2414_v24 = vpop.f32.mrb[32].mxu1 }
 0x625   : > { %v4290_v10 = vpop.f32.mrb[23].mxu0  ;;  %v4283_v54 = vpop.f32.mrb[33].mxu1  ;;  %v2612_v37 = vrot.slane %v2604_v6, %v5396_v25  ;;  %v2619_v12 = vrot.slane %v2605_v2, %v5396_v25 }
 0x626   : > { %v2417_v55 = vpop.f32.mrb[34].mxu1 }
 0x627   : > { %v4284_v60 = vpop.f32.mrb[35].mxu1 }
 0x62c   : > { %v2552_v56 = vpop.f32.mrb[24].mxu0  ;;  %v2506_v61 = vpop.f32.mrb[36].mxu1 }
 0x62d   : > { %v2620_v63 = vcombine.low %v2368_v22, %v2552_v56  ;;  %v2621_v17 = vcombine.high %v2368_v22, %v2552_v56  ;;  %v4301_v14 = vpop.f32.mrb[25].mxu0  ;;  %v2672_v7 = vcombine.low %v2322_v19, %v2506_v61  ;;  %v2673_v15 = vcombine.high %v2322_v19, %v2506_v61  ;;  %v4295_v33 = vpop.f32.mrb[37].mxu1 }
 0x62e   : > { %v2555_v36 = vpop.f32.mrb[26].mxu0  ;;  %v2509_v1 = vpop.f32.mrb[38].mxu1 }
 0x62f   : > { %v2628_v11 = vrot.slane %v2620_v63, %v5396_v25  ;;  %v2635_v38 = vrot.slane %v2621_v17, %v5396_v25  ;;  %v4302_v57 = vpop.f32.mrb[27].mxu0  ;;  %v4296_v39 = vpop.f32.mrb[39].mxu1  ;;  %v2680_v18 = vrot.slane %v2672_v7, %v5396_v25  ;;  %v2687_v19 = vrot.slane %v2673_v15, %v5396_v25 }
 0x631   : > { %v2636_v40 = vcombine.low %v2612_v37, %v2628_v11  ;;  %v2637_v41 = vcombine.high %v2612_v37, %v2628_v11  ;;  %v2652_v28 = vcombine.low %v2619_v12, %v2635_v38  ;;  %v2653_v46 = vcombine.high %v2619_v12, %v2635_v38  ;;  %v4507_v12 = vld [vmem:[#allocation10 + $0x30] sm:$0xff]  }
 0x632   : > { %4322 = vmatpush3.bf16.msra.mxu0 %v4507_v12  ;;  %v4521_v12 = vld [vmem:[#allocation11 + $0x40] ss:$16 sps:$4 sm:$0xff]  }
 0x633   : > { %v2644_v42 = vrot.slane %v2636_v40, %v5400_v32  ;;  %v2651_v43 = vrot.slane %v2637_v41, %v5400_v32  ;;  %v2660_v44 = vrot.slane %v2652_v28, %v5400_v32  ;;  %v2667_v13 = vrot.slane %v2653_v46, %v5400_v32  ;;  %4323 = vmatprep.subr.bf16.mxu0 %v4956_v0 }
 0x634   : > { %v2598_v51 = vpop.f32.mrb[40].mxu1 }
 0x635   : > { %v2740_v48 = vcombine.low %v2644_v42, %v2651_v43  ;;  %v4004_v49 = vcombine.high %v2644_v42, %v2651_v43  ;;  %v2756_v31 = vcombine.low %v2660_v44, %v2667_v13  ;;  %v4005_v35 = vcombine.high %v2660_v44, %v2667_v13  ;;  %v4307_v53 = vpop.f32.mrb[41].mxu1  ;;  %v4508_v13 = vld [vmem:[#allocation10 + $0x38] sm:$0xff]  }
 0x636   : > { %v2688_v52 = vcombine.low %v2414_v24, %v2598_v51  ;;  %v2689_v47 = vcombine.high %v2414_v24, %v2598_v51  ;;  %v2601_v16 = vpop.f32.mrb[42].mxu1  ;;  %4324 = vmatpush3.bf16.msra.mxu0 %v4508_v13  ;;  %v4542_v13 = vld [vmem:[#allocation11 + $0xa8] ss:$16 sps:$4 sm:$0xff]  }
 0x637   : > { %v2747_v9 = vrot.slane %v2740_v48, %v5396_v25  ;;  %v2755_v45 = vrot.slane %v4004_v49, %v5396_v25  ;;  %v2763_v3 = vrot.slane %v2756_v31, %v5396_v25  ;;  %v2771_v4 = vrot.slane %v4005_v35, %v5396_v25  ;;  %v4308_v50 = vpop.f32.mrb[43].mxu1 }
 0x638   : > { %v2696_v20 = vrot.slane %v2688_v52, %v5396_v25  ;;  %v2703_v21 = vrot.slane %v2689_v47, %v5396_v25 }
 0x639   : > { %v2773_v22 = vcombine.high %v2747_v9, %v2755_v45  ;;  %v2789_v23 = vcombine.high %v2763_v3, %v2771_v4  ;;  %v2772_v27 = vcombine.low %v2747_v9, %v2755_v45  ;;  %v2788_v5 = vcombine.low %v2763_v3, %v2771_v4 }
 0x63a   : > { %v2704_v8 = vcombine.low %v2680_v18, %v2696_v20  ;;  %v2705_v6 = vcombine.high %v2680_v18, %v2696_v20  ;;  %v2720_v2 = vcombine.low %v2687_v19, %v2703_v21  ;;  %v2721_v30 = vcombine.high %v2687_v19, %v2703_v21 }
 0x63b   : > { %v2787_v34 = vrot.slane %v2773_v22, %v5400_v32  ;;  %v2803_v10 = vrot.slane %v2789_v23, %v5400_v32  ;;  %v2780_v24 = vrot.slane %v2772_v27, %v5400_v32  ;;  %v2796_v54 = vrot.slane %v2788_v5, %v5400_v32  ;;  %v4008_v27 = vld [vmem:[%s5946_s6] ss:$0 sm:$0xff] }
 0x63c   : > { %v2712_v55 = vrot.slane %v2704_v8, %v5400_v32  ;;  %v2719_v60 = vrot.slane %v2705_v6, %v5400_v32  ;;  %v2728_v56 = vrot.slane %v2720_v2, %v5400_v32  ;;  %v2735_v61 = vrot.slane %v2721_v30, %v5400_v32  ;;  %v4661_v30 = vld [vmem:[%s5299_s30] sm:$0xff] }
 0x63d   : > { %v2806_v63 = vcombine.low %v2787_v34, %v2803_v10  ;;  %v2804_v17 = vcombine.low %v2780_v24, %v2796_v54  ;;  %v2805_v14 = vcombine.high %v2780_v24, %v2796_v54  ;;  %v2807_v7 = vcombine.high %v2787_v34, %v2803_v10  ;;  %v4662_v54 = vld [vmem:[%s5299_s30 + $0x8] sm:$0xff]  ;;  %s5986_s30 = sld [smem:[#allocation23_spill]] }
 0x63e   : > { %v2808_v15 = vcombine.low %v2712_v55, %v2719_v60  ;;  %v4006_v33 = vcombine.high %v2712_v55, %v2719_v60  ;;  %v2824_v36 = vcombine.low %v2728_v56, %v2735_v61  ;;  %v4007_v37 = vcombine.high %v2728_v56, %v2735_v61  ;;  %v4509_v56 = vld [vmem:[#allocation11] ss:$16 sps:$4 sm:$0xff]   ;;  %v4511_v61 = vld [vmem:[#allocation11 + $0x4] ss:$16 sps:$4 sm:$0xff]  }
 0x63f   : > { %3282 = vmatprep.subr.bf16.mxu1 %v4511_v61  ;;  %v4557_v61 = vld [vmem:[#allocation13 + $0x40] sm:$0xff]  }
 0x640   : > { %v2815_v11 = vrot.slane %v2808_v15, %v5396_v25  ;;  %v2823_v38 = vrot.slane %v4006_v33, %v5396_v25  ;;  %v2831_v1 = vrot.slane %v2824_v36, %v5396_v25  ;;  %v2839_v57 = vrot.slane %v4007_v37, %v5396_v25  ;;  %3283 = vmatpush1.bf16.msra.mxu1 %v4509_v56  ;;  %v4515_v15 = vld [vmem:[#allocation11 + $0x20] ss:$16 sps:$4 sm:$0xff]   ;;  %v4518_v33 = vld [vmem:[#allocation11 + $0x28] ss:$16 sps:$4 sm:$0xff]   ;;  %v4523_v36 = vld [vmem:[#allocation11 + $0x44] ss:$16 sps:$4 sm:$0xff]  }
 0x641   : > { %v4526_v37 = vld [vmem:[#allocation11 + $0x4c] ss:$16 sps:$4 sm:$0xff]  }
 0x642   : > { %v2841_v39 = vcombine.high %v2815_v11, %v2823_v38  ;;  %v2857_v40 = vcombine.high %v2831_v1, %v2839_v57  ;;  %v2840_v41 = vcombine.low %v2815_v11, %v2823_v38  ;;  %v2856_v28 = vcombine.low %v2831_v1, %v2839_v57  ;;  %v4524_v11 = vld [vmem:[#allocation11 + $0x48] ss:$16 sps:$4 sm:$0xff]   ;;  %v4529_v38 = vld [vmem:[#allocation11 + $0x64] ss:$16 sps:$4 sm:$0xff]   ;;  %v4527_v1 = vld [vmem:[#allocation11 + $0x60] ss:$16 sps:$4 sm:$0xff]  }
 0x643   : > { %v4530_v57 = vld [vmem:[#allocation11 + $0x68] ss:$16 sps:$4 sm:$0xff]  }
 0x644   : > { %v2855_v46 = vrot.slane %v2841_v39, %v5400_v32  ;;  %v2871_v42 = vrot.slane %v2857_v40, %v5400_v32  ;;  %v2848_v43 = vrot.slane %v2840_v41, %v5400_v32  ;;  %v2864_v44 = vrot.slane %v2856_v28, %v5400_v32  ;;  %v4532_v39 = vld [vmem:[#allocation11 + $0x6c] ss:$16 sps:$4 sm:$0xff]   ;;  %v4535_v40 = vld [vmem:[#allocation11 + $0x84] ss:$16 sps:$4 sm:$0xff]   ;;  %v4533_v28 = vld [vmem:[#allocation11 + $0x80] ss:$16 sps:$4 sm:$0xff]  }
 0x645   : > { %v4538_v41 = vld [vmem:[#allocation11 + $0x8c] ss:$16 sps:$4 sm:$0xff]  }
 0x646   : > { %v2874_v48 = vcombine.low %v2855_v46, %v2871_v42  ;;  %v2873_v49 = vcombine.high %v2848_v43, %v2864_v44  ;;  %v2872_v31 = vcombine.low %v2848_v43, %v2864_v44  ;;  %v2875_v25 = vcombine.high %v2855_v46, %v2871_v42  ;;  %v4536_v46 = vld [vmem:[#allocation11 + $0x88] ss:$16 sps:$4 sm:$0xff]   ;;  %v4541_v42 = vld [vmem:[#allocation11 + $0xa4] ss:$16 sps:$4 sm:$0xff]   ;;  %v4544_v43 = vld [vmem:[#allocation11 + $0xac] ss:$16 sps:$4 sm:$0xff]  }
 0x647   : > { %v4539_v44 = vld [vmem:[#allocation11 + $0xa0] ss:$16 sps:$4 sm:$0xff]  }
 0x648   : > { %v4459_v35 = vpack.i.bf16 %v2874_v48, %v2806_v63  ;;  %v4454_v51 = vpack.i.bf16 %v2873_v49, %v2805_v14  ;;  %v4464_v52 = vpack.i.bf16 %v2875_v25, %v2807_v7  ;;  %v4512_v63 = vld [vmem:[#allocation11 + $0x8] ss:$16 sps:$4 sm:$0xff]   ;;  %v4517_v14 = vld [vmem:[#allocation11 + $0x24] ss:$16 sps:$4 sm:$0xff]   ;;  %v4520_v7 = vld [vmem:[#allocation11 + $0x2c] ss:$16 sps:$4 sm:$0xff]  }
 0x649   : > { %3284 = vmatprep.subr.bf16.mxu1 %v4517_v14  ;;  %v4547_v48 = vld [vmem:[#allocation11 + $0xc4] ss:$16 sps:$4 sm:$0xff]   ;;  %v4550_v49 = vld [vmem:[#allocation11 + $0xcc] ss:$16 sps:$4 sm:$0xff]   ;;  %v4548_v25 = vld [vmem:[#allocation11 + $0xc8] ss:$16 sps:$4 sm:$0xff]  }
 0x64a   : > { %4460 = vrot.lane.b32.xlu1 %v4459_v35, %s4959_s29  ;;  %4455 = vrot.lane.b32.xlu0 %v4454_v51, %s4961_s22  ;;  %v4553_v35 = vld [vmem:[#allocation11 + $0xe4] ss:$16 sps:$4 sm:$0xff]   ;;  %v4556_v51 = vld [vmem:[#allocation11 + $0xec] ss:$16 sps:$4 sm:$0xff]   ;;  %s5987_s29 = sld [smem:[#allocation24_spill]] }
 0x64b   : > { %3285 = vmatpush1.bf16.msra.mxu1 %v4515_v15  ;;  %v4560_v14 = vld [vmem:[#allocation13 + $0x80] sm:$0xff]   ;;  %v4562_v15 = vld [vmem:[#allocation13 + $0xc8] sm:$0xff]  }
 0x64c   : > { %3286 = vmatprep.subr.bf16.mxu1 %v4523_v36  ;;  %v4564_v36 = vld [vmem:[#allocation13 + $0x88] sm:$0xff]  }
 0x64e   : > { %4465 = vrot.lane.b32.xlu1 %v4464_v52, %s4960_s21  ;;  %v4551_v52 = vld [vmem:[#allocation11 + $0xe0] ss:$16 sps:$4 sm:$0xff]  }
 0x64f   : > { %3287 = vmatpush1.bf16.msra.mxu1 %v4521_v12  ;;  %v4566_v12 = vld [vmem:[#allocation13 + $0xd0] sm:$0xff]  }
 0x650   : > { %3288 = vmatprep.subr.bf16.mxu1 %v4529_v38  ;;  %v4568_v38 = vld [vmem:[#allocation13 + $0x90] sm:$0xff]  }
 0x653   : > { %3289 = vmatpush1.bf16.msra.mxu1 %v4527_v1  ;;  %v4569_v1 = vld [vmem:[#allocation13 + $0x58] sm:$0xff]  }
 0x654   : > { %3290 = vmatprep.subr.bf16.mxu1 %v4535_v40  ;;  %v4572_v40 = vld [vmem:[#allocation13 + $0x98] sm:$0xff]  }
 0x657   : > { %3291 = vmatpush1.bf16.msra.mxu1 %v4533_v28  ;;  %v4574_v28 = vld [vmem:[#allocation13 + $0xe0] sm:$0xff]  }
 0x658   : > { %3292 = vmatprep.subr.bf16.mxu1 %v4541_v42  ;;  %v4576_v42 = vld [vmem:[#allocation13 + $0xa0] sm:$0xff]  }
 0x65b   : > { %3293 = vmatpush1.bf16.msra.mxu1 %v4539_v44  ;;  %v4578_v44 = vld [vmem:[#allocation13 + $0xe8] sm:$0xff]  }
 0x65c   : > { %3294 = vmatprep.subr.bf16.mxu1 %v4547_v48  ;;  %v4580_v48 = vld [vmem:[#allocation13 + $0xa8] sm:$0xff]  }
 0x6bc   : > { %v4461_v0 = vpop.permute.xlu1 %4460  ;;  %v4456_v47 = vpop.permute.xlu0 %4455 }
 0x6bd   : > { %v4458_v53 = vunpack.i.h.bf16 %v4456_v47  ;;  %v4457_v9 = vunpack.i.l.bf16 %v4456_v47  ;;  %v4463_v32 = vunpack.i.h.bf16 %v4461_v0  ;;  %v4462_v45 = vunpack.i.l.bf16 %v4461_v0  ;;  %v4554_v0 = vld [vmem:[#allocation11 + $0xe8] ss:$16 sps:$4 sm:$0xff]  }
 0x6bf   : > { %v2900_v3 = vsel %vm1754_vm1, %v2804_v17, %v4457_v9  ;;  %v2901_v4 = vsel %vm1754_vm1, %v2872_v31, %v4458_v53  ;;  %v4514_v17 = vld [vmem:[#allocation11 + $0xc] ss:$16 sps:$4 sm:$0xff]   ;;  %v4545_v31 = vld [vmem:[#allocation11 + $0xc0] ss:$16 sps:$4 sm:$0xff]  }
 0x6c0   : > { %v4466_v16 = vpop.permute.xlu1 %4465  ;;  %v2903_v20 = vsel %vm2902_vm5, %v2900_v3, %v4462_v45  ;;  %v2904_v21 = vsel %vm2902_vm5, %v2901_v4, %v4463_v32  ;;  %3325 = vmatprep.subr.bf16.mxu0 %v4514_v17  ;;  %3295 = vmatpush1.bf16.msra.mxu1 %v4545_v31  ;;  %v4559_v17 = vld [vmem:[#allocation13] sm:$0xff]   ;;  %v4582_v31 = vld [vmem:[#allocation13 + $0xf0] sm:$0xff]  }
 0x6c1   : > { %v4468_v18 = vunpack.i.h.bf16 %v4466_v16  ;;  %v4467_v19 = vunpack.i.l.bf16 %v4466_v16  ;;  %3296 = vmatprep.subr.bf16.mxu1 %v4553_v35  ;;  %v4584_v35 = vld [vmem:[#allocation13 + $0xb0] sm:$0xff]  }
 0x6c3   : > { %v2906_v50 = vsel %vm2905_vm6, %v2903_v20, %v4467_v19  ;;  %v2907_v22 = vsel %vm2905_vm6, %v2904_v21, %v4468_v18 }
 0x6c4   : > { %v2908_v23 = vpack.c.bf16 %v2907_v22, %v2906_v50  ;;  %3297 = vmatpush1.bf16.msra.mxu1 %v4551_v52  ;;  %v4586_v52 = vld [vmem:[#allocation13 + $0xf8] sm:$0xff]  }
 0x6c5   : > { %4149 = vmatprep.subr.bf16.mxu1 %v4557_v61 }
 0x6c6   : > { %4326 = vmatmul.mubr.bf16.vlgmr.msra.gmra.mrb[28].mxu0 %v2908_v23 }
 0x6c7   : > { %3357 = vmatprep.mubr.bf16.mxu0 %v4957_v26  ;;  %3326 = vmatpush1.bf16.msra.mxu0 %v4512_v63  ;;  %v4558_v63 = vld [vmem:[#allocation13 + $0xc0] sm:$0xff]  }
 0x6c8   : > { %3327 = vmatprep.subr.bf16.mxu0 %v4520_v7  ;;  %v4561_v7 = vld [vmem:[#allocation13 + $0x48] sm:$0xff]  }
 0x6cb   : > { %3328 = vmatpush1.bf16.msra.mxu0 %v4518_v33  ;;  %v4563_v33 = vld [vmem:[#allocation13 + $0x8] sm:$0xff]  }
 0x6cc   : > { %3329 = vmatprep.subr.bf16.mxu0 %v4526_v37  ;;  %v4565_v37 = vld [vmem:[#allocation13 + $0x50] sm:$0xff]  }
 0x6cf   : > { %3330 = vmatpush1.bf16.msra.mxu0 %v4524_v11  ;;  %v4567_v11 = vld [vmem:[#allocation13 + $0x10] sm:$0xff]  }
 0x6d0   : > { %3331 = vmatprep.subr.bf16.mxu0 %v4532_v39  ;;  %v4571_v39 = vld [vmem:[#allocation13 + $0x18] sm:$0xff]  }
 0x6d3   : > { %3332 = vmatpush1.bf16.msra.mxu0 %v4530_v57  ;;  %v4570_v57 = vld [vmem:[#allocation13 + $0xd8] sm:$0xff]  }
 0x6d4   : > { %3333 = vmatprep.subr.bf16.mxu0 %v4538_v41  ;;  %v4573_v41 = vld [vmem:[#allocation13 + $0x60] sm:$0xff]  }
 0x6d7   : > { %3334 = vmatpush1.bf16.msra.mxu0 %v4536_v46  ;;  %v4575_v46 = vld [vmem:[#allocation13 + $0x20] sm:$0xff]  }
 0x6d8   : > { %3335 = vmatprep.subr.bf16.mxu0 %v4544_v43  ;;  %v4577_v43 = vld [vmem:[#allocation13 + $0x68] sm:$0xff]  }
 0x6db   : > { %3336 = vmatpush1.bf16.msra.mxu0 %v4542_v13  ;;  %v4579_v13 = vld [vmem:[#allocation13 + $0x28] sm:$0xff]  }
 0x6dc   : > { %3337 = vmatprep.subr.bf16.mxu0 %v4550_v49  ;;  %v4581_v49 = vld [vmem:[#allocation13 + $0x70] sm:$0xff]  }
 0x6df   : > { %3338 = vmatpush1.bf16.msra.mxu0 %v4548_v25  ;;  %v4583_v25 = vld [vmem:[#allocation13 + $0x30] sm:$0xff]  }
 0x6e0   : > { %3339 = vmatprep.subr.bf16.mxu0 %v4556_v51  ;;  %v4585_v51 = vld [vmem:[#allocation13 + $0x78] sm:$0xff]  }
 0x6e3   : > { %3340 = vmatpush1.bf16.msra.mxu0 %v4554_v0  ;;  %v4587_v0 = vld [vmem:[#allocation13 + $0x38] sm:$0xff]  }
 0x6e4   : > { %4171 = vmatprep.subr.bf16.mxu0 %v4558_v63 }
 0x799   : > { %v3014_v5 = vpop.f32.mrb[28].mxu0 }
 0x79a   : > { %v3015_v8 = vadd.f32 %v4008_v27, %v3014_v5  ;;  %v4327_v6 = vpop.f32.mrb[29].mxu0 }
 0x79b   : > { %v3017_v2 = vpop.f32.mrb[30].mxu0 }
 0x79c   : > { %v5822_v34 = vadd.f32 %v4661_v30, %v3015_v8  ;;  %v3018_v10 = vadd.f32 %v4008_v27, %v3017_v2  ;;  %v4328_v24 = vpop.f32.mrb[31].mxu0  ;;  %v4017_v8 = vld [vmem:[%s5985_s17] ss:$0 sm:$0xff] }
 0x79d   : > { %v4018_v24 = vld [vmem:[%s5986_s30] ss:$0 sm:$0xff]  ;;  %s5895_s30 = scalar_lea.hbm %s5989_s13, %s4098_s20 }
 0x79e   : > { %v5825_v55 = vadd.f32 %v4662_v54, %v3018_v10  ;;  %3023 = vadd.xlane.f32.xlu1 %v5822_v34  ;;  %v3029_v26 = vmul.f32 %v5822_v34, %v5822_v34 }
 0x7a0   : > { %3025 = vadd.xlane.f32.xlu0 %v5825_v55  ;;  %v3030_v60 = vmul.f32 %v5825_v55, %v5825_v55 }
 0x7a4   : > { %3031 = vadd.xlane.f32.xlu0 %v3029_v26 }
 0x7a8   : > { %3033 = vadd.xlane.f32.xlu0 %v3030_v60 }
 0x82b   : > { %v3024_v47 = vpop.xlane.xlu1 %3023 }
 0x82c   : > { %v3027_v9 = vmul.f32 0.0078125, %v3024_v47  ;;  %v4588_v47 = vld [vmem:[#allocation13 + $0xb8] sm:$0xff]  }
 0x82d   : > { %v3026_v53 = vpop.xlane.xlu0 %3025 }
 0x82e   : > { %v3037_v45 = vmul.f32 %v3027_v9, %v3027_v9  ;;  %v3028_v3 = vmul.f32 0.0078125, %v3026_v53  ;;  %v3045_v23 = vsub.f32 %v5822_v34, %v3027_v9  ;;  %v3100_v53 = vld [vmem:[%s5987_s29] sm:$0xf]  ;;  %v3116_v9 = vsub.s32 3, %v5349_v58  ;;  %s4867_s29 = scalar_lea.vmem %s4866_s24, 512 }
 0x82f   : > { %p4869_p3 = scmp.lt.s32.totalorder %s4867_s29, %s4861_s15 }
 0x830   : > { %v3038_v19 = vmul.f32 %v3028_v3, %v3028_v3  ;;  %v3046_v6 = vsub.f32 %v5825_v55, %v3028_v3  ;;  %v3109_v3 = vrot.slane %v3100_v53, %v633_v62 }
 0x831   : > { %v3032_v32 = vpop.xlane.xlu0 %3031  ;;  %p4870_p2 = por %p4869_p3, %p4868_p1 }
 0x832   : > { %v3035_v4 = vmul.f32 0.0078125, %v3032_v32  ;;  %v3105_v32 = vrot.slane %v3100_v53, %v629_v59 }
 0x833   : > { %p4871_p8 = pnand %p4870_p2, %p4864_p13 }
 0x834   : > { %v3039_v16 = vsub.f32 %v3035_v4, %v3037_v45  ;;  %v3113_v45 = vrot.slane %v3100_v53, %v637_v29  ;;  %v3117_v4 = vrot.slane %v3100_v53, %v3116_v9 }
 0x835   : > { %v3034_v18 = vpop.xlane.xlu0 %3033 }
 0x836   : > { %v3041_v20 = vadd.f32 1e-05, %v3039_v16  ;;  %v3036_v21 = vmul.f32 0.0078125, %v3034_v18 }
 0x838   : > { %4625 = vrsqrt.f32 %v3041_v20  ;;  %v3040_v50 = vsub.f32 %v3036_v21, %v3038_v19 }
 0x83a   : > { %v3042_v22 = vadd.f32 1e-05, %v3040_v50 }
 0x83c   : > { %4627 = vrsqrt.f32 %v3042_v22 }
 0x842   : > { %v4626_v27 = vpop.eup %4625 }
 0x843   : > { %v3047_v5 = vmul.f32 %v4626_v27, %v3045_v23 }
 0x845   : > { %v3056_v10 = vmul.f32 %v4017_v8, %v3047_v5 }
 0x846   : > { %v4628_v2 = vpop.eup %4627 }
 0x847   : > { %v3048_v30 = vmul.f32 %v4628_v2, %v3046_v6  ;;  %v3065_v26 = vadd.f32 %v4018_v24, %v3056_v10 }
 0x849   : > { %v3057_v54 = vmul.f32 %v4017_v8, %v3048_v30 }
 0x84b   : > { %v3066_v60 = vadd.f32 %v4018_v24, %v3057_v54 }
 0x84d   : > { %v3067_v56 = vpack.c.bf16 %v3066_v60, %v3065_v26 }
 0x84f   : > { %3315 = vmatmul.mubr.bf16.vlgmr.msra.gmra.mrb[44].mxu1 %v3067_v56  ;;  %3358 = vmatmul.mubr.bf16.vlgmr.msra.gmra.mrb[32].mxu0 %v3067_v56 }
 0x850   : > { %4150 = vmatpush3.bf16.msra.mxu1 %v4559_v17  ;;  %4172 = vmatpush3.bf16.msra.mxu0 %v4560_v14 }
 0x851   : > { %4151 = vmatprep.subr.bf16.mxu1 %v4561_v7  ;;  %4173 = vmatprep.subr.bf16.mxu0 %v4562_v15 }
 0x854   : > { %4152 = vmatpush3.bf16.msra.mxu1 %v4563_v33  ;;  %4174 = vmatpush3.bf16.msra.mxu0 %v4564_v36 }
 0x855   : > { %4153 = vmatprep.subr.bf16.mxu1 %v4565_v37  ;;  %4175 = vmatprep.subr.bf16.mxu0 %v4566_v12 }
 0x858   : > { %4154 = vmatpush3.bf16.msra.mxu1 %v4567_v11  ;;  %4176 = vmatpush3.bf16.msra.mxu0 %v4568_v38 }
 0x859   : > { %4155 = vmatprep.subr.bf16.mxu1 %v4569_v1  ;;  %4177 = vmatprep.subr.bf16.mxu0 %v4570_v57 }
 0x85c   : > { %4156 = vmatpush3.bf16.msra.mxu1 %v4571_v39  ;;  %4178 = vmatpush3.bf16.msra.mxu0 %v4572_v40 }
 0x85d   : > { %4157 = vmatprep.subr.bf16.mxu1 %v4573_v41  ;;  %4179 = vmatprep.subr.bf16.mxu0 %v4574_v28 }
 0x860   : > { %4158 = vmatpush3.bf16.msra.mxu1 %v4575_v46  ;;  %4180 = vmatpush3.bf16.msra.mxu0 %v4576_v42 }
 0x861   : > { %4159 = vmatprep.subr.bf16.mxu1 %v4577_v43  ;;  %4181 = vmatprep.subr.bf16.mxu0 %v4578_v44 }
 0x864   : > { %4160 = vmatpush3.bf16.msra.mxu1 %v4579_v13  ;;  %4182 = vmatpush3.bf16.msra.mxu0 %v4580_v48 }
 0x865   : > { %4161 = vmatprep.subr.bf16.mxu1 %v4581_v49  ;;  %4183 = vmatprep.subr.bf16.mxu0 %v4582_v31 }
 0x868   : > { %4162 = vmatpush3.bf16.msra.mxu1 %v4583_v25  ;;  %4184 = vmatpush3.bf16.msra.mxu0 %v4584_v35 }
 0x869   : > { %4163 = vmatprep.subr.bf16.mxu1 %v4585_v51  ;;  %4185 = vmatprep.subr.bf16.mxu0 %v4586_v52 }
 0x86c   : > { %4164 = vmatpush3.bf16.msra.mxu1 %v4587_v0  ;;  %4186 = vmatpush3.bf16.msra.mxu0 %v4588_v47 }
 0x922   : > { %v3316_v16 = vpop.f32.mrb[44].mxu1  ;;  %v3359_v18 = vpop.f32.mrb[32].mxu0 }
 0x923   : > { %v5851_v19 = vadd.f32 %v3316_v16, %v3105_v32  ;;  %v5853_v20 = vadd.f32 %v3359_v18, %v3113_v45  ;;  %v3318_v21 = vpop.f32.mrb[45].mxu1  ;;  %v3361_v50 = vpop.f32.mrb[33].mxu0 }
 0x924   : > { %v5855_v22 = vadd.f32 %v3318_v21, %v3109_v3  ;;  %v5857_v23 = vadd.f32 %v3361_v50, %v3117_v4  ;;  %v3320_v59 = vpop.f32.mrb[46].mxu1  ;;  %v3363_v27 = vpop.f32.mrb[34].mxu0 }
 0x925   : > { %v4051_v29 = vmul.f32 -1.702, %v5851_v19  ;;  %v4053_v58 = vmul.f32 -1.702, %v5853_v20  ;;  %v5861_v62 = vadd.f32 %v3320_v59, %v3105_v32  ;;  %v5863_v5 = vadd.f32 %v3363_v27, %v3113_v45  ;;  %v3322_v8 = vpop.f32.mrb[47].mxu1  ;;  %v3365_v6 = vpop.f32.mrb[35].mxu0 }
 0x926   : > { %v4052_v2 = vmul.f32 -1.702, %v5855_v22  ;;  %v4054_v30 = vmul.f32 -1.702, %v5857_v23  ;;  %v5867_v10 = vadd.f32 %v3322_v8, %v3109_v3  ;;  %v5869_v24 = vadd.f32 %v3365_v6, %v3117_v4  ;;  %v4059_v59 = vld [vmem:[%s5988_s16] ss:$0 sm:$0xff] }
 0x927   : > { %v3384_v54 = vmul.f32 1.442695, %v4051_v29  ;;  %v3388_v26 = vmul.f32 1.442695, %v4053_v58  ;;  %v4055_v60 = vmul.f32 -1.702, %v5861_v62  ;;  %v3424_v56 = vpack.c.bf16 %v5861_v62, %v5851_v19 }
 0x928   : > { %v3386_v61 = vmul.f32 1.442695, %v4052_v2  ;;  %v3390_v63 = vmul.f32 1.442695, %v4054_v30  ;;  %v4057_v17 = vmul.f32 -1.702, %v5863_v5  ;;  %v3426_v14 = vpack.c.bf16 %v5863_v5, %v5853_v20 }
 0x929   : > { %4629 = vpow2.f32 %v3384_v54  ;;  %v3392_v7 = vmul.f32 1.442695, %v4055_v60  ;;  %v4056_v15 = vmul.f32 -1.702, %v5867_v10  ;;  %v3425_v33 = vpack.c.bf16 %v5867_v10, %v5855_v22 }
 0x92a   : > { %4631 = vpow2.f32 %v3388_v26  ;;  %v3396_v36 = vmul.f32 1.442695, %v4057_v17  ;;  %v4058_v37 = vmul.f32 -1.702, %v5869_v24  ;;  %v3427_v12 = vpack.c.bf16 %v5869_v24, %v5857_v23 }
 0x92b   : > { %4633 = vpow2.f32 %v3386_v61  ;;  %v3394_v11 = vmul.f32 1.442695, %v4056_v15 }
 0x92c   : > { %4635 = vpow2.f32 %v3390_v63  ;;  %v3398_v38 = vmul.f32 1.442695, %v4058_v37 }
 0x92d   : > { %4637 = vpow2.f32 %v3392_v7 }
 0x92e   : > { %4639 = vpow2.f32 %v3396_v36 }
 0x92f   : > { %4641 = vpow2.f32 %v3394_v11 }
 0x930   : > { %4643 = vpow2.f32 %v3398_v38 }
 0x933   : > { %v4630_v1 = vpop.eup %4629 }
 0x934   : > { %v4632_v57 = vpop.eup %4631  ;;  %v3400_v39 = vadd.f32 1.0, %v4630_v1 }
 0x935   : > { %v4634_v40 = vpop.eup %4633  ;;  %v3402_v41 = vadd.f32 1.0, %v4632_v57 }
 0x936   : > { %v4636_v28 = vpop.eup %4635  ;;  %4645 = vrcp.f32 %v3400_v39  ;;  %v3401_v46 = vadd.f32 1.0, %v4634_v40 }
 0x937   : > { %v4638_v42 = vpop.eup %4637  ;;  %4647 = vrcp.f32 %v3402_v41  ;;  %v3403_v43 = vadd.f32 1.0, %v4636_v28 }
 0x938   : > { %v4640_v44 = vpop.eup %4639  ;;  %4649 = vrcp.f32 %v3401_v46  ;;  %v3404_v13 = vadd.f32 1.0, %v4638_v42 }
 0x939   : > { %v4642_v48 = vpop.eup %4641  ;;  %4651 = vrcp.f32 %v3403_v43  ;;  %v3406_v49 = vadd.f32 1.0, %v4640_v44 }
 0x93a   : > { %v4644_v31 = vpop.eup %4643  ;;  %4653 = vrcp.f32 %v3404_v13  ;;  %v3405_v25 = vadd.f32 1.0, %v4642_v48 }
 0x93b   : > { %4655 = vrcp.f32 %v3406_v49  ;;  %v3407_v35 = vadd.f32 1.0, %v4644_v31 }
 0x93c   : > { %4657 = vrcp.f32 %v3405_v25 }
 0x93d   : > { %4659 = vrcp.f32 %v3407_v35 }
 0x940   : > { %v4646_v51 = vpop.eup %4645 }
 0x941   : > { %v4648_v52 = vpop.eup %4647 }
 0x942   : > { %v4650_v0 = vpop.eup %4649 }
 0x943   : > { %v4652_v47 = vpop.eup %4651 }
 0x944   : > { %v4654_v53 = vpop.eup %4653 }
 0x945   : > { %v4656_v9 = vpop.eup %4655  ;;  %v3428_v32 = vpack.c.bf16 %v4654_v53, %v4646_v51 }
 0x946   : > { %v4658_v45 = vpop.eup %4657  ;;  %v3430_v3 = vpack.c.bf16 %v4656_v9, %v4648_v52 }
 0x947   : > { %v4660_v4 = vpop.eup %4659  ;;  %v3432_v16 = vmul.bf16 %v3428_v32, %v3424_v56  ;;  %v3429_v18 = vpack.c.bf16 %v4658_v45, %v4650_v0 }
 0x948   : > { %v3434_v19 = vmul.bf16 %v3430_v3, %v3426_v14  ;;  %v3431_v20 = vpack.c.bf16 %v4660_v4, %v4652_v47 }
 0x949   : > { %v3433_v21 = vmul.bf16 %v3429_v18, %v3425_v33 }
 0x94a   : > { %v3435_v50 = vmul.bf16 %v3431_v20, %v3427_v12 }
 0x94b   : > { %3731 = vmatprep.mubr.bf16.mxu1 %v3433_v21 }
 0x94c   : > { %3772 = vmatprep.mubr.bf16.mxu0 %v3435_v50  ;;  %3732 = vmatmul.mubr.bf16.vlgmr.msra.gmra.mrb[48].mxu1 %v3432_v16 }
 0x94d   : > { %3773 = vmatmul.mubr.bf16.vlgmr.msra.gmra.mrb[36].mxu0 %v3434_v19 }
 0xa1f   : > { %v4165_v22 = vpop.f32.mrb[48].mxu1 }
 0xa20   : > { %v4187_v23 = vpop.f32.mrb[36].mxu0  ;;  %v4166_v27 = vpop.f32.mrb[49].mxu1 }
 0xa21   : > { %v4167_v29 = vadd.f32 %v4166_v27, %v4165_v22  ;;  %v4188_v58 = vpop.f32.mrb[37].mxu0  ;;  %v4168_v62 = vpop.f32.mrb[50].mxu1 }
 0xa22   : > { %v4189_v5 = vadd.f32 %v4188_v58, %v4187_v23  ;;  %v4190_v8 = vpop.f32.mrb[38].mxu0  ;;  %v4169_v6 = vpop.f32.mrb[51].mxu1 }
 0xa23   : > { %v3734_v2 = vadd.f32 %v4167_v29, %v4059_v59  ;;  %v4170_v30 = vadd.f32 %v4169_v6, %v4168_v62  ;;  %v4191_v10 = vpop.f32.mrb[39].mxu0 }
 0xa24   : > { %v4192_v24 = vadd.f32 %v4191_v10, %v4190_v8 }
 0xa25   : > { %v3775_v54 = vadd.f32 %v4189_v5, %v3734_v2  ;;  %v3737_v26 = vadd.f32 %v4170_v30, %v4059_v59 }
 0xa27   : > { %v3781_v60 = vadd.f32 %v3775_v54, %v5822_v34  ;;  %v3778_v56 = vadd.f32 %v4192_v24, %v3737_v26 }
 0xa29   : > { %3783 = vst [vmem:[%s541_s23] sm:$0xff] %v3781_v60  ;;  %v3782_v61 = vadd.f32 %v3778_v56, %v5825_v55 }
 0xa2b   : > { %3784 = vst [vmem:[%s541_s23 + $0x8] sm:$0xff] %v3782_v61 }
 0xa2c   : > { %4874 = shalt.err (!%p4871_p8)
}
 0xa2d   : > { %s4875_s21 = scalar_lea.hbm %s5895_s30, 256  ;;  %s4879_s23 = scalar_lea.hbm %s5989_s13, 512 }
 0xa2e   : > { %p4876_p10 = scmp.ne.s32.totalorder %s5895_s30, %s4875_s21  ;;  %p4880_p0 = scmp.lt.u32.totalorder %s5895_s30, %s5989_s13 }
 0xa2f   : > { %p4881_p5 = scmp.lt.u32.totalorder %s4879_s23, %s4875_s21  ;;  %p4883_p6 = scmp.lt.u32.totalorder %s4875_s21, %s5895_s30 }
 0xa30   : > { %p4877_p11 = pnand %p4876_p10, %p5990_p9 }
 0xa31   : > { %p4882_p7 = por %p4881_p5, %p4880_p0 }
 0xa32   : > { %p4878_p12 = pneg %p4877_p11 }
 0xa33   : > { %p4884_p4 = por %p4883_p6, %p4882_p7 }
 0xa35   : > { %p4885_p13 = pnand %p4884_p4, %p4878_p12 }
 0xa37   : > { %4888 = shalt.err (!%p4885_p13)
}
 0xa38   : > { %s4965_s8 = smov 128   ;;  %s4966_s15 = smov 8  }
 0xa39   : > { %4355 = dma.vmem_to_hbm [thread:$0]  (%p5990_p9), %s5890_s19, 256, %s5895_s30, %s3786_s12, %s4965_s8, %s4965_s8, %s4966_s15  }
 0xa3a PF: > { %s3814_s14 = sand.u32 1, %s4927_s25   ;;  %p5991_p1 = scmp.ne.s32.totalorder %s5974_s7, 0 }
 0xa3b   : > { %p5992_p3 = scmp.ge.s32.totalorder %s4939_s28, 2  ;;  %s3815_s24 = scalar_lea.sflag [#allocation4], %s3814_s14 }
 0xa3d   : > { %p4381_p2 = pnand %p5992_p3, %p5991_p1 }
 0xa3f   : > { %4922 = dma.done.wait (!%p4381_p2), %s3815_s24, 256  }
 0xa40   : > { %4924 = vsyncadd (!%p4381_p2), %s3815_s24, 4294967040  ;;  %p29_p8 = scmp.ge.s32.totalorder %s5214_s18, 4   ;;  %s5993_s25 = smov %s4931_s26 }
 0xa41   : > { %s5994_s26 = smov %s4935_s27  ;;  %s5995_s27 = smov %s5225_s10 }
 0xa42   : > { %s5996_s28 = smov %s5214_s18  ;;  %31 = sbr.rel (!%p29_p8) target bundleno = 16 (0x10), region = 141 }
 0xa49   :  { %3820 = vsyncpa [#allocation3], 1 }
 0xa4a   :  { %3822 = vsyncpa [#allocation3 + $0x1], 1 }
 0xa4b   :  { %3823 = vsyncpa [#allocation6], 1 }
 0xa4c   :  { %3824 = vsyncpa [#allocation9], 1 }
 0xa4d   :  { %3825 = vsyncpa [#allocation12], 1 }
 0xa4e   :  { %3826 = vsyncpa [#allocation4], 1 }
 0xa4f   :  { %3828 = vsyncpa [#allocation4 + $0x1], 1 }

// kernel: tpu_custom_call.1
= control target key start
LH: loop header
LB: loop body
LE: loop exit
PB: predicated region body
PF: predicated region fallthrough
CT: control target
= control target key end

     0   :  { %s5940_s0 = inlined_call_operand.hbm [shape: f32[4,8,128], index: 0, kind: input, shape index: {}]   ;;  %s5941_s1 = inlined_call_operand.hbm [shape: f32[1,128], index: 1, kind: input, shape index: {}]   ;;  %s5942_s2 = inlined_call_operand.hbm [shape: f32[1,128], index: 2, kind: input, shape index: {}]   ;;  %s5943_s3 = inlined_call_operand.hbm [shape: bf16[128,384], index: 3, kind: input, shape index: {}]   ;;  %s5944_s4 = inlined_call_operand.vmem [shape: f32[1,384], index: 4, kind: input, shape index: {}]   ;;  %s5945_s5 = inlined_call_operand.hbm [shape: bf16[128,128], index: 5, kind: input, shape index: {}]   ;;  %s5946_s6 = inlined_call_operand.vmem [shape: f32[1,128], index: 6, kind: input, shape index: {}]   ;;  %s5947_s7 = inlined_call_operand.vmem [shape: f32[1,128], index: 7, kind: input, shape index: {}]   ;;  %s5948_s8 = inlined_call_operand.vmem [shape: f32[1,128], index: 8, kind: input, shape index: {}]   ;;  %s5949_s9 = inlined_call_operand.hbm [shape: bf16[128,512], index: 9, kind: input, shape index: {}]   ;;  %s5950_s10 = inlined_call_operand.vmem [shape: f32[1,512], index: 10, kind: input, shape index: {}]   ;;  %s5951_s11 = inlined_call_operand.hbm [shape: bf16[512,128], index: 11, kind: input, shape index: {}]   ;;  %s5952_s12 = inlined_call_operand.vmem [shape: f32[1,128], index: 12, kind: input, shape index: {}]   ;;  %s5953_s13 = inlined_call_operand.hbm [shape: f32[4,8,128], index: 13, kind: output, shape index: {}]  }
   0x1   :  { %5958 = sst [smem:[#allocation20_spill]] %s5941_s1 }
   0x2   :  { %5959 = sst [smem:[#allocation21_spill]] %s5943_s3 }
   0x3   :  { %5960 = sst [smem:[#allocation22_spill]] %s5947_s7 }
   0x4   :  { %5961 = sst [smem:[#allocation23_spill]] %s5948_s8 }
   0x5   :  { %5962 = sst [smem:[#allocation24_spill]] %s5950_s10 }
   0x6   :  { %5963 = sst [smem:[#allocation25_spill]] %s5952_s12 }
   0x7   :  { %5964 = sst [smem:[#allocation26_spill]] %s5953_s13 }
   0x8   :  { %18 = vsyncpa [#allocation3], 0 }
   0x9   :  { %20 = vsyncpa [#allocation3 + $0x1], 0 }
   0xa   :  { %21 = vsyncpa [#allocation6], 0 }
   0xb   :  { %22 = vsyncpa [#allocation9], 0 }
   0xc   :  { %23 = vsyncpa [#allocation12], 0 }
   0xd   :  { %24 = vsyncpa [#allocation4], 0 }
   0xe   :  { %26 = vsyncpa [#allocation4 + $0x1], 0  ;;  %s5037_s25 = smov 0   ;;  %s5039_s26 = smov 0  }
   0xf   :  { %s5041_s27 = smov 0   ;;  %s5043_s28 = smov 0  }
  0x10 LB: > { %s4941_s29 = smov [#allocation5]   ;;  %s5058_s14 = sadd.s32 4294967295, %s4939_s28   ;;  %s4939_s28 = sphi %s5043_s28, %s5996_s28   ;;  %s4935_s27 = sphi %s5041_s27, %s5995_s27   ;;  %s4931_s26 = sphi %s5039_s26, %s5994_s26   ;;  %s4927_s25 = sphi %s5037_s25, %s5993_s25  }
  0x11   : > { %s354_s30 = sshll.u32 %s4941_s29, 4  ;;  %p3930_p0 = scmp.ge.s32.totalorder %s4939_s28, 1  ;;  %s5063_s30 = int_to_ptr.vmem [resolvable:$true] %s354_s30 }
  0x12   : > { %p5955_p1 = scmp.eq.s32.totalorder %s5058_s14, 0  ;;  %p341_p2 = scmp.lt.s32.totalorder %s4939_s28, 3 }
  0x13   : > { %s4942_s16 = smov [#allocation8]   ;;  %s4943_s19 = smov [#allocation11]  }
  0x14   : > { %p5065_p3 = pnand %p3930_p0, %p341_p2  ;;  %s375_s17 = sshll.u32 %s4942_s16, 4  ;;  %s5072_s17 = int_to_ptr.vmem [resolvable:$true] %s375_s17 }
  0x15   : > { %s413_s20 = sshll.u32 %s4943_s19, 4  ;;  %s5967_s1 = sld [smem:[#allocation20_spill]]  ;;  %s5080_s20 = int_to_ptr.vmem [resolvable:$true] %s413_s20 }
  0x16   : > { %s5965_s15 = scalar_select %p5065_p3, 1, 0 }
  0x17   : > { %p4357_p5 = pneg %p5065_p3 }
  0x19   : > { %p5076_p6 = pnand %p4357_p5, %p5955_p1 }
  0x1b   : > { %s4663_s23 = scalar_lea.hbm %s5967_s1, 16  ;;  %p5090_p8 = pneg %p5076_p6 }
  0x1c   : > { %p4664_p7 = scmp.ne.s32.totalorder %s5967_s1, %s4663_s23  ;;  %p4670_p11 = scmp.lt.u32.totalorder %s4663_s23, %s5967_s1 }
  0x1e   : > { %p4666_p9 = pnand %p5090_p8, %p4664_p7 }
  0x20   : > { %p4667_p10 = pneg %p4666_p9 }
  0x22   : > { %p4672_p12 = pnand %p4670_p11, %p4667_p10 }
  0x24   : > { %4675 = shalt.err (!%p4672_p12)
}
  0x25   : > { %s4676_s21 = scalar_lea.vmem %s5063_s30, 16  ;;  %s4683_s22 = scalar_lea.vmem %s5063_s30, 32 }
  0x26   : > { %p4677_p13 = scmp.ne.s32.totalorder %s5063_s30, %s4676_s21  ;;  %p4684_p5 = scmp.lt.s32.totalorder %s5063_s30, %s5063_s30 }
  0x27   : > { %p4685_p7 = scmp.lt.s32.totalorder %s4683_s22, %s4676_s21 }
  0x28   : > { %p4679_p0 = pnand %p4677_p13, %p5090_p8 }
  0x29   : > { %p4686_p9 = por %p4685_p7, %p4684_p5 }
  0x2a   : > { %p4680_p2 = pneg %p4679_p0 }
  0x2c   : > { %p4687_p4 = pnand %p4686_p9, %p4680_p2 }
  0x2e   : > { %4690 = shalt.err (!%p4687_p4)
}
  0x2f   : > { %4360 = dma.hbm_to_vmem [thread:$0]  (!%p5076_p6), %s5967_s1, 16, %s5063_s30, [#allocation6]  }
  0x30   : > { %s5969_s3 = sld [smem:[#allocation21_spill]] }
  0x36   : > { %s4691_s19 = scalar_lea.hbm %s5969_s3, 3072 }
  0x37   : > { %p4692_p10 = scmp.ne.s32.totalorder %s5969_s3, %s4691_s19  ;;  %p4698_p4 = scmp.lt.u32.totalorder %s4691_s19, %s5969_s3 }
  0x39   : > { %p4694_p11 = pnand %p4692_p10, %p5090_p8 }
  0x3b   : > { %p4695_p12 = pneg %p4694_p11 }
  0x3d   : > { %p4700_p13 = pnand %p4698_p4, %p4695_p12 }
  0x3f   : > { %4703 = shalt.err (!%p4700_p13)
}
  0x40   : > { %s4704_s30 = scalar_lea.vmem %s5072_s17, 3072  ;;  %p4712_p7 = scmp.lt.s32.totalorder %s5072_s17, %s5072_s17 }
  0x41   : > { %p4705_p0 = scmp.ne.s32.totalorder %s5072_s17, %s4704_s30  ;;  %p4713_p9 = scmp.lt.s32.totalorder %s4704_s30, %s4704_s30 }
  0x43   : > { %p4707_p2 = pnand %p4705_p0, %p5090_p8  ;;  %p4714_p10 = por %p4713_p9, %p4712_p7 }
  0x45   : > { %p4708_p5 = pneg %p4707_p2 }
  0x47   : > { %p4715_p11 = pnand %p4714_p10, %p4708_p5 }
  0x49   : > { %4718 = shalt.err (!%p4715_p11)
}
  0x4a   : > { %s4944_s10 = smov 192   ;;  %s4945_s12 = smov 12  }
  0x4b   : > { %4366 = dma.hbm_to_vmem [thread:$0]  (!%p5076_p6), %s5969_s3, 3072, %s5072_s17, [#allocation9], %s4944_s10, %s4944_s10, %s4945_s12  }
  0x4c   : > { %s4719_s19 = scalar_lea.hbm %s5949_s9, 4096 }
  0x4d   : > { %p4720_p12 = scmp.ne.s32.totalorder %s5949_s9, %s4719_s19  ;;  %p4726_p0 = scmp.lt.u32.totalorder %s4719_s19, %s5949_s9 }
  0x4f   : > { %p4722_p4 = pnand %p4720_p12, %p5090_p8 }
  0x51   : > { %p4723_p13 = pneg %p4722_p4 }
  0x53   : > { %p4728_p2 = pnand %p4726_p0, %p4723_p13 }
  0x55   : > { %4731 = shalt.err (!%p4728_p2)
}
  0x56   : > { %s4732_s17 = scalar_lea.vmem %s5080_s20, 4096  ;;  %p4740_p10 = scmp.lt.s32.totalorder %s5080_s20, %s5080_s20 }
  0x57   : > { %p4733_p5 = scmp.ne.s32.totalorder %s5080_s20, %s4732_s17  ;;  %p4741_p11 = scmp.lt.s32.totalorder %s4732_s17, %s4732_s17 }
  0x59   : > { %p4735_p7 = pnand %p4733_p5, %p5090_p8  ;;  %p4742_p12 = por %p4741_p11, %p4740_p10 }
  0x5b   : > { %p4736_p9 = pneg %p4735_p7 }
  0x5d   : > { %p4743_p4 = pnand %p4742_p12, %p4736_p9 }
  0x5f   : > { %4746 = shalt.err (!%p4743_p4)
}
  0x60   : > { %s4946_s10 = smov 256   ;;  %s4947_s1 = smov 16  }
  0x61   : > { %4372 = dma.hbm_to_vmem [thread:$0]  (!%p5076_p6), %s5949_s9, 4096, %s5080_s20, [#allocation12], %s4946_s10, %s4946_s10, %s4947_s1  }
  0x62   : > { %s4948_s23 = smov [#allocation7]   ;;  %s4949_s29 = smov [#allocation10]  }
  0x63   : > { %s365_s24 = sshll.u32 %s4948_s23, 4  ;;  %s391_s19 = sshll.u32 %s4949_s29, 4  ;;  %s366_s24 = int_to_ptr.vmem [resolvable:$true] %s365_s24  ;;  %s392_s19 = int_to_ptr.vmem [resolvable:$true] %s391_s19 }
  0x64   : > { %s4747_s30 = scalar_lea.hbm %s5942_s2, 16 }
  0x65   : > { %p4748_p13 = scmp.ne.s32.totalorder %s5942_s2, %s4747_s30  ;;  %p4754_p5 = scmp.lt.u32.totalorder %s4747_s30, %s5942_s2 }
  0x67   : > { %p4750_p0 = pnand %p4748_p13, %p5090_p8 }
  0x69   : > { %p4751_p2 = pneg %p4750_p0 }
  0x6b   : > { %p4756_p7 = pnand %p4754_p5, %p4751_p2 }
  0x6d   : > { %4759 = shalt.err (!%p4756_p7)
}
  0x6e   : > { %s4760_s20 = scalar_lea.vmem %s366_s24, 16  ;;  %s4767_s10 = scalar_lea.vmem %s366_s24, 32 }
  0x6f   : > { %p4761_p9 = scmp.ne.s32.totalorder %s366_s24, %s4760_s20  ;;  %p4768_p12 = scmp.lt.s32.totalorder %s366_s24, %s366_s24 }
  0x70   : > { %p4769_p4 = scmp.lt.s32.totalorder %s4767_s10, %s4760_s20 }
  0x71   : > { %p4763_p10 = pnand %p4761_p9, %p5090_p8 }
  0x72   : > { %p4770_p1 = por %p4769_p4, %p4768_p12 }
  0x73   : > { %p4764_p11 = pneg %p4763_p10 }
  0x75   : > { %p4771_p3 = pnand %p4770_p1, %p4764_p11 }
  0x77   : > { %4774 = shalt.err (!%p4771_p3)
}
  0x78   : > { %4363 = dma.hbm_to_vmem [thread:$0]  (!%p5076_p6), %s5942_s2, 16, %s366_s24, [#allocation6]  }
  0x79   : > { %s4775_s12 = scalar_lea.hbm %s5945_s5, 1024 }
  0x7a   : > { %p4776_p13 = scmp.ne.s32.totalorder %s5945_s5, %s4775_s12  ;;  %p4782_p3 = scmp.lt.u32.totalorder %s4775_s12, %s5945_s5 }
  0x7c   : > { %p4778_p0 = pnand %p4776_p13, %p5090_p8 }
  0x7e   : > { %p4779_p1 = pneg %p4778_p0 }
  0x80   : > { %p4784_p2 = pnand %p4782_p3, %p4779_p1 }
  0x82   : > { %4787 = shalt.err (!%p4784_p2)
}
  0x83   : > { %s4788_s22 = scalar_lea.vmem %s392_s19, 1024  ;;  %p4796_p10 = scmp.lt.s32.totalorder %s392_s19, %s392_s19 }
  0x84   : > { %p4789_p5 = scmp.ne.s32.totalorder %s392_s19, %s4788_s22  ;;  %p4797_p11 = scmp.lt.s32.totalorder %s4788_s22, %s4788_s22 }
  0x86   : > { %p4791_p7 = pnand %p4789_p5, %p5090_p8  ;;  %p4798_p12 = por %p4797_p11, %p4796_p10 }
  0x88   : > { %p4792_p9 = pneg %p4791_p7 }
  0x8a   : > { %p4799_p4 = pnand %p4798_p12, %p4792_p9 }
  0x8c   : > { %4802 = shalt.err (!%p4799_p4)
}
  0x8d   : > { %s4950_s24 = smov 64   ;;  %s4951_s30 = smov 4  }
  0x8e   : > { %4369 = dma.hbm_to_vmem [thread:$0]  (!%p5076_p6), %s5945_s5, 1024, %s392_s19, [#allocation9], %s4950_s24, %s4950_s24, %s4951_s30  }
  0x8f   : > { %s4952_s10 = smov [#allocation13]   ;;  %s4803_s8 = scalar_lea.hbm %s5951_s11, 4096 }
  0x90   : > { %s429_s3 = sshll.u32 %s4952_s10, 4  ;;  %p4804_p13 = scmp.ne.s32.totalorder %s5951_s11, %s4803_s8  ;;  %s430_s3 = int_to_ptr.vmem [resolvable:$true] %s429_s3 }
  0x91   : > { %p4810_p3 = scmp.lt.u32.totalorder %s4803_s8, %s5951_s11 }
  0x92   : > { %p4806_p0 = pnand %p4804_p13, %p5090_p8 }
  0x94   : > { %p4807_p1 = pneg %p4806_p0 }
  0x96   : > { %p4812_p2 = pnand %p4810_p3, %p4807_p1 }
  0x98   : > { %4815 = shalt.err (!%p4812_p2)
}
  0x99   : > { %s4816_s19 = scalar_lea.vmem %s430_s3, 4096  ;;  %p4824_p10 = scmp.lt.s32.totalorder %s430_s3, %s430_s3 }
  0x9a   : > { %p4817_p5 = scmp.ne.s32.totalorder %s430_s3, %s4816_s19  ;;  %p4825_p11 = scmp.lt.s32.totalorder %s4816_s19, %s4816_s19 }
  0x9c   : > { %p4819_p7 = pnand %p4817_p5, %p5090_p8  ;;  %p4826_p12 = por %p4825_p11, %p4824_p10 }
  0x9e   : > { %p4820_p9 = pneg %p4819_p7 }
  0xa0   : > { %p4827_p4 = pnand %p4826_p12, %p4820_p9 }
  0xa2   : > { %4830 = shalt.err (!%p4827_p4)
}
  0xa3   : > { %4375 = dma.hbm_to_vmem [thread:$0]  (!%p5076_p6), %s5951_s11, 4096, %s430_s3, [#allocation12], %s4950_s24, %s4950_s24, %s4951_s30  }
  0xa4   : > { %s3929_s16 = sadd.s32 4294967294, %s4939_s28   ;;  %s5214_s18 = sadd.s32 1, %s4939_s28  }
  0xa5   : > { %s36_s17 = ssub.s32 %s4939_s28, %s5214_s18  ;;  %s39_s20 = sadd.s32 1, %s4935_s27 }
  0xa6   : > { %p37_p8 = scmp.eq.s32.totalorder %s36_s17, 0  ;;  %p46_p13 = scmp.ne.s32.totalorder %s4935_s27, %s4931_s26 }
  0xa7   : > { %p47_p0 = scmp.eq.s32.totalorder %s4939_s28, 0  ;;  %p52_p1 = scmp.ne.s32.totalorder %s4931_s26, %s4927_s25 }
  0xa8   : > { %s5225_s10 = scalar_select %p37_p8, %s4935_s27, %s39_s20  }
  0xa9   : > { %p5227_p3 = por %p47_p0, %p46_p13  ;;  %p5971_p2 = scmp.eq.s32.totalorder %s5058_s14, 0 }
  0xaa   : > { %p328_p5 = scmp.eq.s32.totalorder %s5058_s14, 1  ;;  %p334_p7 = scmp.eq.s32.totalorder %s3929_s16, 1 }
  0xab   : > { %p5233_p6 = por %p5971_p2, %p52_p1  ;;  %p4390_p9 = scmp.lt.s32.totalorder %s4939_s28, 2 }
  0xac   : > { %s446_s30 = sand.u32 1, %s4935_s27   ;;  %p5240_p10 = por %p328_p5, %p46_p13 }
  0xad   : > { %p5244_p11 = por %p334_p7, %p52_p1  ;;  %s3938_s8 = sshll.u32 %s446_s30, 4 }
  0xae   : > { %s5973_s3 = scalar_select %p5240_p10, 1, 0 }
  0xaf   : > { %s5974_s7 = scalar_select %p5244_p11, 1, 0 }
  0xb0   : > { %s4097_s12 = sshll.u32 %s4939_s28, 8  ;;  %s450_s19 = scalar_lea.vmem [#allocation2], %s3938_s8 }
  0xb1   : > { %s5252_s29 = scalar_lea.hbm %s5940_s0, %s4097_s12  ;;  %s457_s21 = sshll.u32 %s450_s19, 4  ;;  %s5254_s21 = int_to_ptr.vmem [resolvable:$true] %s457_s21 }
  0xb2   : > { %p5258_p12 = pnand %p4390_p9, %p5227_p3  ;;  %s5262_s16 = scalar_lea.sflag [#allocation3], %s446_s30 }
  0xb3   : > { %s4831_s17 = scalar_lea.hbm %s5252_s29, 256  ;;  %s4836_s1 = scalar_lea.hbm %s5940_s0, 512 }
  0xb4   : > { %p4832_p4 = scmp.ne.s32.totalorder %s5252_s29, %s4831_s17  ;;  %p4833_p8 = pneg %p5258_p12 }
  0xb5   : > { %p4837_p1 = scmp.lt.u32.totalorder %s5252_s29, %s5940_s0  ;;  %p4838_p3 = scmp.lt.u32.totalorder %s4836_s1, %s4831_s17 }
  0xb6   : > { %p4834_p13 = pnand %p4833_p8, %p4832_p4  ;;  %p4840_p5 = scmp.lt.u32.totalorder %s4831_s17, %s5252_s29 }
  0xb7   : > { %p4839_p2 = por %p4838_p3, %p4837_p1 }
  0xb8   : > { %p4835_p0 = pneg %p4834_p13 }
  0xb9   : > { %p4841_p7 = por %p4840_p5, %p4839_p2 }
  0xbb   : > { %p4842_p9 = pnand %p4841_p7, %p4835_p0 }
  0xbd   : > { %4845 = shalt.err (!%p4842_p9)
}
  0xbe   : > { %s4846_s30 = scalar_lea.vmem %s5254_s21, 256  ;;  %s4953_s23 = smov [#allocation2]  }
  0xbf   : > { %p4847_p4 = scmp.ne.s32.totalorder %s5254_s21, %s4846_s30  ;;  %s4851_s19 = sshll.u32 %s4953_s23, 4  ;;  %s4852_s19 = int_to_ptr.vmem [resolvable:$false] %s4851_s19 }
  0xc0   : > { %s4853_s20 = scalar_lea.vmem %s4852_s19, 512  ;;  %p4854_p10 = scmp.lt.s32.totalorder %s5254_s21, %s4852_s19 }
  0xc1   : > { %p4849_p13 = pnand %p4847_p4, %p4833_p8  ;;  %p4855_p1 = scmp.lt.s32.totalorder %s4853_s20, %s4846_s30 }
  0xc3   : > { %p4850_p11 = pneg %p4849_p13  ;;  %p4856_p3 = por %p4855_p1, %p4854_p10 }
  0xc5   : > { %p4857_p2 = pnand %p4856_p3, %p4850_p11 }
  0xc7   : > { %4860 = shalt.err (!%p4857_p2)
}
  0xc8   : > { %s4954_s17 = smov 128   ;;  %s4955_s8 = smov 8  }
  0xc9   : > { %4379 = dma.hbm_to_vmem [thread:$0]  (!%p5258_p12), %s5252_s29, 256, %s5254_s21, %s5262_s16, %s4954_s17, %s4954_s17, %s4955_s8  }
  0xca   : > { %p5976_p8 = scmp.ne.s32.totalorder %s5965_s15, 0 }
  0xcb   : > { %s5293_s1 = sand.u32 (!%p5976_p8), 1, %s4931_s26  }
  0xcc   : > { %469 = sbr.rel (%p5976_p8) target bundleno = 2618 (0xa3a), region = 72  ;;  %s3942_s12 = sshll.u32 (!%p5976_p8), %s5293_s1, 4 }
  0xcd   : > { %s472_s13 = scalar_lea.sflag (!%p5976_p8), [#allocation3], %s5293_s1  ;;  %s5299_s30 = scalar_lea.vmem (!%p5976_p8), [#allocation2], %s3942_s12 }
  0xd3   : > { %4906 = dma.done.wait (%p5233_p6), %s472_s13, 256  }
  0xd4   : > { %4908 = vsyncadd (%p5233_p6), %s472_s13, 4294967040  ;;  %p5977_p10 = scmp.eq.s32.totalorder %s5058_s14, 0 }
  0xd6   : > { %4910 = dma.done.wait (%p5977_p10), [#allocation6], 32   ;;  %p5978_p11 = pmov %p5977_p10 }
  0xd7   : > { %p5979_p12 = pmov %p5977_p10 }
  0xd8   : > { %4912 = vsyncadd (%p5978_p11), [#allocation6], 4294967264 }
  0xd9   : > { %4914 = dma.done.wait (%p5979_p12), [#allocation9], 4096   ;;  %p5980_p0 = pmov %p5977_p10 }
  0xdb   : > { %4916 = vsyncadd (%p5980_p0), [#allocation9], 4294963200  ;;  %p5981_p5 = pmov %p5980_p0 }
  0xdc   : > { %p5982_p7 = pmov %p5980_p0 }
  0xdd   : > { %4918 = dma.done.wait (%p5981_p5), [#allocation12], 8192  }
  0xde   : > { %4920 = vsyncadd (%p5982_p7), [#allocation12], 4294959104  ;;  %v4956_v0 = vmov 0.0   ;;  %v5319_v1 = vld [vmem:[%s5299_s30] sm:$0xff]  ;;  %v5322_v2 = vld [vmem:[%s5299_s30 + $0x8] sm:$0xff]  ;;  %v4957_v26 = vmov 0   ;;  %v627_v57 = vlaneseq }
  0xdf   : > { %4193 = vmatprep.subr.bf16.mxu1 %v4956_v0  ;;  %547 = vadd.xlane.f32.xlu0 %v5319_v1  ;;  %v554_v3 = vmul.f32 %v5319_v1, %v5319_v1  ;;  %v4469_v4 = vld [vmem:[#allocation8 + $0x4] ss:$12 sps:$4 sm:$0xff]   ;;  %v555_v5 = vmul.f32 %v5322_v2, %v5322_v2  ;;  %v4471_v6 = vld [vmem:[#allocation8] ss:$12 sps:$4 sm:$0xff]   ;;  %v4472_v7 = vld [vmem:[#allocation8 + $0x8] ss:$12 sps:$4 sm:$0xff]  }
  0xe0   : > { %770 = vmatprep.subr.bf16.mxu0 %v4469_v4  ;;  %4194 = vmatpush3.bf16.msra.mxu1 %v4472_v7  ;;  %v4473_v8 = vld [vmem:[#allocation8 + $0x1c] ss:$12 sps:$4 sm:$0xff]   ;;  %v4475_v9 = vld [vmem:[#allocation8 + $0x18] ss:$12 sps:$4 sm:$0xff]   ;;  %v4476_v10 = vld [vmem:[#allocation8 + $0x20] ss:$12 sps:$4 sm:$0xff]  }
  0xe1   : > { %556 = vadd.xlane.f32.xlu1 %v554_v3  ;;  %771 = vmatpush1.bf16.msra.mxu0 %v4471_v6  ;;  %v4477_v11 = vld [vmem:[#allocation8 + $0x34] ss:$12 sps:$4 sm:$0xff]   ;;  %v4479_v12 = vld [vmem:[#allocation8 + $0x30] ss:$12 sps:$4 sm:$0xff]   ;;  %v4480_v13 = vld [vmem:[#allocation8 + $0x38] ss:$12 sps:$4 sm:$0xff]  }
  0xe2   : > { %4195 = vmatprep.subr.bf16.mxu1 %v4956_v0  ;;  %772 = vmatprep.subr.bf16.mxu0 %v4473_v8  ;;  %v4481_v14 = vld [vmem:[#allocation8 + $0x4c] ss:$12 sps:$4 sm:$0xff]   ;;  %v4483_v15 = vld [vmem:[#allocation8 + $0x48] ss:$12 sps:$4 sm:$0xff]   ;;  %v4484_v16 = vld [vmem:[#allocation8 + $0x50] ss:$12 sps:$4 sm:$0xff]  }
  0xe3   : > { %549 = vadd.xlane.f32.xlu0 %v5322_v2  ;;  %v4485_v17 = vld [vmem:[#allocation8 + $0x64] ss:$12 sps:$4 sm:$0xff]   ;;  %v4487_v18 = vld [vmem:[#allocation8 + $0x60] ss:$12 sps:$4 sm:$0xff]   ;;  %v4488_v19 = vld [vmem:[#allocation8 + $0x68] ss:$12 sps:$4 sm:$0xff]   ;;  %802 = vmatprep.mubr.bf16.mxu0 %v4957_v26 }
  0xe4   : > { %4196 = vmatpush3.bf16.msra.mxu1 %v4476_v10  ;;  %v4489_v20 = vld [vmem:[#allocation8 + $0x7c] ss:$12 sps:$4 sm:$0xff]   ;;  %v4491_v21 = vld [vmem:[#allocation8 + $0x78] ss:$12 sps:$4 sm:$0xff]   ;;  %v4492_v22 = vld [vmem:[#allocation8 + $0x80] ss:$12 sps:$4 sm:$0xff]  }
  0xe5   : > { %558 = vadd.xlane.f32.xlu1 %v555_v5  ;;  %773 = vmatpush1.bf16.msra.mxu0 %v4475_v9  ;;  %v4493_v23 = vld [vmem:[#allocation8 + $0x94] ss:$12 sps:$4 sm:$0xff]   ;;  %v4495_v24 = vld [vmem:[#allocation8 + $0x90] ss:$12 sps:$4 sm:$0xff]   ;;  %v4496_v25 = vld [vmem:[#allocation8 + $0x98] ss:$12 sps:$4 sm:$0xff]  }
  0xe6   : > { %4197 = vmatprep.subr.bf16.mxu1 %v4956_v0  ;;  %774 = vmatprep.subr.bf16.mxu0 %v4477_v11  ;;  %vm4958_vm0 = vmmov 0   ;;  %v4497_v27 = vld [vmem:[#allocation8 + $0xac] ss:$12 sps:$4 sm:$0xff]   ;;  %v4499_v28 = vld [vmem:[#allocation8 + $0xa8] ss:$12 sps:$4 sm:$0xff]   ;;  %v5349_v58 = vshrl.u32 %v627_v57, 7 }
  0xe7   : > { %4209 = vmatprep.mubr.msk.bf16.mxu1 %vm4958_vm0, %v4956_v0  ;;  %v4500_v29 = vld [vmem:[#allocation8 + $0xb0] ss:$12 sps:$4 sm:$0xff]   ;;  %s4959_s29 = smov 64   ;;  %s4960_s21 = smov 96   ;;  %vm1754_vm1 = vcmask 261120   ;;  %vm2138_vm3 = vcmask 64512  }
  0xe8   : > { %4198 = vmatpush3.bf16.msra.mxu1 %v4480_v13  ;;  %v3950_v47 = vld [vmem:[#allocation5] ss:$0 sm:$0xff]  ;;  %v3951_v52 = vld [vmem:[#allocation7] ss:$0 sm:$0xff]  ;;  %v629_v59 = vsub.s32 0, %v5349_v58  ;;  %v633_v62 = vsub.s32 1, %v5349_v58 }
  0xe9   : > { %775 = vmatpush1.bf16.msra.mxu0 %v4479_v12  ;;  %4199 = vmatprep.subr.bf16.mxu1 %v4956_v0  ;;  %v5355_v60 = vld [vmem:[%s5944_s4] sm:$0x7]  ;;  %s4961_s22 = smov 32   ;;  %v4962_v13 = vmov 1983009808   ;;  %vm2238_vm4 = vcmask 1043456  }
  0xea   : > { %776 = vmatprep.subr.bf16.mxu0 %v4481_v14  ;;  %v630_v61 = vrot.slane %v5355_v60, %v629_v59  ;;  %v634_v3 = vrot.slane %v5355_v60, %v633_v62  ;;  %v877_v14 = vunpack.c.l.s4 %v4962_v13  ;;  %vm2902_vm5 = vcmask 523264   ;;  %s5985_s17 = sld [smem:[#allocation22_spill]]  ;;  %s5988_s16 = sld [smem:[#allocation25_spill]] }
  0xeb   : > { %vm2905_vm6 = vcmask 785408   ;;  %s541_s23 = scalar_lea.vmem [#allocation14], %s3942_s12  ;;  %s4098_s20 = sshll.u32 %s5058_s14, 8 }
  0xec   : > { %4200 = vmatpush3.bf16.msra.mxu1 %v4484_v16  ;;  %s3799_s19 = sshll.u32 %s541_s23, 4  ;;  %s5989_s13 = sld [smem:[#allocation26_spill]]  ;;  %s5890_s19 = int_to_ptr.vmem [resolvable:$true] %s3799_s19 }
  0xed   : > { %777 = vmatpush1.bf16.msra.mxu0 %v4483_v15  ;;  %4201 = vmatprep.subr.bf16.mxu1 %v4956_v0  ;;  %s3786_s12 = scalar_lea.sflag [#allocation4], %s5293_s1  ;;  %s4861_s15 = scalar_lea.vmem %s5890_s19, 256 }
  0xee   : > { %778 = vmatprep.subr.bf16.mxu0 %v4485_v17  ;;  %v4963_v17 = vmov 1934713408   ;;  %p4862_p6 = scmp.ne.s32.totalorder %s5890_s19, %s4861_s15  ;;  %p5990_p9 = scmp.ne.s32.totalorder %s5973_s3, 0 }
  0xef   : > { %s4964_s14 = smov [#allocation14]  }
  0xf0   : > { %4202 = vmatpush3.bf16.msra.mxu1 %v4488_v19  ;;  %v878_v19 = vunpack.c.0.s8 %v877_v14  ;;  %p4863_p4 = pnand %p4862_p6, %p5990_p9  ;;  %s4865_s24 = sshll.u32 %s4964_s14, 4  ;;  %s4866_s24 = int_to_ptr.vmem [resolvable:$false] %s4865_s24 }
  0xf1   : > { %779 = vmatpush1.bf16.msra.mxu0 %v4487_v18  ;;  %4203 = vmatprep.subr.bf16.mxu1 %v4956_v0  ;;  %v909_v18 = vunpack.c.l.s4 %v4963_v17  ;;  %p4868_p1 = scmp.lt.s32.totalorder %s5890_s19, %s4866_s24 }
  0xf2   : > { %780 = vmatprep.subr.bf16.mxu0 %v4489_v20  ;;  %p4864_p13 = pneg %p4863_p4 }
  0xf4   : > { %4204 = vmatpush3.bf16.msra.mxu1 %v4492_v22  ;;  %v910_v22 = vunpack.c.0.s8 %v909_v18 }
  0xf5   : > { %781 = vmatpush1.bf16.msra.mxu0 %v4491_v21  ;;  %4205 = vmatprep.subr.bf16.mxu1 %v4956_v0 }
  0xf6   : > { %782 = vmatprep.subr.bf16.mxu0 %v4493_v23 }
  0xf8   : > { %4206 = vmatpush3.bf16.msra.mxu1 %v4496_v25  ;;  %v5396_v25 = vsub.s32 %v878_v19, %v5349_v58 }
  0xf9   : > { %783 = vmatpush1.bf16.msra.mxu0 %v4495_v24  ;;  %4207 = vmatprep.subr.bf16.mxu1 %v4956_v0 }
  0xfa   : > { %784 = vmatprep.subr.bf16.mxu0 %v4497_v27 }
  0xfc   : > { %4208 = vmatpush3.bf16.msra.mxu1 %v4500_v29 }
  0xfd   : > { %785 = vmatpush1.bf16.msra.mxu0 %v4499_v28  ;;  %4213 = vmatprep.subr.bf16.mxu1 %v4956_v0 }
  0xfe   : > { %4237 = vmatprep.subr.bf16.mxu0 %v4956_v0 }
 0x16c   : > { %v548_v30 = vpop.xlane.xlu0 %547 }
 0x16d   : > { %v552_v31 = vmul.f32 0.0078125, %v548_v30 }
 0x16e   : > { %v557_v32 = vpop.xlane.xlu1 %556 }
 0x16f   : > { %v562_v33 = vmul.f32 %v552_v31, %v552_v31  ;;  %v560_v34 = vmul.f32 0.0078125, %v557_v32  ;;  %v570_v44 = vsub.f32 %v5319_v1, %v552_v31  ;;  %v5400_v32 = vsub.s32 %v910_v22, %v5349_v58 }
 0x170   : > { %v550_v35 = vpop.xlane.xlu0 %549 }
 0x171   : > { %v564_v36 = vsub.f32 %v560_v34, %v562_v33  ;;  %v553_v37 = vmul.f32 0.0078125, %v550_v35 }
 0x172   : > { %v559_v38 = vpop.xlane.xlu1 %558 }
 0x173   : > { %v566_v39 = vadd.f32 1e-05, %v564_v36  ;;  %v563_v40 = vmul.f32 %v553_v37, %v553_v37  ;;  %v561_v41 = vmul.f32 0.0078125, %v559_v38  ;;  %v571_v48 = vsub.f32 %v5322_v2, %v553_v37 }
 0x175   : > { %4589 = vrsqrt.f32 %v566_v39  ;;  %v565_v42 = vsub.f32 %v561_v41, %v563_v40 }
 0x177   : > { %v567_v43 = vadd.f32 1e-05, %v565_v42 }
 0x179   : > { %4591 = vrsqrt.f32 %v567_v43 }
 0x17f   : > { %v4590_v45 = vpop.eup %4589 }
 0x180   : > { %v572_v46 = vmul.f32 %v4590_v45, %v570_v44 }
 0x182   : > { %v581_v51 = vmul.f32 %v3950_v47, %v572_v46 }
 0x183   : > { %v4592_v49 = vpop.eup %4591 }
 0x184   : > { %v573_v50 = vmul.f32 %v4592_v49, %v571_v48  ;;  %v590_v54 = vadd.f32 %v3951_v52, %v581_v51 }
 0x186   : > { %v582_v53 = vmul.f32 %v3950_v47, %v573_v50 }
 0x188   : > { %v591_v55 = vadd.f32 %v3951_v52, %v582_v53 }
 0x18a   : > { %v592_v56 = vpack.c.bf16 %v591_v55, %v590_v54 }
 0x18c   : > { %803 = vmatmul.mubr.bf16.vlgmr.msra.gmra.mrb[0].mxu0 %v592_v56  ;;  %4210 = vmatmul.mubr.bf16.vlgmr.msra.gmra.mrb[0].mxu1 %v592_v56 }
 0x18d   : > { %4215 = vmatprep.mubr.msk.bf16.mxu1 %vm4958_vm0, %v4956_v0  ;;  %4239 = vmatprep.mubr.msk.bf16.mxu0 %vm4958_vm0, %v4956_v0 }
 0x25f   : > { %v804_v63 = vpop.f32.mrb[0].mxu0  ;;  %v5361_v1 = vpop.f32.mrb[0].mxu1 }
 0x260   : > { %v5363_v2 = vadd.f32 %v804_v63, %v630_v61  ;;  %v806_v4 = vpop.f32.mrb[1].mxu0  ;;  %v4211_v5 = vpop.f32.mrb[1].mxu1 }
 0x261   : > { %v808_v6 = vpop.f32.mrb[2].mxu0  ;;  %v5368_v7 = vpop.f32.mrb[2].mxu1  ;;  %v807_v10 = vadd.f32 %v806_v4, %v634_v3 }
 0x262   : > { %v810_v8 = vpop.f32.mrb[3].mxu0  ;;  %v4212_v9 = vpop.f32.mrb[3].mxu1  ;;  %862 = vrot.lane.b32.xlu0 %v5363_v2, %s4959_s29  ;;  %856 = vrot.lane.b32.xlu1 %v5363_v2, %s4960_s21  ;;  %v5385_v12 = vadd.f32 %v808_v6, %v630_v61 }
 0x263   : > { %v5376_v11 = vadd.f32 %v810_v8, %v634_v3 }
 0x266   : > { %1156 = vrot.lane.b32.xlu0 %v807_v10, %s4960_s21  ;;  %1162 = vrot.lane.b32.xlu1 %v807_v10, %s4959_s29 }
 0x26a   : > { %1158 = vrot.lane.b32.xlu0 %v5376_v11, %s4960_s21  ;;  %1168 = vrot.lane.b32.xlu1 %v807_v10, %s4961_s22 }
 0x26e   : > { %1170 = vrot.lane.b32.xlu0 %v5376_v11, %s4961_s22  ;;  %868 = vrot.lane.b32.xlu1 %v5363_v2, %s4961_s22 }
 0x272   : > { %864 = vrot.lane.b32.xlu0 %v5385_v12, %s4959_s29  ;;  %1164 = vrot.lane.b32.xlu1 %v5376_v11, %s4959_s29 }
 0x276   : > { %858 = vrot.lane.b32.xlu1 %v5385_v12, %s4960_s21 }
 0x27a   : > { %870 = vrot.lane.b32.xlu1 %v5385_v12, %s4961_s22 }
 0x2d4   : > { %v863_v15 = vpop.permute.xlu0 %862  ;;  %v857_v16 = vpop.permute.xlu1 %856 }
 0x2d5   : > { %v874_v27 = vcombine.low %v5363_v2, %v863_v15  ;;  %v875_v37 = vcombine.high %v5363_v2, %v863_v15 }
 0x2d7   : > { %v882_v38 = vrot.slane %v874_v27, %v5396_v25  ;;  %v889_v53 = vrot.slane %v875_v37, %v5396_v25 }
 0x2d8   : > { %v1157_v20 = vpop.permute.xlu0 %1156  ;;  %v1163_v21 = vpop.permute.xlu1 %1162 }
 0x2d9   : > { %v1174_v23 = vcombine.low %v807_v10, %v1163_v21  ;;  %v1175_v24 = vcombine.high %v807_v10, %v1163_v21 }
 0x2db   : > { %v1182_v33 = vrot.slane %v1174_v23, %v5396_v25  ;;  %v1189_v34 = vrot.slane %v1175_v24, %v5396_v25 }
 0x2dc   : > { %v1159_v28 = vpop.permute.xlu0 %1158  ;;  %v1169_v29 = vpop.permute.xlu1 %1168 }
 0x2dd   : > { %v1190_v30 = vcombine.low %v1157_v20, %v1169_v29  ;;  %v1191_v31 = vcombine.high %v1157_v20, %v1169_v29 }
 0x2df   : > { %v1198_v35 = vrot.slane %v1190_v30, %v5396_v25  ;;  %v1205_v36 = vrot.slane %v1191_v31, %v5396_v25 }
 0x2e0   : > { %v1171_v39 = vpop.permute.xlu0 %1170  ;;  %v869_v40 = vpop.permute.xlu1 %868 }
 0x2e1   : > { %v1206_v41 = vcombine.low %v1182_v33, %v1198_v35  ;;  %v1207_v42 = vcombine.high %v1182_v33, %v1198_v35  ;;  %v1222_v43 = vcombine.low %v1189_v34, %v1205_v36  ;;  %v1223_v44 = vcombine.high %v1189_v34, %v1205_v36 }
 0x2e2   : > { %v1258_v45 = vcombine.low %v1159_v28, %v1171_v39  ;;  %v1259_v46 = vcombine.high %v1159_v28, %v1171_v39  ;;  %v890_v47 = vcombine.low %v857_v16, %v869_v40  ;;  %v891_v48 = vcombine.high %v857_v16, %v869_v40 }
 0x2e3   : > { %v1214_v49 = vrot.slane %v1206_v41, %v5400_v32  ;;  %v1221_v50 = vrot.slane %v1207_v42, %v5400_v32  ;;  %v1230_v51 = vrot.slane %v1222_v43, %v5400_v32  ;;  %v1237_v52 = vrot.slane %v1223_v44, %v5400_v32 }
 0x2e4   : > { %v1266_v54 = vrot.slane %v1258_v45, %v5396_v25  ;;  %v898_v55 = vrot.slane %v890_v47, %v5396_v25  ;;  %v905_v56 = vrot.slane %v891_v48, %v5396_v25  ;;  %v1165_v61 = vpop.permute.xlu1 %1164  ;;  %v1273_v4 = vrot.slane %v1259_v46, %v5396_v25  ;;  %v865_v10 = vpop.permute.xlu0 %864 }
 0x2e5   : > { %v1310_v63 = vcombine.low %v1214_v49, %v1221_v50  ;;  %v3980_v2 = vcombine.high %v1214_v49, %v1221_v50  ;;  %v1326_v3 = vcombine.low %v1230_v51, %v1237_v52  ;;  %v3981_v16 = vcombine.high %v1230_v51, %v1237_v52 }
 0x2e6   : > { %v906_v5 = vcombine.low %v882_v38, %v898_v55  ;;  %v907_v6 = vcombine.high %v882_v38, %v898_v55  ;;  %v922_v8 = vcombine.low %v889_v53, %v905_v56  ;;  %v923_v9 = vcombine.high %v889_v53, %v905_v56 }
 0x2e7   : > { %v5418_v13 = vrot.slane %v1310_v63, %v5396_v25  ;;  %v5421_v14 = vrot.slane %v3980_v2, %v5396_v25  ;;  %v5424_v15 = vrot.slane %v1326_v3, %v5396_v25  ;;  %v942_v22 = vcombine.low %v5385_v12, %v865_v10 }
 0x2e8   : > { %v914_v17 = vrot.slane %v906_v5, %v5400_v32  ;;  %v921_v18 = vrot.slane %v907_v6, %v5400_v32  ;;  %v930_v19 = vrot.slane %v922_v8, %v5400_v32  ;;  %v937_v20 = vrot.slane %v923_v9, %v5400_v32  ;;  %v859_v21 = vpop.permute.xlu1 %858 }
 0x2e9   : > { %v943_v23 = vcombine.high %v5385_v12, %v865_v10  ;;  %v1242_v24 = vcombine.low %v5376_v11, %v1165_v61  ;;  %v1243_v27 = vcombine.high %v5376_v11, %v1165_v61  ;;  %v1341_v33 = vrot.slane %v3981_v16, %v5396_v25 }
 0x2ea   : > { %v1010_v28 = vcombine.low %v914_v17, %v921_v18  ;;  %v3976_v29 = vcombine.high %v914_v17, %v921_v18  ;;  %v1026_v30 = vcombine.low %v930_v19, %v937_v20  ;;  %v3977_v31 = vcombine.high %v930_v19, %v937_v20 }
 0x2eb   : > { %v950_v34 = vrot.slane %v942_v22, %v5396_v25  ;;  %v1250_v35 = vrot.slane %v1242_v24, %v5396_v25  ;;  %v1257_v36 = vrot.slane %v1243_v27, %v5396_v25  ;;  %v957_v47 = vrot.slane %v943_v23, %v5396_v25 }
 0x2ec   : > { %v5439_v37 = vrot.slane %v1010_v28, %v5396_v25  ;;  %v5442_v12 = vrot.slane %v3976_v29, %v5396_v25  ;;  %v5445_v11 = vrot.slane %v1026_v30, %v5396_v25  ;;  %v5448_v38 = vrot.slane %v3977_v31, %v5396_v25  ;;  %v871_v43 = vpop.permute.xlu1 %870 }
 0x2ed   : > { %v1274_v39 = vcombine.low %v1250_v35, %v1266_v54  ;;  %v1275_v40 = vcombine.high %v1250_v35, %v1266_v54  ;;  %v1290_v41 = vcombine.low %v1257_v36, %v1273_v4  ;;  %v1291_v42 = vcombine.high %v1257_v36, %v1273_v4 }
 0x2ee   : > { %v1042_v44 = vcombine.low %v5439_v37, %v5442_v12  ;;  %v1043_v45 = vcombine.high %v5439_v37, %v5442_v12  ;;  %v1058_v46 = vcombine.low %v5445_v11, %v5448_v38  ;;  %v958_v52 = vcombine.low %v859_v21, %v871_v43 }
 0x2ef   : > { %v1282_v48 = vrot.slane %v1274_v39, %v5400_v32  ;;  %v1289_v49 = vrot.slane %v1275_v40, %v5400_v32  ;;  %v1298_v50 = vrot.slane %v1290_v41, %v5400_v32  ;;  %v1305_v51 = vrot.slane %v1291_v42, %v5400_v32 }
 0x2f0   : > { %v959_v53 = vcombine.high %v859_v21, %v871_v43  ;;  %v1342_v54 = vcombine.low %v5418_v13, %v5421_v14  ;;  %v1358_v55 = vcombine.low %v5424_v15, %v1341_v33  ;;  %v1059_v56 = vcombine.high %v5445_v11, %v5448_v38 }
 0x2f1   : > { %v1378_v61 = vcombine.low %v1282_v48, %v1289_v49  ;;  %v3982_v63 = vcombine.high %v1282_v48, %v1289_v49  ;;  %v1394_v2 = vcombine.low %v1298_v50, %v1305_v51  ;;  %v966_v3 = vrot.slane %v958_v52, %v5396_v25 }
 0x2f2   : > { %v973_v4 = vrot.slane %v959_v53, %v5396_v25  ;;  %v5469_v5 = vrot.slane %v1342_v54, %v5400_v32  ;;  %v1366_v6 = vrot.slane %v1358_v55, %v5400_v32  ;;  %v3983_v16 = vcombine.high %v1298_v50, %v1305_v51 }
 0x2f3   : > { %v5473_v8 = vrot.slane %v1378_v61, %v5396_v25  ;;  %v5476_v9 = vrot.slane %v3982_v63, %v5396_v25  ;;  %v5479_v10 = vrot.slane %v1394_v2, %v5396_v25  ;;  %v974_v17 = vcombine.low %v950_v34, %v966_v3 }
 0x2f4   : > { %v975_v18 = vcombine.high %v950_v34, %v966_v3  ;;  %v990_v19 = vcombine.low %v957_v47, %v973_v4  ;;  %v991_v20 = vcombine.high %v957_v47, %v973_v4  ;;  %v1374_v21 = vcombine.low %v5469_v5, %v1366_v6 }
 0x2f5   : > { %v1343_v22 = vcombine.high %v5418_v13, %v5421_v14  ;;  %v1359_v23 = vcombine.high %v5424_v15, %v1341_v33  ;;  %v5486_v24 = vrot.slane %v1042_v44, %v5400_v32  ;;  %v982_v27 = vrot.slane %v974_v17, %v5400_v32 }
 0x2f6   : > { %v989_v28 = vrot.slane %v975_v18, %v5400_v32  ;;  %v998_v29 = vrot.slane %v990_v19, %v5400_v32  ;;  %v1005_v30 = vrot.slane %v991_v20, %v5400_v32  ;;  %v1446_v31 = vpack.c.bf16 %v1374_v21, %v1374_v21 }
 0x2f7   : > { %v1357_v34 = vrot.slane %v1343_v22, %v5400_v32  ;;  %v1373_v35 = vrot.slane %v1359_v23, %v5400_v32  ;;  %v1066_v13 = vrot.slane %v1058_v46, %v5400_v32  ;;  %v1409_v37 = vrot.slane %v3983_v16, %v5396_v25 }
 0x2f8   : > { %v1078_v14 = vcombine.low %v982_v27, %v989_v28  ;;  %v3978_v15 = vcombine.high %v982_v27, %v989_v28  ;;  %v1094_v33 = vcombine.low %v998_v29, %v1005_v30  ;;  %v3979_v36 = vcombine.high %v998_v29, %v1005_v30 }
 0x2f9   : > { %v1759_v12 = vsel %vm1754_vm1, %v1446_v31, 0  ;;  %v1376_v11 = vcombine.low %v1357_v34, %v1373_v35  ;;  %v1074_v38 = vcombine.low %v5486_v24, %v1066_v13  ;;  %v1057_v44 = vrot.slane %v1043_v45, %v5400_v32 }
 0x2fa   : > { %v5499_v39 = vrot.slane %v1078_v14, %v5396_v25  ;;  %v5502_v40 = vrot.slane %v3978_v15, %v5396_v25  ;;  %v5505_v41 = vrot.slane %v1094_v33, %v5396_v25  ;;  %v5508_v42 = vrot.slane %v3979_v36, %v5396_v25  ;;  %4214 = vmatpush3.bf16.xpose.msra.mxu1 %v1759_v12 }
 0x2fb   : > { %v1450_v43 = vpack.c.bf16 %v1376_v11, %v1376_v11  ;;  %4219 = vmatprep.subr.bf16.mxu1 %v4956_v0  ;;  %v1073_v46 = vrot.slane %v1059_v56, %v5400_v32  ;;  %v1410_v47 = vcombine.low %v5473_v8, %v5476_v9  ;;  %v1426_v52 = vcombine.low %v5479_v10, %v1409_v37 }
 0x2fc   : > { %v1110_v48 = vcombine.low %v5499_v39, %v5502_v40  ;;  %v1126_v49 = vcombine.low %v5505_v41, %v5508_v42  ;;  %v1377_v53 = vcombine.high %v1357_v34, %v1373_v35  ;;  %v1146_v45 = vpack.c.bf16 %v1074_v38, %v1074_v38 }
 0x2fd   : > { %v1943_v50 = vsel %vm1754_vm1, %v1450_v43, 0  ;;  %v1418_v51 = vrot.slane %v1410_v47, %v5400_v32  ;;  %v1076_v54 = vcombine.low %v1057_v44, %v1073_v46  ;;  %v1434_v55 = vrot.slane %v1426_v52, %v5400_v32 }
 0x2fe   : > { %4238 = vmatpush3.bf16.xpose.msra.mxu0 %v1943_v50  ;;  %v1452_v61 = vpack.c.bf16 %v1377_v53, %v1377_v53  ;;  %v1118_v63 = vrot.slane %v1110_v48, %v5400_v32  ;;  %v1134_v2 = vrot.slane %v1126_v49, %v5400_v32  ;;  %v1375_v19 = vcombine.high %v5469_v5, %v1366_v6 }
 0x2ff   : > { %4249 = vmatprep.subr.bf16.mxu0 %v4956_v0  ;;  %v1442_v56 = vcombine.low %v1418_v51, %v1434_v55  ;;  %v1150_v3 = vpack.c.bf16 %v1076_v54, %v1076_v54  ;;  %v1077_v20 = vcombine.high %v1057_v44, %v1073_v46  ;;  %v1443_v5 = vcombine.high %v1418_v51, %v1434_v55 }
 0x300   : > { %v2035_v17 = vsel %vm1754_vm1, %v1452_v61, 0  ;;  %v1142_v18 = vcombine.low %v1118_v63, %v1134_v2  ;;  %v1448_v22 = vpack.c.bf16 %v1375_v19, %v1375_v19  ;;  %v1411_v6 = vcombine.high %v5473_v8, %v5476_v9 }
 0x301   : > { %4216 = vmatmul.mubr.msk.bf16.vlgmr.msra.gmra.mrb[4].mxu1 %vm1754_vm1, %v1146_v45  ;;  %v1447_v4 = vpack.c.bf16 %v1442_v56, %v1442_v56  ;;  %v1152_v23 = vpack.c.bf16 %v1077_v20, %v1077_v20  ;;  %v1427_v28 = vcombine.high %v5479_v10, %v1409_v37  ;;  %v1075_v29 = vcombine.high %v5486_v24, %v1066_v13 }
 0x302   : > { %4221 = vmatprep.mubr.msk.bf16.mxu1 %vm4958_vm0, %v4956_v0  ;;  %v1147_v21 = vpack.c.bf16 %v1142_v18, %v1142_v18  ;;  %v1851_v27 = vsel %vm1754_vm1, %v1448_v22, 0  ;;  %v1449_v30 = vpack.c.bf16 %v1443_v5, %v1443_v5  ;;  %v1425_v31 = vrot.slane %v1411_v6, %v5400_v32 }
 0x303   : > { %v1805_v16 = vsel %vm1754_vm1, %v1447_v4, 0  ;;  %v1441_v34 = vrot.slane %v1427_v28, %v5400_v32  ;;  %v1148_v35 = vpack.c.bf16 %v1075_v29, %v1075_v29  ;;  %v1111_v10 = vcombine.high %v5499_v39, %v5502_v40 }
 0x304   : > { %4220 = vmatpush3.bf16.xpose.msra.mxu1 %v1805_v16  ;;  %v1897_v8 = vsel %vm1754_vm1, %v1449_v30, 0  ;;  %v1127_v24 = vcombine.high %v5505_v41, %v5508_v42  ;;  %v1143_v13 = vcombine.high %v1118_v63, %v1134_v2  ;;  %v2126_v43 = vand.u32 127, %v627_v57 }
 0x305   : > { %4240 = vmatmul.mubr.msk.bf16.vlgmr.msra.gmra.mrb[4].mxu0 %vm1754_vm1, %v1150_v3  ;;  %4225 = vmatprep.subr.bf16.mxu1 %v4956_v0  ;;  %v1444_v9 = vcombine.low %v1425_v31, %v1441_v34  ;;  %v1125_v33 = vrot.slane %v1111_v10, %v5400_v32  ;;  %v1445_v12 = vcombine.high %v1425_v31, %v1441_v34  ;;  %v637_v29 = vsub.s32 2, %v5349_v58 }
 0x306   : > { %4250 = vmatpush3.bf16.xpose.msra.mxu0 %v2035_v17  ;;  %4251 = vmatprep.mubr.msk.bf16.mxu0 %vm4958_vm0, %v4956_v0  ;;  %v1149_v15 = vpack.c.bf16 %v1143_v13, %v1143_v13  ;;  %v1141_v36 = vrot.slane %v1127_v24, %v5400_v32  ;;  %vm5577_vm2 = vcmp.gt.s32.totalorder %v2126_v43, %v5349_v58 }
 0x307   : > { %4261 = vmatprep.subr.bf16.mxu0 %v4956_v0  ;;  %v1451_v14 = vpack.c.bf16 %v1444_v9, %v1444_v9  ;;  %v1453_v38 = vpack.c.bf16 %v1445_v12, %v1445_v12  ;;  %v638_v30 = vrot.slane %v5355_v60, %v637_v29 }
 0x308   : > { %v1144_v11 = vcombine.low %v1125_v33, %v1141_v36  ;;  %v1145_v41 = vcombine.high %v1125_v33, %v1141_v36 }
 0x309   : > { %v1989_v37 = vsel %vm1754_vm1, %v1451_v14, 0  ;;  %v2081_v40 = vsel %vm1754_vm1, %v1453_v38, 0  ;;  %v5618_v13 = vadd.f32 %v5361_v1, %v638_v30 }
 0x30a   : > { %v1151_v39 = vpack.c.bf16 %v1144_v11, %v1144_v11  ;;  %v1153_v42 = vpack.c.bf16 %v1145_v41, %v1145_v41 }
 0x30b   : > { %4222 = vmatmul.mubr.msk.bf16.vlgmr.msra.gmra.mrb[8].mxu1 %vm1754_vm1, %v1147_v21 }
 0x30c   : > { %4226 = vmatpush3.bf16.xpose.msra.mxu1 %v1851_v27  ;;  %4227 = vmatprep.mubr.msk.bf16.mxu1 %vm4958_vm0, %v4956_v0 }
 0x30d   : > { %4252 = vmatmul.mubr.msk.bf16.vlgmr.msra.gmra.mrb[8].mxu0 %vm1754_vm1, %v1152_v23  ;;  %4231 = vmatprep.subr.bf16.mxu1 %v4956_v0 }
 0x30e   : > { %4263 = vmatprep.mubr.msk.bf16.mxu0 %vm4958_vm0, %v4956_v0 }
 0x313   : > { %4228 = vmatmul.mubr.msk.bf16.vlgmr.msra.gmra.mrb[12].mxu1 %vm1754_vm1, %v1148_v35 }
 0x314   : > { %4232 = vmatpush3.bf16.xpose.msra.mxu1 %v1897_v8  ;;  %4233 = vmatprep.mubr.msk.bf16.mxu1 %vm4958_vm0, %v4956_v0  ;;  %v5612_v8 = vadd.f32 %v5368_v7, %v638_v30 }
 0x315   : > { %4243 = vmatprep.subr.bf16.mxu1 %v4956_v0 }
 0x31b   : > { %4234 = vmatmul.mubr.msk.bf16.vlgmr.msra.gmra.mrb[16].mxu1 %vm1754_vm1, %v1149_v15 }
 0x31c   : > { %4244 = vmatpush3.bf16.xpose.msra.mxu1 %v1989_v37  ;;  %4245 = vmatprep.mubr.msk.bf16.mxu1 %vm4958_vm0, %v4956_v0 }
 0x31d   : > { %4255 = vmatprep.subr.bf16.mxu1 %v4956_v0 }
 0x323   : > { %4246 = vmatmul.mubr.msk.bf16.vlgmr.msra.gmra.mrb[20].mxu1 %vm1754_vm1, %v1151_v39 }
 0x324   : > { %4256 = vmatpush3.bf16.xpose.msra.mxu1 %v2081_v40  ;;  %4257 = vmatprep.mubr.msk.bf16.mxu1 %vm4958_vm0, %v4956_v0 }
 0x325   : > { %4267 = vmatprep.subr.bf16.mxu1 %v4956_v0 }
 0x32b   : > { %4258 = vmatmul.mubr.msk.bf16.vlgmr.msra.gmra.mrb[24].mxu1 %vm1754_vm1, %v1153_v42 }
 0x32c   : > { %4269 = vmatprep.mubr.msk.bf16.mxu1 %vm4958_vm0, %v4956_v0 }
 0x3d4   : > { %v1795_v46 = vpop.f32.mrb[4].mxu1 }
 0x3d5   : > { %v5583_v47 = vsel %vm5577_vm2, -inf, %v1795_v46  ;;  %v4217_v48 = vpop.f32.mrb[5].mxu1 }
 0x3d6   : > { %v1798_v49 = vpop.f32.mrb[6].mxu1  ;;  %v2139_v50 = vsel %vm2138_vm3, %v5583_v47, -inf }
 0x3d7   : > { %2140 = vmax.xlane.f32.xlu0 %v2139_v50  ;;  %v4218_v51 = vpop.f32.mrb[7].mxu1 }
 0x3d8   : > { %v1979_v52 = vpop.f32.mrb[4].mxu0 }
 0x3d9   : > { %v5589_v57 = vsel %vm5577_vm2, -inf, %v1979_v52  ;;  %v4241_v53 = vpop.f32.mrb[5].mxu0 }
 0x3da   : > { %v1982_v45 = vpop.f32.mrb[6].mxu0  ;;  %v2151_v54 = vsel %vm2138_vm3, %v5589_v57, -inf }
 0x3db   : > { %v4242_v55 = vpop.f32.mrb[7].mxu0  ;;  %2152 = vmax.xlane.f32.xlu0 %v2151_v54 }
 0x3de   : > { %v1841_v56 = vpop.f32.mrb[8].mxu1 }
 0x3df   : > { %v2131_v63 = vsel %vm5577_vm2, -inf, %v1841_v56  ;;  %v4223_v3 = vpop.f32.mrb[9].mxu1 }
 0x3e0   : > { %v2071_v61 = vpop.f32.mrb[8].mxu0  ;;  %v1844_v16 = vpop.f32.mrb[10].mxu1  ;;  %v2142_v19 = vsel %vm2138_vm3, %v2131_v63, -inf }
 0x3e1   : > { %v5597_v2 = vsel %vm5577_vm2, -inf, %v2071_v61  ;;  %v4253_v4 = vpop.f32.mrb[9].mxu0  ;;  %2143 = vmax.xlane.f32.xlu1 %v2142_v19  ;;  %v4224_v21 = vpop.f32.mrb[11].mxu1 }
 0x3e2   : > { %v2074_v17 = vpop.f32.mrb[10].mxu0  ;;  %v2157_v18 = vsel %vm2138_vm3, %v5597_v2, -inf }
 0x3e3   : > { %v4254_v20 = vpop.f32.mrb[11].mxu0  ;;  %2158 = vmax.xlane.f32.xlu0 %v2157_v18 }
 0x3e6   : > { %v1887_v22 = vpop.f32.mrb[12].mxu1 }
 0x3e7   : > { %v2132_v23 = vsel %vm5577_vm2, -inf, %v1887_v22  ;;  %v4229_v27 = vpop.f32.mrb[13].mxu1 }
 0x3e8   : > { %v1890_v5 = vpop.f32.mrb[14].mxu1  ;;  %v2145_v6 = vsel %vm2138_vm3, %v2132_v23, -inf }
 0x3e9   : > { %2146 = vmax.xlane.f32.xlu0 %v2145_v6  ;;  %v4230_v28 = vpop.f32.mrb[15].mxu1 }
 0x3ee   : > { %v1933_v31 = vpop.f32.mrb[16].mxu1 }
 0x3ef   : > { %v2133_v34 = vsel %vm5577_vm2, -inf, %v1933_v31  ;;  %v4235_v35 = vpop.f32.mrb[17].mxu1 }
 0x3f0   : > { %v1936_v9 = vpop.f32.mrb[18].mxu1  ;;  %v2148_v10 = vsel %vm2138_vm3, %v2133_v34, -inf }
 0x3f1   : > { %2149 = vmax.xlane.f32.xlu0 %v2148_v10  ;;  %v4236_v24 = vpop.f32.mrb[19].mxu1 }
 0x3f2   : > { %1458 = vrot.lane.b32.xlu1 %v5612_v8, %s4960_s21 }
 0x3f6   : > { %1462 = vrot.lane.b32.xlu1 %v5618_v13, %s4959_s29  ;;  %v2025_v60 = vpop.f32.mrb[20].mxu1 }
 0x3f7   : > { %v2135_v14 = vsel %vm5577_vm2, -inf, %v2025_v60  ;;  %v4247_v7 = vpop.f32.mrb[21].mxu1 }
 0x3f8   : > { %v2028_v15 = vpop.f32.mrb[22].mxu1  ;;  %v2154_v1 = vsel %vm2138_vm3, %v2135_v14, -inf }
 0x3f9   : > { %v4248_v33 = vpop.f32.mrb[23].mxu1 }
 0x3fe   : > { %v2117_v36 = vpop.f32.mrb[24].mxu1 }
 0x3ff   : > { %v2137_v37 = vsel %vm5577_vm2, -inf, %v2117_v36  ;;  %v4259_v12 = vpop.f32.mrb[25].mxu1 }
 0x400   : > { %v2120_v11 = vpop.f32.mrb[26].mxu1  ;;  %v2160_v39 = vsel %vm2138_vm3, %v2137_v37, -inf }
 0x401   : > { %v4260_v38 = vpop.f32.mrb[27].mxu1 }
 0x407   : > { %1456 = vrot.lane.b32.xlu0 %v5618_v13, %s4960_s21 }
 0x41a   : > { %2155 = vmax.xlane.f32.xlu1 %v2154_v1 }
 0x41e   : > { %2161 = vmax.xlane.f32.xlu1 %v2160_v39 }
 0x42f   : > { %1464 = vrot.lane.b32.xlu1 %v5612_v8, %s4959_s29 }
 0x464   : > { %v2141_v40 = vpop.xlane.xlu0 %2140 }
 0x465   : > { %v2163_v41 = vsub.f32 %v5583_v47, %v2141_v40 }
 0x467   : > { %v2171_v42 = vmul.f32 1.442695, %v2163_v41 }
 0x468   : > { %v2153_v52 = vpop.xlane.xlu0 %2152 }
 0x469   : > { %4593 = vpow2.f32 %v2171_v42  ;;  %v2167_v54 = vsub.f32 %v5589_v57, %v2153_v52 }
 0x46b   : > { %v2179_v56 = vmul.f32 1.442695, %v2167_v54 }
 0x46e   : > { %v2144_v43 = vpop.xlane.xlu1 %2143 }
 0x46f   : > { %v2164_v44 = vsub.f32 %v2131_v63, %v2144_v43 }
 0x470   : > { %v2159_v47 = vpop.xlane.xlu0 %2158 }
 0x471   : > { %v2173_v48 = vmul.f32 1.442695, %v2164_v44  ;;  %v2169_v18 = vsub.f32 %v5597_v2, %v2159_v47 }
 0x472   : > { %v5646_v63 = vpop.permute.xlu1 %1458 }
 0x473   : > { %v5633_v46 = vpop.eup %4593  ;;  %4595 = vpow2.f32 %v2173_v48  ;;  %v2183_v22 = vmul.f32 1.442695, %v2169_v18 }
 0x474   : > { %v2187_v49 = vsel %vm2138_vm3, %v5633_v46, 0.0 }
 0x475   : > { %2188 = vadd.xlane.f32.xlu0 %v2187_v49 }
 0x476   : > { %v2147_v53 = vpop.xlane.xlu0 %2146  ;;  %v1463_v4 = vpop.permute.xlu1 %1462 }
 0x477   : > { %v2165_v45 = vsub.f32 %v2132_v23, %v2147_v53  ;;  %v1474_v7 = vcombine.low %v5618_v13, %v1463_v4  ;;  %v1475_v15 = vcombine.high %v5618_v13, %v1463_v4 }
 0x479   : > { %v2175_v55 = vmul.f32 1.442695, %v2165_v45  ;;  %v1482_v12 = vrot.slane %v1474_v7, %v5396_v25  ;;  %v1489_v11 = vrot.slane %v1475_v15, %v5396_v25 }
 0x47b   : > { %4597 = vpow2.f32 %v2175_v55 }
 0x47c   : > { %4599 = vpow2.f32 %v2179_v56 }
 0x47d   : > { %v5637_v50 = vpop.eup %4595 }
 0x47e   : > { %v2190_v51 = vsel %vm2138_vm3, %v5637_v50, 0.0  ;;  %v2150_v61 = vpop.xlane.xlu0 %2149 }
 0x47f   : > { %2191 = vadd.xlane.f32.xlu1 %v2190_v51  ;;  %v2166_v3 = vsub.f32 %v2133_v34, %v2150_v61 }
 0x481   : > { %v2177_v16 = vmul.f32 1.442695, %v2166_v3 }
 0x482   : > { %v1457_v60 = vpop.permute.xlu0 %1456 }
 0x483   : > { %4601 = vpow2.f32 %v2177_v16 }
 0x485   : > { %v5648_v17 = vpop.eup %4597 }
 0x486   : > { %v2193_v20 = vsel %vm2138_vm3, %v5648_v17, 0.0  ;;  %v5653_v57 = vpop.eup %4599 }
 0x487   : > { %v2199_v5 = vsel %vm2138_vm3, %v5653_v57, 0.0 }
 0x48b   : > { %1468 = vrot.lane.b32.xlu0 %v5618_v13, %s4961_s22 }
 0x48d   : > { %v5657_v28 = vpop.eup %4601 }
 0x48e   : > { %v2196_v30 = vsel %vm2138_vm3, %v5657_v28, 0.0 }
 0x490   : > { %1470 = vrot.lane.b32.xlu1 %v5612_v8, %s4961_s22 }
 0x4a7   : > { %v2156_v19 = vpop.xlane.xlu1 %2155 }
 0x4a8   : > { %v2168_v21 = vsub.f32 %v2135_v14, %v2156_v19 }
 0x4aa   : > { %2194 = vadd.xlane.f32.xlu0 %v2193_v20  ;;  %v2181_v23 = vmul.f32 1.442695, %v2168_v21 }
 0x4ab   : > { %v2162_v27 = vpop.xlane.xlu1 %2161 }
 0x4ac   : > { %4603 = vpow2.f32 %v2181_v23  ;;  %v2170_v6 = vsub.f32 %v2137_v37, %v2162_v27 }
 0x4ad   : > { %4605 = vpow2.f32 %v2183_v22 }
 0x4ae   : > { %2200 = vadd.xlane.f32.xlu0 %v2199_v5  ;;  %v2185_v2 = vmul.f32 1.442695, %v2170_v6 }
 0x4af   : > { %v1465_v39 = vpop.permute.xlu1 %1464 }
 0x4b0   : > { %4607 = vpow2.f32 %v2185_v2  ;;  %v1542_v3 = vcombine.low %v5612_v8, %v1465_v39  ;;  %v1543_v4 = vcombine.high %v5612_v8, %v1465_v39 }
 0x4b2   : > { %v1550_v5 = vrot.slane %v1542_v3, %v5396_v25  ;;  %v1557_v8 = vrot.slane %v1543_v4, %v5396_v25 }
 0x4b4   : > { %2197 = vadd.xlane.f32.xlu1 %v2196_v30 }
 0x4b6   : > { %v5661_v31 = vpop.eup %4603 }
 0x4b7   : > { %v2202_v34 = vsel %vm2138_vm3, %v5661_v31, 0.0  ;;  %v5665_v35 = vpop.eup %4605 }
 0x4b8   : > { %2203 = vadd.xlane.f32.xlu0 %v2202_v34  ;;  %v2205_v10 = vsel %vm2138_vm3, %v5665_v35, 0.0 }
 0x4ba   : > { %v5667_v9 = vpop.eup %4607 }
 0x4bb   : > { %v2208_v24 = vsel %vm2138_vm3, %v5667_v9, 0.0 }
 0x4bc   : > { %2206 = vadd.xlane.f32.xlu0 %v2205_v10  ;;  %2209 = vadd.xlane.f32.xlu1 %v2208_v24 }
 0x502   : > { %v2189_v14 = vpop.xlane.xlu0 %2188 }
 0x503   : > { %4609 = vrcp.f32 %v2189_v14 }
 0x506   : > { %v1469_v33 = vpop.permute.xlu0 %1468 }
 0x507   : > { %v1490_v36 = vcombine.low %v1457_v60, %v1469_v33  ;;  %v1491_v37 = vcombine.high %v1457_v60, %v1469_v33 }
 0x509   : > { %v1498_v38 = vrot.slane %v1490_v36, %v5396_v25  ;;  %v1505_v1 = vrot.slane %v1491_v37, %v5396_v25 }
 0x50b   : > { %v1506_v40 = vcombine.low %v1482_v12, %v1498_v38  ;;  %v1507_v41 = vcombine.high %v1482_v12, %v1498_v38  ;;  %v1522_v42 = vcombine.low %v1489_v11, %v1505_v1  ;;  %v1523_v43 = vcombine.high %v1489_v11, %v1505_v1 }
 0x50c   : > { %v2192_v45 = vpop.xlane.xlu1 %2191 }
 0x50d   : > { %v1514_v44 = vrot.slane %v1506_v40, %v5400_v32  ;;  %v1521_v13 = vrot.slane %v1507_v41, %v5400_v32  ;;  %v1530_v48 = vrot.slane %v1522_v42, %v5400_v32  ;;  %v1537_v49 = vrot.slane %v1523_v43, %v5400_v32  ;;  %v4610_v27 = vpop.eup %4609 }
 0x50e   : > { %v2219_v14 = vmul.f32 %v4610_v27, %v5633_v46  ;;  %4611 = vrcp.f32 %v2192_v45 }
 0x50f   : > { %v1610_v51 = vcombine.low %v1514_v44, %v1521_v13  ;;  %v3984_v52 = vcombine.high %v1514_v44, %v1521_v13  ;;  %v1626_v47 = vcombine.low %v1530_v48, %v1537_v49  ;;  %v3985_v53 = vcombine.high %v1530_v48, %v1537_v49 }
 0x510   : > { %v1471_v16 = vpop.permute.xlu1 %1470  ;;  %v2227_v41 = vpack.c.bf16 %v2219_v14, %v2219_v14 }
 0x511   : > { %v5684_v54 = vrot.slane %v1610_v51, %v5396_v25  ;;  %v5687_v55 = vrot.slane %v3984_v52, %v5396_v25  ;;  %v5690_v56 = vrot.slane %v1626_v47, %v5396_v25  ;;  %v5693_v61 = vrot.slane %v3985_v53, %v5396_v25 }
 0x512   : > { %v1558_v20 = vcombine.low %v5646_v63, %v1471_v16  ;;  %v1559_v21 = vcombine.high %v5646_v63, %v1471_v16 }
 0x513   : > { %v1642_v18 = vcombine.low %v5684_v54, %v5687_v55  ;;  %v1658_v19 = vcombine.low %v5690_v56, %v5693_v61 }
 0x514   : > { %v1566_v6 = vrot.slane %v1558_v20, %v5396_v25  ;;  %v1573_v2 = vrot.slane %v1559_v21, %v5396_v25 }
 0x515   : > { %v1650_v22 = vrot.slane %v1642_v18, %v5400_v32  ;;  %v1666_v23 = vrot.slane %v1658_v19, %v5400_v32 }
 0x516   : > { %v1574_v10 = vcombine.low %v1550_v5, %v1566_v6  ;;  %v1575_v24 = vcombine.high %v1550_v5, %v1566_v6  ;;  %v1590_v60 = vcombine.low %v1557_v8, %v1573_v2  ;;  %v1591_v63 = vcombine.high %v1557_v8, %v1573_v2 }
 0x517   : > { %v1674_v30 = vcombine.low %v1650_v22, %v1666_v23  ;;  %v1675_v34 = vcombine.high %v1650_v22, %v1666_v23  ;;  %v1659_v22 = vcombine.high %v5690_v56, %v5693_v61 }
 0x518   : > { %v1582_v15 = vrot.slane %v1574_v10, %v5400_v32  ;;  %v1589_v33 = vrot.slane %v1575_v24, %v5400_v32  ;;  %v1598_v36 = vrot.slane %v1590_v60, %v5400_v32  ;;  %v1605_v37 = vrot.slane %v1591_v63, %v5400_v32  ;;  %v4612_v47 = vpop.eup %4611 }
 0x519   : > { %v1746_v7 = vpack.c.bf16 %v1674_v30, %v1674_v30  ;;  %v1748_v11 = vpack.c.bf16 %v1675_v34, %v1675_v34  ;;  %v2220_v3 = vmul.f32 %v4612_v47, %v5637_v50  ;;  %v1643_v50 = vcombine.high %v5684_v54, %v5687_v55  ;;  %v4503_v47 = vld [vmem:[#allocation10 + $0x10] sm:$0xff]  }
 0x51a   : > { %v1678_v38 = vcombine.low %v1582_v15, %v1589_v33  ;;  %v3986_v1 = vcombine.high %v1582_v15, %v1589_v33  ;;  %v1694_v39 = vcombine.low %v1598_v36, %v1605_v37  ;;  %v3987_v40 = vcombine.high %v1598_v36, %v1605_v37 }
 0x51b   : > { %v2240_v12 = vsel %vm2238_vm4, %v1746_v7, 0  ;;  %v2332_v13 = vsel %vm2238_vm4, %v1748_v11, 0  ;;  %v2228_v19 = vpack.c.bf16 %v2220_v3, %v2220_v3  ;;  %v1657_v27 = vrot.slane %v1643_v50, %v5400_v32 }
 0x51c   : > { %4262 = vmatpush3.bf16.msra.mxu0 %v2240_v12  ;;  %v1685_v46 = vrot.slane %v1678_v38, %v5396_v25  ;;  %v1693_v42 = vrot.slane %v3986_v1, %v5396_v25  ;;  %v1701_v43 = vrot.slane %v1694_v39, %v5396_v25  ;;  %v1709_v44 = vrot.slane %v3987_v40, %v5396_v25 }
 0x51d   : > { %4273 = vmatprep.subr.bf16.mxu0 %v4956_v0  ;;  %v1673_v5 = vrot.slane %v1659_v22, %v5400_v32 }
 0x51e   : > { %v1710_v48 = vcombine.low %v1685_v46, %v1693_v42  ;;  %v1726_v49 = vcombine.low %v1701_v43, %v1709_v44  ;;  %v1711_v10 = vcombine.high %v1685_v46, %v1693_v42  ;;  %v1727_v24 = vcombine.high %v1701_v43, %v1709_v44 }
 0x51f   : > { %4264 = vmatmul.mubr.msk.bf16.vlgmr.msra.gmra.mrb[12].mxu0 %vm2138_vm3, %v2227_v41  ;;  %v1676_v8 = vcombine.low %v1657_v27, %v1673_v5  ;;  %v1677_v61 = vcombine.high %v1657_v27, %v1673_v5 }
 0x520   : > { %4274 = vmatpush3.bf16.msra.mxu0 %v2332_v13  ;;  %4275 = vmatprep.mubr.msk.bf16.mxu0 %vm4958_vm0, %v4956_v0  ;;  %v1718_v51 = vrot.slane %v1710_v48, %v5400_v32  ;;  %v1734_v52 = vrot.slane %v1726_v49, %v5400_v32  ;;  %v1725_v63 = vrot.slane %v1711_v10, %v5400_v32 }
 0x521   : > { %4285 = vmatprep.subr.bf16.mxu0 %v4956_v0  ;;  %v1750_v30 = vpack.c.bf16 %v1676_v8, %v1676_v8  ;;  %v1752_v15 = vpack.c.bf16 %v1677_v61, %v1677_v61 }
 0x522   : > { %v1742_v53 = vcombine.low %v1718_v51, %v1734_v52  ;;  %v1743_v45 = vcombine.high %v1718_v51, %v1734_v52  ;;  %v4501_v51 = vld [vmem:[#allocation10] sm:$0xff]   ;;  %v4502_v52 = vld [vmem:[#allocation10 + $0x8] sm:$0xff]  }
 0x523   : > { %v2424_v56 = vsel %vm2238_vm4, %v1750_v30, 0  ;;  %v2516_v11 = vsel %vm2238_vm4, %v1752_v15, 0 }
 0x524   : > { %v1747_v4 = vpack.c.bf16 %v1742_v53, %v1742_v53  ;;  %v1749_v18 = vpack.c.bf16 %v1743_v45, %v1743_v45  ;;  %v4504_v53 = vld [vmem:[#allocation10 + $0x18] sm:$0xff]   ;;  %v4506_v45 = vld [vmem:[#allocation10 + $0x28] sm:$0xff]  }
 0x526   : > { %v2286_v16 = vsel %vm2238_vm4, %v1747_v4, 0  ;;  %v2378_v20 = vsel %vm2238_vm4, %v1749_v18, 0 }
 0x527   : > { %4268 = vmatpush3.bf16.msra.mxu1 %v2286_v16 }
 0x528   : > { %4279 = vmatprep.subr.bf16.mxu1 %v4956_v0 }
 0x52a   : > { %4270 = vmatmul.mubr.msk.bf16.vlgmr.msra.gmra.mrb[28].mxu1 %vm2138_vm3, %v2228_v19 }
 0x52b   : > { %4280 = vmatpush3.bf16.msra.mxu1 %v2378_v20  ;;  %4281 = vmatprep.mubr.msk.bf16.mxu1 %vm4958_vm0, %v4956_v0 }
 0x52c   : > { %4291 = vmatprep.subr.bf16.mxu1 %v4956_v0 }
 0x537   : > { %v2195_v21 = vpop.xlane.xlu0 %2194 }
 0x538   : > { %4613 = vrcp.f32 %v2195_v21 }
 0x53b   : > { %v2201_v23 = vpop.xlane.xlu0 %2200 }
 0x53c   : > { %4615 = vrcp.f32 %v2201_v23 }
 0x541   : > { %v2198_v34 = vpop.xlane.xlu1 %2197 }
 0x542   : > { %v4614_v6 = vpop.eup %4613  ;;  %4617 = vrcp.f32 %v2198_v34 }
 0x543   : > { %v2221_v2 = vmul.f32 %v4614_v6, %v5648_v17  ;;  %v1741_v17 = vrot.slane %v1727_v24, %v5400_v32 }
 0x545   : > { %v2229_v54 = vpack.c.bf16 %v2221_v2, %v2221_v2  ;;  %v2204_v60 = vpop.xlane.xlu0 %2203  ;;  %v1744_v33 = vcombine.low %v1725_v63, %v1741_v17  ;;  %v1745_v41 = vcombine.high %v1725_v63, %v1741_v17 }
 0x546   : > { %v4616_v55 = vpop.eup %4615  ;;  %4619 = vrcp.f32 %v2204_v60 }
 0x547   : > { %4276 = vmatmul.mubr.msk.bf16.vlgmr.msra.gmra.mrb[16].mxu0 %vm2138_vm3, %v2229_v54  ;;  %v2223_v14 = vmul.f32 %v4616_v55, %v5653_v57  ;;  %v1751_v1 = vpack.c.bf16 %v1744_v33, %v1744_v33  ;;  %v1753_v43 = vpack.c.bf16 %v1745_v41, %v1745_v41 }
 0x548   : > { %4286 = vmatpush3.bf16.msra.mxu0 %v2424_v56  ;;  %4287 = vmatprep.mubr.msk.bf16.mxu0 %vm4958_vm0, %v4956_v0 }
 0x549   : > { %4297 = vmatprep.subr.bf16.mxu0 %v4956_v0  ;;  %v2207_v7 = vpop.xlane.xlu0 %2206  ;;  %v2231_v36 = vpack.c.bf16 %v2223_v14, %v2223_v14  ;;  %v2210_v37 = vpop.xlane.xlu1 %2209  ;;  %v2470_v40 = vsel %vm2238_vm4, %v1751_v1, 0  ;;  %v2562_v49 = vsel %vm2238_vm4, %v1753_v43, 0 }
 0x54a   : > { %4621 = vrcp.f32 %v2207_v7 }
 0x54b   : > { %4623 = vrcp.f32 %v2210_v37 }
 0x54c   : > { %v4618_v12 = vpop.eup %4617 }
 0x54d   : > { %v2222_v38 = vmul.f32 %v4618_v12, %v5657_v28 }
 0x54f   : > { %4288 = vmatmul.mubr.msk.bf16.vlgmr.msra.gmra.mrb[20].mxu0 %vm2138_vm3, %v2231_v36  ;;  %v2230_v57 = vpack.c.bf16 %v2222_v38, %v2222_v38 }
 0x550   : > { %4298 = vmatpush3.bf16.msra.mxu0 %v2516_v11  ;;  %4299 = vmatprep.mubr.msk.bf16.mxu0 %vm4958_vm0, %v4956_v0  ;;  %v4620_v39 = vpop.eup %4619 }
 0x551   : > { %4309 = vmatprep.subr.bf16.mxu0 %v4956_v0  ;;  %4282 = vmatmul.mubr.msk.bf16.vlgmr.msra.gmra.mrb[32].mxu1 %vm2138_vm3, %v2230_v57  ;;  %v2224_v46 = vmul.f32 %v4620_v39, %v5661_v31 }
 0x552   : > { %4292 = vmatpush3.bf16.msra.mxu1 %v2470_v40  ;;  %4293 = vmatprep.mubr.msk.bf16.mxu1 %vm4958_vm0, %v4956_v0 }
 0x553   : > { %4303 = vmatprep.subr.bf16.mxu1 %v4956_v0  ;;  %v2232_v13 = vpack.c.bf16 %v2224_v46, %v2224_v46 }
 0x554   : > { %v4622_v28 = vpop.eup %4621 }
 0x555   : > { %v2225_v42 = vmul.f32 %v4622_v28, %v5665_v35  ;;  %v4624_v48 = vpop.eup %4623 }
 0x556   : > { %v2226_v31 = vmul.f32 %v4624_v48, %v5667_v9  ;;  %v4505_v9 = vld [vmem:[#allocation10 + $0x20] sm:$0xff]  }
 0x557   : > { %v2233_v44 = vpack.c.bf16 %v2225_v42, %v2225_v42 }
 0x558   : > { %v2234_v35 = vpack.c.bf16 %v2226_v31, %v2226_v31 }
 0x559   : > { %4300 = vmatmul.mubr.msk.bf16.vlgmr.msra.gmra.mrb[24].mxu0 %vm2138_vm3, %v2233_v44  ;;  %4294 = vmatmul.mubr.msk.bf16.vlgmr.msra.gmra.mrb[36].mxu1 %vm2138_vm3, %v2232_v13 }
 0x55a   : > { %4325 = vmatprep.mubr.msk.bf16.mxu0 %vm4958_vm0, %v4956_v0  ;;  %4304 = vmatpush3.bf16.msra.mxu1 %v2562_v49 }
 0x55b   : > { %4305 = vmatprep.mubr.msk.bf16.mxu1 %vm4958_vm0, %v4956_v0  ;;  %4310 = vmatpush3.bf16.msra.mxu0 %v4501_v51 }
 0x55c   : > { %4311 = vmatprep.subr.bf16.mxu0 %v4956_v0 }
 0x55f   : > { %4312 = vmatpush3.bf16.msra.mxu0 %v4502_v52 }
 0x560   : > { %4313 = vmatprep.subr.bf16.mxu0 %v4956_v0 }
 0x561   : > { %4306 = vmatmul.mubr.msk.bf16.vlgmr.msra.gmra.mrb[40].mxu1 %vm2138_vm3, %v2234_v35 }
 0x562   : > { %3314 = vmatprep.mubr.bf16.mxu1 %v4957_v26 }
 0x563   : > { %4314 = vmatpush3.bf16.msra.mxu0 %v4503_v47 }
 0x564   : > { %4315 = vmatprep.subr.bf16.mxu0 %v4956_v0 }
 0x567   : > { %4316 = vmatpush3.bf16.msra.mxu0 %v4504_v53 }
 0x568   : > { %4317 = vmatprep.subr.bf16.mxu0 %v4956_v0 }
 0x56b   : > { %4318 = vmatpush3.bf16.msra.mxu0 %v4505_v9 }
 0x56c   : > { %4319 = vmatprep.subr.bf16.mxu0 %v4956_v0 }
 0x56f   : > { %4320 = vmatpush3.bf16.msra.mxu0 %v4506_v45 }
 0x570   : > { %4321 = vmatprep.subr.bf16.mxu0 %v4956_v0 }
 0x5f2   : > { %v2276_v3 = vpop.f32.mrb[12].mxu0 }
 0x5f3   : > { %v4265_v4 = vpop.f32.mrb[13].mxu0 }
 0x5f4   : > { %v2279_v16 = vpop.f32.mrb[14].mxu0 }
 0x5f5   : > { %v4266_v18 = vpop.f32.mrb[15].mxu0 }
 0x5fd   : > { %v2322_v19 = vpop.f32.mrb[28].mxu1 }
 0x5fe   : > { %v4271_v20 = vpop.f32.mrb[29].mxu1 }
 0x5ff   : > { %v2325_v21 = vpop.f32.mrb[30].mxu1 }
 0x600   : > { %v4272_v50 = vpop.f32.mrb[31].mxu1 }
 0x61a   : > { %v2368_v22 = vpop.f32.mrb[16].mxu0 }
 0x61b   : > { %v4277_v23 = vpop.f32.mrb[17].mxu0 }
 0x61c   : > { %v2371_v27 = vpop.f32.mrb[18].mxu0 }
 0x61d   : > { %v4278_v5 = vpop.f32.mrb[19].mxu0 }
 0x622   : > { %v2460_v8 = vpop.f32.mrb[20].mxu0 }
 0x623   : > { %v2604_v6 = vcombine.low %v2276_v3, %v2460_v8  ;;  %v2605_v2 = vcombine.high %v2276_v3, %v2460_v8  ;;  %v4289_v30 = vpop.f32.mrb[21].mxu0 }
 0x624   : > { %v2463_v34 = vpop.f32.mrb[22].mxu0  ;;  %v2414_v24 = vpop.f32.mrb[32].mxu1 }
 0x625   : > { %v4290_v10 = vpop.f32.mrb[23].mxu0  ;;  %v4283_v54 = vpop.f32.mrb[33].mxu1  ;;  %v2612_v37 = vrot.slane %v2604_v6, %v5396_v25  ;;  %v2619_v12 = vrot.slane %v2605_v2, %v5396_v25 }
 0x626   : > { %v2417_v55 = vpop.f32.mrb[34].mxu1 }
 0x627   : > { %v4284_v60 = vpop.f32.mrb[35].mxu1 }
 0x62c   : > { %v2552_v56 = vpop.f32.mrb[24].mxu0  ;;  %v2506_v61 = vpop.f32.mrb[36].mxu1 }
 0x62d   : > { %v2620_v63 = vcombine.low %v2368_v22, %v2552_v56  ;;  %v2621_v17 = vcombine.high %v2368_v22, %v2552_v56  ;;  %v4301_v14 = vpop.f32.mrb[25].mxu0  ;;  %v2672_v7 = vcombine.low %v2322_v19, %v2506_v61  ;;  %v2673_v15 = vcombine.high %v2322_v19, %v2506_v61  ;;  %v4295_v33 = vpop.f32.mrb[37].mxu1 }
 0x62e   : > { %v2555_v36 = vpop.f32.mrb[26].mxu0  ;;  %v2509_v1 = vpop.f32.mrb[38].mxu1 }
 0x62f   : > { %v2628_v11 = vrot.slane %v2620_v63, %v5396_v25  ;;  %v2635_v38 = vrot.slane %v2621_v17, %v5396_v25  ;;  %v4302_v57 = vpop.f32.mrb[27].mxu0  ;;  %v4296_v39 = vpop.f32.mrb[39].mxu1  ;;  %v2680_v18 = vrot.slane %v2672_v7, %v5396_v25  ;;  %v2687_v19 = vrot.slane %v2673_v15, %v5396_v25 }
 0x631   : > { %v2636_v40 = vcombine.low %v2612_v37, %v2628_v11  ;;  %v2637_v41 = vcombine.high %v2612_v37, %v2628_v11  ;;  %v2652_v28 = vcombine.low %v2619_v12, %v2635_v38  ;;  %v2653_v46 = vcombine.high %v2619_v12, %v2635_v38  ;;  %v4507_v12 = vld [vmem:[#allocation10 + $0x30] sm:$0xff]  }
 0x632   : > { %4322 = vmatpush3.bf16.msra.mxu0 %v4507_v12  ;;  %v4521_v12 = vld [vmem:[#allocation11 + $0x40] ss:$16 sps:$4 sm:$0xff]  }
 0x633   : > { %v2644_v42 = vrot.slane %v2636_v40, %v5400_v32  ;;  %v2651_v43 = vrot.slane %v2637_v41, %v5400_v32  ;;  %v2660_v44 = vrot.slane %v2652_v28, %v5400_v32  ;;  %v2667_v13 = vrot.slane %v2653_v46, %v5400_v32  ;;  %4323 = vmatprep.subr.bf16.mxu0 %v4956_v0 }
 0x634   : > { %v2598_v51 = vpop.f32.mrb[40].mxu1 }
 0x635   : > { %v2740_v48 = vcombine.low %v2644_v42, %v2651_v43  ;;  %v4004_v49 = vcombine.high %v2644_v42, %v2651_v43  ;;  %v2756_v31 = vcombine.low %v2660_v44, %v2667_v13  ;;  %v4005_v35 = vcombine.high %v2660_v44, %v2667_v13  ;;  %v4307_v53 = vpop.f32.mrb[41].mxu1  ;;  %v4508_v13 = vld [vmem:[#allocation10 + $0x38] sm:$0xff]  }
 0x636   : > { %v2688_v52 = vcombine.low %v2414_v24, %v2598_v51  ;;  %v2689_v47 = vcombine.high %v2414_v24, %v2598_v51  ;;  %v2601_v16 = vpop.f32.mrb[42].mxu1  ;;  %4324 = vmatpush3.bf16.msra.mxu0 %v4508_v13  ;;  %v4542_v13 = vld [vmem:[#allocation11 + $0xa8] ss:$16 sps:$4 sm:$0xff]  }
 0x637   : > { %v2747_v9 = vrot.slane %v2740_v48, %v5396_v25  ;;  %v2755_v45 = vrot.slane %v4004_v49, %v5396_v25  ;;  %v2763_v3 = vrot.slane %v2756_v31, %v5396_v25  ;;  %v2771_v4 = vrot.slane %v4005_v35, %v5396_v25  ;;  %v4308_v50 = vpop.f32.mrb[43].mxu1 }
 0x638   : > { %v2696_v20 = vrot.slane %v2688_v52, %v5396_v25  ;;  %v2703_v21 = vrot.slane %v2689_v47, %v5396_v25 }
 0x639   : > { %v2773_v22 = vcombine.high %v2747_v9, %v2755_v45  ;;  %v2789_v23 = vcombine.high %v2763_v3, %v2771_v4  ;;  %v2772_v27 = vcombine.low %v2747_v9, %v2755_v45  ;;  %v2788_v5 = vcombine.low %v2763_v3, %v2771_v4 }
 0x63a   : > { %v2704_v8 = vcombine.low %v2680_v18, %v2696_v20  ;;  %v2705_v6 = vcombine.high %v2680_v18, %v2696_v20  ;;  %v2720_v2 = vcombine.low %v2687_v19, %v2703_v21  ;;  %v2721_v30 = vcombine.high %v2687_v19, %v2703_v21 }
 0x63b   : > { %v2787_v34 = vrot.slane %v2773_v22, %v5400_v32  ;;  %v2803_v10 = vrot.slane %v2789_v23, %v5400_v32  ;;  %v2780_v24 = vrot.slane %v2772_v27, %v5400_v32  ;;  %v2796_v54 = vrot.slane %v2788_v5, %v5400_v32  ;;  %v4008_v27 = vld [vmem:[%s5946_s6] ss:$0 sm:$0xff] }
 0x63c   : > { %v2712_v55 = vrot.slane %v2704_v8, %v5400_v32  ;;  %v2719_v60 = vrot.slane %v2705_v6, %v5400_v32  ;;  %v2728_v56 = vrot.slane %v2720_v2, %v5400_v32  ;;  %v2735_v61 = vrot.slane %v2721_v30, %v5400_v32  ;;  %v4661_v30 = vld [vmem:[%s5299_s30] sm:$0xff] }
 0x63d   : > { %v2806_v63 = vcombine.low %v2787_v34, %v2803_v10  ;;  %v2804_v17 = vcombine.low %v2780_v24, %v2796_v54  ;;  %v2805_v14 = vcombine.high %v2780_v24, %v2796_v54  ;;  %v2807_v7 = vcombine.high %v2787_v34, %v2803_v10  ;;  %v4662_v54 = vld [vmem:[%s5299_s30 + $0x8] sm:$0xff]  ;;  %s5986_s30 = sld [smem:[#allocation23_spill]] }
 0x63e   : > { %v2808_v15 = vcombine.low %v2712_v55, %v2719_v60  ;;  %v4006_v33 = vcombine.high %v2712_v55, %v2719_v60  ;;  %v2824_v36 = vcombine.low %v2728_v56, %v2735_v61  ;;  %v4007_v37 = vcombine.high %v2728_v56, %v2735_v61  ;;  %v4509_v56 = vld [vmem:[#allocation11] ss:$16 sps:$4 sm:$0xff]   ;;  %v4511_v61 = vld [vmem:[#allocation11 + $0x4] ss:$16 sps:$4 sm:$0xff]  }
 0x63f   : > { %3282 = vmatprep.subr.bf16.mxu1 %v4511_v61  ;;  %v4557_v61 = vld [vmem:[#allocation13 + $0x40] sm:$0xff]  }
 0x640   : > { %v2815_v11 = vrot.slane %v2808_v15, %v5396_v25  ;;  %v2823_v38 = vrot.slane %v4006_v33, %v5396_v25  ;;  %v2831_v1 = vrot.slane %v2824_v36, %v5396_v25  ;;  %v2839_v57 = vrot.slane %v4007_v37, %v5396_v25  ;;  %3283 = vmatpush1.bf16.msra.mxu1 %v4509_v56  ;;  %v4515_v15 = vld [vmem:[#allocation11 + $0x20] ss:$16 sps:$4 sm:$0xff]   ;;  %v4518_v33 = vld [vmem:[#allocation11 + $0x28] ss:$16 sps:$4 sm:$0xff]   ;;  %v4523_v36 = vld [vmem:[#allocation11 + $0x44] ss:$16 sps:$4 sm:$0xff]  }
 0x641   : > { %v4526_v37 = vld [vmem:[#allocation11 + $0x4c] ss:$16 sps:$4 sm:$0xff]  }
 0x642   : > { %v2841_v39 = vcombine.high %v2815_v11, %v2823_v38  ;;  %v2857_v40 = vcombine.high %v2831_v1, %v2839_v57  ;;  %v2840_v41 = vcombine.low %v2815_v11, %v2823_v38  ;;  %v2856_v28 = vcombine.low %v2831_v1, %v2839_v57  ;;  %v4524_v11 = vld [vmem:[#allocation11 + $0x48] ss:$16 sps:$4 sm:$0xff]   ;;  %v4529_v38 = vld [vmem:[#allocation11 + $0x64] ss:$16 sps:$4 sm:$0xff]   ;;  %v4527_v1 = vld [vmem:[#allocation11 + $0x60] ss:$16 sps:$4 sm:$0xff]  }
 0x643   : > { %v4530_v57 = vld [vmem:[#allocation11 + $0x68] ss:$16 sps:$4 sm:$0xff]  }
 0x644   : > { %v2855_v46 = vrot.slane %v2841_v39, %v5400_v32  ;;  %v2871_v42 = vrot.slane %v2857_v40, %v5400_v32  ;;  %v2848_v43 = vrot.slane %v2840_v41, %v5400_v32  ;;  %v2864_v44 = vrot.slane %v2856_v28, %v5400_v32  ;;  %v4532_v39 = vld [vmem:[#allocation11 + $0x6c] ss:$16 sps:$4 sm:$0xff]   ;;  %v4535_v40 = vld [vmem:[#allocation11 + $0x84] ss:$16 sps:$4 sm:$0xff]   ;;  %v4533_v28 = vld [vmem:[#allocation11 + $0x80] ss:$16 sps:$4 sm:$0xff]  }
 0x645   : > { %v4538_v41 = vld [vmem:[#allocation11 + $0x8c] ss:$16 sps:$4 sm:$0xff]  }
 0x646   : > { %v2874_v48 = vcombine.low %v2855_v46, %v2871_v42  ;;  %v2873_v49 = vcombine.high %v2848_v43, %v2864_v44  ;;  %v2872_v31 = vcombine.low %v2848_v43, %v2864_v44  ;;  %v2875_v25 = vcombine.high %v2855_v46, %v2871_v42  ;;  %v4536_v46 = vld [vmem:[#allocation11 + $0x88] ss:$16 sps:$4 sm:$0xff]   ;;  %v4541_v42 = vld [vmem:[#allocation11 + $0xa4] ss:$16 sps:$4 sm:$0xff]   ;;  %v4544_v43 = vld [vmem:[#allocation11 + $0xac] ss:$16 sps:$4 sm:$0xff]  }
 0x647   : > { %v4539_v44 = vld [vmem:[#allocation11 + $0xa0] ss:$16 sps:$4 sm:$0xff]  }
 0x648   : > { %v4459_v35 = vpack.i.bf16 %v2874_v48, %v2806_v63  ;;  %v4454_v51 = vpack.i.bf16 %v2873_v49, %v2805_v14  ;;  %v4464_v52 = vpack.i.bf16 %v2875_v25, %v2807_v7  ;;  %v4512_v63 = vld [vmem:[#allocation11 + $0x8] ss:$16 sps:$4 sm:$0xff]   ;;  %v4517_v14 = vld [vmem:[#allocation11 + $0x24] ss:$16 sps:$4 sm:$0xff]   ;;  %v4520_v7 = vld [vmem:[#allocation11 + $0x2c] ss:$16 sps:$4 sm:$0xff]  }
 0x649   : > { %3284 = vmatprep.subr.bf16.mxu1 %v4517_v14  ;;  %v4547_v48 = vld [vmem:[#allocation11 + $0xc4] ss:$16 sps:$4 sm:$0xff]   ;;  %v4550_v49 = vld [vmem:[#allocation11 + $0xcc] ss:$16 sps:$4 sm:$0xff]   ;;  %v4548_v25 = vld [vmem:[#allocation11 + $0xc8] ss:$16 sps:$4 sm:$0xff]  }
 0x64a   : > { %4460 = vrot.lane.b32.xlu1 %v4459_v35, %s4959_s29  ;;  %4455 = vrot.lane.b32.xlu0 %v4454_v51, %s4961_s22  ;;  %v4553_v35 = vld [vmem:[#allocation11 + $0xe4] ss:$16 sps:$4 sm:$0xff]   ;;  %v4556_v51 = vld [vmem:[#allocation11 + $0xec] ss:$16 sps:$4 sm:$0xff]   ;;  %s5987_s29 = sld [smem:[#allocation24_spill]] }
 0x64b   : > { %3285 = vmatpush1.bf16.msra.mxu1 %v4515_v15  ;;  %v4560_v14 = vld [vmem:[#allocation13 + $0x80] sm:$0xff]   ;;  %v4562_v15 = vld [vmem:[#allocation13 + $0xc8] sm:$0xff]  }
 0x64c   : > { %3286 = vmatprep.subr.bf16.mxu1 %v4523_v36  ;;  %v4564_v36 = vld [vmem:[#allocation13 + $0x88] sm:$0xff]  }
 0x64e   : > { %4465 = vrot.lane.b32.xlu1 %v4464_v52, %s4960_s21  ;;  %v4551_v52 = vld [vmem:[#allocation11 + $0xe0] ss:$16 sps:$4 sm:$0xff]  }
 0x64f   : > { %3287 = vmatpush1.bf16.msra.mxu1 %v4521_v12  ;;  %v4566_v12 = vld [vmem:[#allocation13 + $0xd0] sm:$0xff]  }
 0x650   : > { %3288 = vmatprep.subr.bf16.mxu1 %v4529_v38  ;;  %v4568_v38 = vld [vmem:[#allocation13 + $0x90] sm:$0xff]  }
 0x653   : > { %3289 = vmatpush1.bf16.msra.mxu1 %v4527_v1  ;;  %v4569_v1 = vld [vmem:[#allocation13 + $0x58] sm:$0xff]  }
 0x654   : > { %3290 = vmatprep.subr.bf16.mxu1 %v4535_v40  ;;  %v4572_v40 = vld [vmem:[#allocation13 + $0x98] sm:$0xff]  }
 0x657   : > { %3291 = vmatpush1.bf16.msra.mxu1 %v4533_v28  ;;  %v4574_v28 = vld [vmem:[#allocation13 + $0xe0] sm:$0xff]  }
 0x658   : > { %3292 = vmatprep.subr.bf16.mxu1 %v4541_v42  ;;  %v4576_v42 = vld [vmem:[#allocation13 + $0xa0] sm:$0xff]  }
 0x65b   : > { %3293 = vmatpush1.bf16.msra.mxu1 %v4539_v44  ;;  %v4578_v44 = vld [vmem:[#allocation13 + $0xe8] sm:$0xff]  }
 0x65c   : > { %3294 = vmatprep.subr.bf16.mxu1 %v4547_v48  ;;  %v4580_v48 = vld [vmem:[#allocation13 + $0xa8] sm:$0xff]  }
 0x6bc   : > { %v4461_v0 = vpop.permute.xlu1 %4460  ;;  %v4456_v47 = vpop.permute.xlu0 %4455 }
 0x6bd   : > { %v4458_v53 = vunpack.i.h.bf16 %v4456_v47  ;;  %v4457_v9 = vunpack.i.l.bf16 %v4456_v47  ;;  %v4463_v32 = vunpack.i.h.bf16 %v4461_v0  ;;  %v4462_v45 = vunpack.i.l.bf16 %v4461_v0  ;;  %v4554_v0 = vld [vmem:[#allocation11 + $0xe8] ss:$16 sps:$4 sm:$0xff]  }
 0x6bf   : > { %v2900_v3 = vsel %vm1754_vm1, %v2804_v17, %v4457_v9  ;;  %v2901_v4 = vsel %vm1754_vm1, %v2872_v31, %v4458_v53  ;;  %v4514_v17 = vld [vmem:[#allocation11 + $0xc] ss:$16 sps:$4 sm:$0xff]   ;;  %v4545_v31 = vld [vmem:[#allocation11 + $0xc0] ss:$16 sps:$4 sm:$0xff]  }
 0x6c0   : > { %v4466_v16 = vpop.permute.xlu1 %4465  ;;  %v2903_v20 = vsel %vm2902_vm5, %v2900_v3, %v4462_v45  ;;  %v2904_v21 = vsel %vm2902_vm5, %v2901_v4, %v4463_v32  ;;  %3325 = vmatprep.subr.bf16.mxu0 %v4514_v17  ;;  %3295 = vmatpush1.bf16.msra.mxu1 %v4545_v31  ;;  %v4559_v17 = vld [vmem:[#allocation13] sm:$0xff]   ;;  %v4582_v31 = vld [vmem:[#allocation13 + $0xf0] sm:$0xff]  }
 0x6c1   : > { %v4468_v18 = vunpack.i.h.bf16 %v4466_v16  ;;  %v4467_v19 = vunpack.i.l.bf16 %v4466_v16  ;;  %3296 = vmatprep.subr.bf16.mxu1 %v4553_v35  ;;  %v4584_v35 = vld [vmem:[#allocation13 + $0xb0] sm:$0xff]  }
 0x6c3   : > { %v2906_v50 = vsel %vm2905_vm6, %v2903_v20, %v4467_v19  ;;  %v2907_v22 = vsel %vm2905_vm6, %v2904_v21, %v4468_v18 }
 0x6c4   : > { %v2908_v23 = vpack.c.bf16 %v2907_v22, %v2906_v50  ;;  %3297 = vmatpush1.bf16.msra.mxu1 %v4551_v52  ;;  %v4586_v52 = vld [vmem:[#allocation13 + $0xf8] sm:$0xff]  }
 0x6c5   : > { %4149 = vmatprep.subr.bf16.mxu1 %v4557_v61 }
 0x6c6   : > { %4326 = vmatmul.mubr.bf16.vlgmr.msra.gmra.mrb[28].mxu0 %v2908_v23 }
 0x6c7   : > { %3357 = vmatprep.mubr.bf16.mxu0 %v4957_v26  ;;  %3326 = vmatpush1.bf16.msra.mxu0 %v4512_v63  ;;  %v4558_v63 = vld [vmem:[#allocation13 + $0xc0] sm:$0xff]  }
 0x6c8   : > { %3327 = vmatprep.subr.bf16.mxu0 %v4520_v7  ;;  %v4561_v7 = vld [vmem:[#allocation13 + $0x48] sm:$0xff]  }
 0x6cb   : > { %3328 = vmatpush1.bf16.msra.mxu0 %v4518_v33  ;;  %v4563_v33 = vld [vmem:[#allocation13 + $0x8] sm:$0xff]  }
 0x6cc   : > { %3329 = vmatprep.subr.bf16.mxu0 %v4526_v37  ;;  %v4565_v37 = vld [vmem:[#allocation13 + $0x50] sm:$0xff]  }
 0x6cf   : > { %3330 = vmatpush1.bf16.msra.mxu0 %v4524_v11  ;;  %v4567_v11 = vld [vmem:[#allocation13 + $0x10] sm:$0xff]  }
 0x6d0   : > { %3331 = vmatprep.subr.bf16.mxu0 %v4532_v39  ;;  %v4571_v39 = vld [vmem:[#allocation13 + $0x18] sm:$0xff]  }
 0x6d3   : > { %3332 = vmatpush1.bf16.msra.mxu0 %v4530_v57  ;;  %v4570_v57 = vld [vmem:[#allocation13 + $0xd8] sm:$0xff]  }
 0x6d4   : > { %3333 = vmatprep.subr.bf16.mxu0 %v4538_v41  ;;  %v4573_v41 = vld [vmem:[#allocation13 + $0x60] sm:$0xff]  }
 0x6d7   : > { %3334 = vmatpush1.bf16.msra.mxu0 %v4536_v46  ;;  %v4575_v46 = vld [vmem:[#allocation13 + $0x20] sm:$0xff]  }
 0x6d8   : > { %3335 = vmatprep.subr.bf16.mxu0 %v4544_v43  ;;  %v4577_v43 = vld [vmem:[#allocation13 + $0x68] sm:$0xff]  }
 0x6db   : > { %3336 = vmatpush1.bf16.msra.mxu0 %v4542_v13  ;;  %v4579_v13 = vld [vmem:[#allocation13 + $0x28] sm:$0xff]  }
 0x6dc   : > { %3337 = vmatprep.subr.bf16.mxu0 %v4550_v49  ;;  %v4581_v49 = vld [vmem:[#allocation13 + $0x70] sm:$0xff]  }
 0x6df   : > { %3338 = vmatpush1.bf16.msra.mxu0 %v4548_v25  ;;  %v4583_v25 = vld [vmem:[#allocation13 + $0x30] sm:$0xff]  }
 0x6e0   : > { %3339 = vmatprep.subr.bf16.mxu0 %v4556_v51  ;;  %v4585_v51 = vld [vmem:[#allocation13 + $0x78] sm:$0xff]  }
 0x6e3   : > { %3340 = vmatpush1.bf16.msra.mxu0 %v4554_v0  ;;  %v4587_v0 = vld [vmem:[#allocation13 + $0x38] sm:$0xff]  }
 0x6e4   : > { %4171 = vmatprep.subr.bf16.mxu0 %v4558_v63 }
 0x799   : > { %v3014_v5 = vpop.f32.mrb[28].mxu0 }
 0x79a   : > { %v3015_v8 = vadd.f32 %v4008_v27, %v3014_v5  ;;  %v4327_v6 = vpop.f32.mrb[29].mxu0 }
 0x79b   : > { %v3017_v2 = vpop.f32.mrb[30].mxu0 }
 0x79c   : > { %v5822_v34 = vadd.f32 %v4661_v30, %v3015_v8  ;;  %v3018_v10 = vadd.f32 %v4008_v27, %v3017_v2  ;;  %v4328_v24 = vpop.f32.mrb[31].mxu0  ;;  %v4017_v8 = vld [vmem:[%s5985_s17] ss:$0 sm:$0xff] }
 0x79d   : > { %v4018_v24 = vld [vmem:[%s5986_s30] ss:$0 sm:$0xff]  ;;  %s5895_s30 = scalar_lea.hbm %s5989_s13, %s4098_s20 }
 0x79e   : > { %v5825_v55 = vadd.f32 %v4662_v54, %v3018_v10  ;;  %3023 = vadd.xlane.f32.xlu1 %v5822_v34  ;;  %v3029_v26 = vmul.f32 %v5822_v34, %v5822_v34 }
 0x7a0   : > { %3025 = vadd.xlane.f32.xlu0 %v5825_v55  ;;  %v3030_v60 = vmul.f32 %v5825_v55, %v5825_v55 }
 0x7a4   : > { %3031 = vadd.xlane.f32.xlu0 %v3029_v26 }
 0x7a8   : > { %3033 = vadd.xlane.f32.xlu0 %v3030_v60 }
 0x82b   : > { %v3024_v47 = vpop.xlane.xlu1 %3023 }
 0x82c   : > { %v3027_v9 = vmul.f32 0.0078125, %v3024_v47  ;;  %v4588_v47 = vld [vmem:[#allocation13 + $0xb8] sm:$0xff]  }
 0x82d   : > { %v3026_v53 = vpop.xlane.xlu0 %3025 }
 0x82e   : > { %v3037_v45 = vmul.f32 %v3027_v9, %v3027_v9  ;;  %v3028_v3 = vmul.f32 0.0078125, %v3026_v53  ;;  %v3045_v23 = vsub.f32 %v5822_v34, %v3027_v9  ;;  %v3100_v53 = vld [vmem:[%s5987_s29] sm:$0xf]  ;;  %v3116_v9 = vsub.s32 3, %v5349_v58  ;;  %s4867_s29 = scalar_lea.vmem %s4866_s24, 512 }
 0x82f   : > { %p4869_p3 = scmp.lt.s32.totalorder %s4867_s29, %s4861_s15 }
 0x830   : > { %v3038_v19 = vmul.f32 %v3028_v3, %v3028_v3  ;;  %v3046_v6 = vsub.f32 %v5825_v55, %v3028_v3  ;;  %v3109_v3 = vrot.slane %v3100_v53, %v633_v62 }
 0x831   : > { %v3032_v32 = vpop.xlane.xlu0 %3031  ;;  %p4870_p2 = por %p4869_p3, %p4868_p1 }
 0x832   : > { %v3035_v4 = vmul.f32 0.0078125, %v3032_v32  ;;  %v3105_v32 = vrot.slane %v3100_v53, %v629_v59 }
 0x833   : > { %p4871_p8 = pnand %p4870_p2, %p4864_p13 }
 0x834   : > { %v3039_v16 = vsub.f32 %v3035_v4, %v3037_v45  ;;  %v3113_v45 = vrot.slane %v3100_v53, %v637_v29  ;;  %v3117_v4 = vrot.slane %v3100_v53, %v3116_v9 }
 0x835   : > { %v3034_v18 = vpop.xlane.xlu0 %3033 }
 0x836   : > { %v3041_v20 = vadd.f32 1e-05, %v3039_v16  ;;  %v3036_v21 = vmul.f32 0.0078125, %v3034_v18 }
 0x838   : > { %4625 = vrsqrt.f32 %v3041_v20  ;;  %v3040_v50 = vsub.f32 %v3036_v21, %v3038_v19 }
 0x83a   : > { %v3042_v22 = vadd.f32 1e-05, %v3040_v50 }
 0x83c   : > { %4627 = vrsqrt.f32 %v3042_v22 }
 0x842   : > { %v4626_v27 = vpop.eup %4625 }
 0x843   : > { %v3047_v5 = vmul.f32 %v4626_v27, %v3045_v23 }
 0x845   : > { %v3056_v10 = vmul.f32 %v4017_v8, %v3047_v5 }
 0x846   : > { %v4628_v2 = vpop.eup %4627 }
 0x847   : > { %v3048_v30 = vmul.f32 %v4628_v2, %v3046_v6  ;;  %v3065_v26 = vadd.f32 %v4018_v24, %v3056_v10 }
 0x849   : > { %v3057_v54 = vmul.f32 %v4017_v8, %v3048_v30 }
 0x84b   : > { %v3066_v60 = vadd.f32 %v4018_v24, %v3057_v54 }
 0x84d   : > { %v3067_v56 = vpack.c.bf16 %v3066_v60, %v3065_v26 }
 0x84f   : > { %3315 = vmatmul.mubr.bf16.vlgmr.msra.gmra.mrb[44].mxu1 %v3067_v56  ;;  %3358 = vmatmul.mubr.bf16.vlgmr.msra.gmra.mrb[32].mxu0 %v3067_v56 }
 0x850   : > { %4150 = vmatpush3.bf16.msra.mxu1 %v4559_v17  ;;  %4172 = vmatpush3.bf16.msra.mxu0 %v4560_v14 }
 0x851   : > { %4151 = vmatprep.subr.bf16.mxu1 %v4561_v7  ;;  %4173 = vmatprep.subr.bf16.mxu0 %v4562_v15 }
 0x854   : > { %4152 = vmatpush3.bf16.msra.mxu1 %v4563_v33  ;;  %4174 = vmatpush3.bf16.msra.mxu0 %v4564_v36 }
 0x855   : > { %4153 = vmatprep.subr.bf16.mxu1 %v4565_v37  ;;  %4175 = vmatprep.subr.bf16.mxu0 %v4566_v12 }
 0x858   : > { %4154 = vmatpush3.bf16.msra.mxu1 %v4567_v11  ;;  %4176 = vmatpush3.bf16.msra.mxu0 %v4568_v38 }
 0x859   : > { %4155 = vmatprep.subr.bf16.mxu1 %v4569_v1  ;;  %4177 = vmatprep.subr.bf16.mxu0 %v4570_v57 }
 0x85c   : > { %4156 = vmatpush3.bf16.msra.mxu1 %v4571_v39  ;;  %4178 = vmatpush3.bf16.msra.mxu0 %v4572_v40 }
 0x85d   : > { %4157 = vmatprep.subr.bf16.mxu1 %v4573_v41  ;;  %4179 = vmatprep.subr.bf16.mxu0 %v4574_v28 }
 0x860   : > { %4158 = vmatpush3.bf16.msra.mxu1 %v4575_v46  ;;  %4180 = vmatpush3.bf16.msra.mxu0 %v4576_v42 }
 0x861   : > { %4159 = vmatprep.subr.bf16.mxu1 %v4577_v43  ;;  %4181 = vmatprep.subr.bf16.mxu0 %v4578_v44 }
 0x864   : > { %4160 = vmatpush3.bf16.msra.mxu1 %v4579_v13  ;;  %4182 = vmatpush3.bf16.msra.mxu0 %v4580_v48 }
 0x865   : > { %4161 = vmatprep.subr.bf16.mxu1 %v4581_v49  ;;  %4183 = vmatprep.subr.bf16.mxu0 %v4582_v31 }
 0x868   : > { %4162 = vmatpush3.bf16.msra.mxu1 %v4583_v25  ;;  %4184 = vmatpush3.bf16.msra.mxu0 %v4584_v35 }
 0x869   : > { %4163 = vmatprep.subr.bf16.mxu1 %v4585_v51  ;;  %4185 = vmatprep.subr.bf16.mxu0 %v4586_v52 }
 0x86c   : > { %4164 = vmatpush3.bf16.msra.mxu1 %v4587_v0  ;;  %4186 = vmatpush3.bf16.msra.mxu0 %v4588_v47 }
 0x922   : > { %v3316_v16 = vpop.f32.mrb[44].mxu1  ;;  %v3359_v18 = vpop.f32.mrb[32].mxu0 }
 0x923   : > { %v5851_v19 = vadd.f32 %v3316_v16, %v3105_v32  ;;  %v5853_v20 = vadd.f32 %v3359_v18, %v3113_v45  ;;  %v3318_v21 = vpop.f32.mrb[45].mxu1  ;;  %v3361_v50 = vpop.f32.mrb[33].mxu0 }
 0x924   : > { %v5855_v22 = vadd.f32 %v3318_v21, %v3109_v3  ;;  %v5857_v23 = vadd.f32 %v3361_v50, %v3117_v4  ;;  %v3320_v59 = vpop.f32.mrb[46].mxu1  ;;  %v3363_v27 = vpop.f32.mrb[34].mxu0 }
 0x925   : > { %v4051_v29 = vmul.f32 -1.702, %v5851_v19  ;;  %v4053_v58 = vmul.f32 -1.702, %v5853_v20  ;;  %v5861_v62 = vadd.f32 %v3320_v59, %v3105_v32  ;;  %v5863_v5 = vadd.f32 %v3363_v27, %v3113_v45  ;;  %v3322_v8 = vpop.f32.mrb[47].mxu1  ;;  %v3365_v6 = vpop.f32.mrb[35].mxu0 }
 0x926   : > { %v4052_v2 = vmul.f32 -1.702, %v5855_v22  ;;  %v4054_v30 = vmul.f32 -1.702, %v5857_v23  ;;  %v5867_v10 = vadd.f32 %v3322_v8, %v3109_v3  ;;  %v5869_v24 = vadd.f32 %v3365_v6, %v3117_v4  ;;  %v4059_v59 = vld [vmem:[%s5988_s16] ss:$0 sm:$0xff] }
 0x927   : > { %v3384_v54 = vmul.f32 1.442695, %v4051_v29  ;;  %v3388_v26 = vmul.f32 1.442695, %v4053_v58  ;;  %v4055_v60 = vmul.f32 -1.702, %v5861_v62  ;;  %v3424_v56 = vpack.c.bf16 %v5861_v62, %v5851_v19 }
 0x928   : > { %v3386_v61 = vmul.f32 1.442695, %v4052_v2  ;;  %v3390_v63 = vmul.f32 1.442695, %v4054_v30  ;;  %v4057_v17 = vmul.f32 -1.702, %v5863_v5  ;;  %v3426_v14 = vpack.c.bf16 %v5863_v5, %v5853_v20 }
 0x929   : > { %4629 = vpow2.f32 %v3384_v54  ;;  %v3392_v7 = vmul.f32 1.442695, %v4055_v60  ;;  %v4056_v15 = vmul.f32 -1.702, %v5867_v10  ;;  %v3425_v33 = vpack.c.bf16 %v5867_v10, %v5855_v22 }
 0x92a   : > { %4631 = vpow2.f32 %v3388_v26  ;;  %v3396_v36 = vmul.f32 1.442695, %v4057_v17  ;;  %v4058_v37 = vmul.f32 -1.702, %v5869_v24  ;;  %v3427_v12 = vpack.c.bf16 %v5869_v24, %v5857_v23 }
 0x92b   : > { %4633 = vpow2.f32 %v3386_v61  ;;  %v3394_v11 = vmul.f32 1.442695, %v4056_v15 }
 0x92c   : > { %4635 = vpow2.f32 %v3390_v63  ;;  %v3398_v38 = vmul.f32 1.442695, %v4058_v37 }
 0x92d   : > { %4637 = vpow2.f32 %v3392_v7 }
 0x92e   : > { %4639 = vpow2.f32 %v3396_v36 }
 0x92f   : > { %4641 = vpow2.f32 %v3394_v11 }
 0x930   : > { %4643 = vpow2.f32 %v3398_v38 }
 0x933   : > { %v4630_v1 = vpop.eup %4629 }
 0x934   : > { %v4632_v57 = vpop.eup %4631  ;;  %v3400_v39 = vadd.f32 1.0, %v4630_v1 }
 0x935   : > { %v4634_v40 = vpop.eup %4633  ;;  %v3402_v41 = vadd.f32 1.0, %v4632_v57 }
 0x936   : > { %v4636_v28 = vpop.eup %4635  ;;  %4645 = vrcp.f32 %v3400_v39  ;;  %v3401_v46 = vadd.f32 1.0, %v4634_v40 }
 0x937   : > { %v4638_v42 = vpop.eup %4637  ;;  %4647 = vrcp.f32 %v3402_v41  ;;  %v3403_v43 = vadd.f32 1.0, %v4636_v28 }
 0x938   : > { %v4640_v44 = vpop.eup %4639  ;;  %4649 = vrcp.f32 %v3401_v46  ;;  %v3404_v13 = vadd.f32 1.0, %v4638_v42 }
 0x939   : > { %v4642_v48 = vpop.eup %4641  ;;  %4651 = vrcp.f32 %v3403_v43  ;;  %v3406_v49 = vadd.f32 1.0, %v4640_v44 }
 0x93a   : > { %v4644_v31 = vpop.eup %4643  ;;  %4653 = vrcp.f32 %v3404_v13  ;;  %v3405_v25 = vadd.f32 1.0, %v4642_v48 }
 0x93b   : > { %4655 = vrcp.f32 %v3406_v49  ;;  %v3407_v35 = vadd.f32 1.0, %v4644_v31 }
 0x93c   : > { %4657 = vrcp.f32 %v3405_v25 }
 0x93d   : > { %4659 = vrcp.f32 %v3407_v35 }
 0x940   : > { %v4646_v51 = vpop.eup %4645 }
 0x941   : > { %v4648_v52 = vpop.eup %4647 }
 0x942   : > { %v4650_v0 = vpop.eup %4649 }
 0x943   : > { %v4652_v47 = vpop.eup %4651 }
 0x944   : > { %v4654_v53 = vpop.eup %4653 }
 0x945   : > { %v4656_v9 = vpop.eup %4655  ;;  %v3428_v32 = vpack.c.bf16 %v4654_v53, %v4646_v51 }
 0x946   : > { %v4658_v45 = vpop.eup %4657  ;;  %v3430_v3 = vpack.c.bf16 %v4656_v9, %v4648_v52 }
 0x947   : > { %v4660_v4 = vpop.eup %4659  ;;  %v3432_v16 = vmul.bf16 %v3428_v32, %v3424_v56  ;;  %v3429_v18 = vpack.c.bf16 %v4658_v45, %v4650_v0 }
 0x948   : > { %v3434_v19 = vmul.bf16 %v3430_v3, %v3426_v14  ;;  %v3431_v20 = vpack.c.bf16 %v4660_v4, %v4652_v47 }
 0x949   : > { %v3433_v21 = vmul.bf16 %v3429_v18, %v3425_v33 }
 0x94a   : > { %v3435_v50 = vmul.bf16 %v3431_v20, %v3427_v12 }
 0x94b   : > { %3731 = vmatprep.mubr.bf16.mxu1 %v3433_v21 }
 0x94c   : > { %3772 = vmatprep.mubr.bf16.mxu0 %v3435_v50  ;;  %3732 = vmatmul.mubr.bf16.vlgmr.msra.gmra.mrb[48].mxu1 %v3432_v16 }
 0x94d   : > { %3773 = vmatmul.mubr.bf16.vlgmr.msra.gmra.mrb[36].mxu0 %v3434_v19 }
 0xa1f   : > { %v4165_v22 = vpop.f32.mrb[48].mxu1 }
 0xa20   : > { %v4187_v23 = vpop.f32.mrb[36].mxu0  ;;  %v4166_v27 = vpop.f32.mrb[49].mxu1 }
 0xa21   : > { %v4167_v29 = vadd.f32 %v4166_v27, %v4165_v22  ;;  %v4188_v58 = vpop.f32.mrb[37].mxu0  ;;  %v4168_v62 = vpop.f32.mrb[50].mxu1 }
 0xa22   : > { %v4189_v5 = vadd.f32 %v4188_v58, %v4187_v23  ;;  %v4190_v8 = vpop.f32.mrb[38].mxu0  ;;  %v4169_v6 = vpop.f32.mrb[51].mxu1 }
 0xa23   : > { %v3734_v2 = vadd.f32 %v4167_v29, %v4059_v59  ;;  %v4170_v30 = vadd.f32 %v4169_v6, %v4168_v62  ;;  %v4191_v10 = vpop.f32.mrb[39].mxu0 }
 0xa24   : > { %v4192_v24 = vadd.f32 %v4191_v10, %v4190_v8 }
 0xa25   : > { %v3775_v54 = vadd.f32 %v4189_v5, %v3734_v2  ;;  %v3737_v26 = vadd.f32 %v4170_v30, %v4059_v59 }
 0xa27   : > { %v3781_v60 = vadd.f32 %v3775_v54, %v5822_v34  ;;  %v3778_v56 = vadd.f32 %v4192_v24, %v3737_v26 }
 0xa29   : > { %3783 = vst [vmem:[%s541_s23] sm:$0xff] %v3781_v60  ;;  %v3782_v61 = vadd.f32 %v3778_v56, %v5825_v55 }
 0xa2b   : > { %3784 = vst [vmem:[%s541_s23 + $0x8] sm:$0xff] %v3782_v61 }
 0xa2c   : > { %4874 = shalt.err (!%p4871_p8)
}
 0xa2d   : > { %s4875_s21 = scalar_lea.hbm %s5895_s30, 256  ;;  %s4879_s23 = scalar_lea.hbm %s5989_s13, 512 }
 0xa2e   : > { %p4876_p10 = scmp.ne.s32.totalorder %s5895_s30, %s4875_s21  ;;  %p4880_p0 = scmp.lt.u32.totalorder %s5895_s30, %s5989_s13 }
 0xa2f   : > { %p4881_p5 = scmp.lt.u32.totalorder %s4879_s23, %s4875_s21  ;;  %p4883_p6 = scmp.lt.u32.totalorder %s4875_s21, %s5895_s30 }
 0xa30   : > { %p4877_p11 = pnand %p4876_p10, %p5990_p9 }
 0xa31   : > { %p4882_p7 = por %p4881_p5, %p4880_p0 }
 0xa32   : > { %p4878_p12 = pneg %p4877_p11 }
 0xa33   : > { %p4884_p4 = por %p4883_p6, %p4882_p7 }
 0xa35   : > { %p4885_p13 = pnand %p4884_p4, %p4878_p12 }
 0xa37   : > { %4888 = shalt.err (!%p4885_p13)
}
 0xa38   : > { %s4965_s8 = smov 128   ;;  %s4966_s15 = smov 8  }
 0xa39   : > { %4355 = dma.vmem_to_hbm [thread:$0]  (%p5990_p9), %s5890_s19, 256, %s5895_s30, %s3786_s12, %s4965_s8, %s4965_s8, %s4966_s15  }
 0xa3a PF: > { %s3814_s14 = sand.u32 1, %s4927_s25   ;;  %p5991_p1 = scmp.ne.s32.totalorder %s5974_s7, 0 }
 0xa3b   : > { %p5992_p3 = scmp.ge.s32.totalorder %s4939_s28, 2  ;;  %s3815_s24 = scalar_lea.sflag [#allocation4], %s3814_s14 }
 0xa3d   : > { %p4381_p2 = pnand %p5992_p3, %p5991_p1 }
 0xa3f   : > { %4922 = dma.done.wait (!%p4381_p2), %s3815_s24, 256  }
 0xa40   : > { %4924 = vsyncadd (!%p4381_p2), %s3815_s24, 4294967040  ;;  %p29_p8 = scmp.ge.s32.totalorder %s5214_s18, 4   ;;  %s5993_s25 = smov %s4931_s26 }
 0xa41   : > { %s5994_s26 = smov %s4935_s27  ;;  %s5995_s27 = smov %s5225_s10 }
 0xa42   : > { %s5996_s28 = smov %s5214_s18  ;;  %31 = sbr.rel (!%p29_p8) target bundleno = 16 (0x10), region = 141 }
 0xa49   :  { %3820 = vsyncpa [#allocation3], 1 }
 0xa4a   :  { %3822 = vsyncpa [#allocation3 + $0x1], 1 }
 0xa4b   :  { %3823 = vsyncpa [#allocation6], 1 }
 0xa4c   :  { %3824 = vsyncpa [#allocation9], 1 }
 0xa4d   :  { %3825 = vsyncpa [#allocation12], 1 }
 0xa4e   :  { %3826 = vsyncpa [#allocation4], 1 }
 0xa4f   :  { %3828 = vsyncpa [#allocation4 + $0x1], 1 }

</bundles_post_ra>
